<compile_context>
chip_gen: v6e
topology: v6e:2x2x1
jax: 0.10.0
libtpu: 0.0.40
codegen_flags: <defaults>
</compile_context>

<pallas_src>
import functools
import math

import jax
import jax.numpy as jnp
from jax import lax
from jax.experimental import pallas as pl
from jax.experimental.pallas import tpu as pltpu


def _attn_kernel(x_ref, wqkvT_ref, woT_ref, cos_ref, sina_ref, sinb_ref,
                 o_ref,
                 qkv_scr, tab_scr, q_scr, k_scr, v_scr, ctx_scr, mask_scr,
                 *, num_heads, head_dim):
    """Full HNetAttention forward for one batch row."""
    S = x_ref.shape[1]
    H = x_ref.shape[2]
    half = head_dim // 2

    # --- fused QKV projection: one (S,H)@(H,3H) bf16 MXU matmul -------------
    # 1/sqrt(head_dim) is folded into the q columns of Wqkv^T on the host.
    # The (S,3H) f32 result is staged in VMEM scratch so it never needs to be
    # resident in vregs across the RoPE / head loop.
    qkv_scr[...] = jnp.dot(x_ref[0], wqkvT_ref[...],
                           preferred_element_type=jnp.float32)

    # --- RoPE tables: shipped at natural (S, head_dim) width, tiled to the
    #     full hidden width once per grid step and parked in VMEM scratch. ---
    tab_scr[0] = jnp.concatenate([cos_ref[...]] * num_heads, axis=-1)
    tab_scr[1] = jnp.concatenate([sina_ref[...]] * num_heads, axis=-1)
    tab_scr[2] = jnp.concatenate([sinb_ref[...]] * num_heads, axis=-1)

    def rope(t):
        # Grouped per-head rotate_half expressed as two full-width lane rolls;
        # the +/- sign and the head-boundary zeroing are folded into the
        # sina / sinb tables (sina multiplies roll(t, -half) == t[:, c+half],
        # sinb multiplies roll(t, +half) == t[:, c-half]).
        return (t * tab_scr[0]
                + pltpu.roll(t, H - half, 1) * tab_scr[1]
                + pltpu.roll(t, half, 1) * tab_scr[2])

    q_scr[...] = rope(qkv_scr[:, :H]).astype(jnp.bfloat16)
    k_scr[...] = rope(qkv_scr[:, H:2 * H]).astype(jnp.bfloat16)
    v_scr[...] = qkv_scr[:, 2 * H:].astype(jnp.bfloat16)

    # --- causal additive mask, built once per grid step, parked in VMEM -----
    # (large finite negative instead of -inf so a fully-masked row can never
    #  produce NaNs once an explicit attention_mask is wired in)
    row = lax.broadcasted_iota(jnp.int32, (S, S), 0)
    col = lax.broadcasted_iota(jnp.int32, (S, S), 1)
    mask_scr[...] = jnp.where(col > row, -1e30, 0.0).astype(jnp.float32)

    # contract the head_dim axis of both operands (no in-kernel transpose)
    nt_dims = (((1,), (1,)), ((), ()))

    for h in range(num_heads):                    # static unroll over heads
        lo = h * head_dim
        hi = lo + head_dim
        qh = q_scr[:, lo:hi]                      # (S, hd) bf16, loaded per head
        kh = k_scr[:, lo:hi]
        vh = v_scr[:, lo:hi]

        s = lax.dot_general(qh, kh, nt_dims,
                            preferred_element_type=jnp.float32)     # (S, S)
        s = s + mask_scr[...]
        s = s - jnp.max(s, axis=-1, keepdims=True)
        e = jnp.exp(s)
        p = e * pl.reciprocal(jnp.sum(e, axis=-1, keepdims=True), approx=True)

        # write this head's context straight into the lane-dense (S,H) slab
        ctx_scr[:, lo:hi] = jnp.dot(
            p.astype(jnp.bfloat16), vh,
            preferred_element_type=jnp.float32).astype(jnp.bfloat16)

    # --- single deferred o_proj over the lane-dense (S,H) context slab ------
    out = jnp.dot(ctx_scr[...], woT_ref[...], preferred_element_type=jnp.float32)
    o_ref[0] = out.astype(o_ref.dtype)


def _build_rope_tables(cos, sin):
    """Fold rotate_half sign / zeroing into two sin tables at (S, hd) width."""
    hd = cos.shape[-1]
    half = hd // 2
    j = jnp.arange(hd)
    sina = jnp.where(j < half, -sin, 0.0)   # multiplies t[:, c + half]
    sinb = jnp.where(j >= half, sin, 0.0)   # multiplies t[:, c - half]
    return (cos.astype(jnp.float32), sina.astype(jnp.float32),
            sinb.astype(jnp.float32))


def hnet_attention_pallas(x, wq, wk, wv, wo, cos, sin, num_heads):
    B, S, H = x.shape
    hd = H // num_heads
    assert hd * num_heads == H and hd % 2 == 0

    # host-side prep: fuse the three projections into one pre-transposed
    # (H, 3H) slab (torch Linear stores (out, in)); fold the softmax scale
    # into the q columns; cast all MXU operands to bf16.
    wqkvT = jnp.concatenate(
        [wq.T / math.sqrt(hd), wk.T, wv.T], axis=1).astype(jnp.bfloat16)
    woT = wo.T.astype(jnp.bfloat16)
    x_bf = x.astype(jnp.bfloat16)
    cosf, sina, sinb = _build_rope_tables(cos.astype(jnp.float32),
                                          sin.astype(jnp.float32))

    kernel = functools.partial(_attn_kernel, num_heads=num_heads, head_dim=hd)

    in_specs = [
        pl.BlockSpec((1, S, H), lambda b: (b, 0, 0)),    # x
        pl.BlockSpec((H, 3 * H), lambda b: (0, 0)),      # fused Wqkv^T
        pl.BlockSpec((H, H), lambda b: (0, 0)),          # Wo^T
        pl.BlockSpec((S, hd), lambda b: (0, 0)),         # cos
        pl.BlockSpec((S, hd), lambda b: (0, 0)),         # sin (lower, negated)
        pl.BlockSpec((S, hd), lambda b: (0, 0)),         # sin (upper)
    ]
    scratch = [
        pltpu.VMEM((S, 3 * H), jnp.float32),   # fused projection staging
        pltpu.VMEM((3, S, H), jnp.float32),    # tiled RoPE tables
        pltpu.VMEM((S, H), jnp.bfloat16),      # q (post-RoPE, bf16)
        pltpu.VMEM((S, H), jnp.bfloat16),      # k (post-RoPE, bf16)
        pltpu.VMEM((S, H), jnp.bfloat16),      # v (bf16)
        pltpu.VMEM((S, H), jnp.bfloat16),      # per-head contexts (lane-dense)
        pltpu.VMEM((S, S), jnp.float32),       # causal mask
    ]

    return pl.pallas_call(
        kernel,
        out_shape=jax.ShapeDtypeStruct((B, S, H), x.dtype),
        grid=(B,),
        in_specs=in_specs,
        out_specs=pl.BlockSpec((1, S, H), lambda b: (b, 0, 0)),
        scratch_shapes=scratch,
        compiler_params=pltpu.CompilerParams(
            dimension_semantics=("parallel",),
            vmem_limit_bytes=32 * 1024 * 1024),
    )(x_bf, wqkvT, woT, cosf, sina, sinb)


def make_rope_cache(seq_len, head_dim, base=10000.0, dtype=jnp.float32):
    inv_freq = 1.0 / (base ** (jnp.arange(0, head_dim, 2, dtype=jnp.float32)
                               / head_dim))
    t = jnp.arange(seq_len, dtype=jnp.float32)
    freqs = jnp.outer(t, inv_freq)                  # (S, hd/2)
    emb = jnp.concatenate([freqs, freqs], axis=-1)  # (S, hd)
    return jnp.cos(emb).astype(dtype), jnp.sin(emb).astype(dtype)


def hnet_attention_ref(x, wq, wk, wv, wo, cos, sin, num_heads):
    """Pure-JAX f32 reference mirroring the PyTorch forward."""
    B, S, H = x.shape
    hd = H // num_heads

    def proj(w):
        y = x @ w.T
        return y.reshape(B, S, num_heads, hd).transpose(0, 2, 1, 3)  # (B,nh,S,hd)

    q, k, v = proj(wq), proj(wk), proj(wv)

    def rotate_half(t):
        d = t.shape[-1] // 2
        return jnp.concatenate([-t[..., d:], t[..., :d]], axis=-1)

    q = q * cos + rotate_half(q) * sin
    k = k * cos + rotate_half(k) * sin

    scores = jnp.einsum("bhqd,bhkd->bhqk", q, k) / math.sqrt(hd)
    mask = jnp.triu(jnp.full((S, S), -jnp.inf), k=1)
    scores = scores + mask
    p = jax.nn.softmax(scores.astype(jnp.float32), axis=-1).astype(q.dtype)
    out = jnp.einsum("bhqk,bhkd->bhqd", p, v)
    out = out.transpose(0, 2, 1, 3).reshape(B, S, H)
    return out @ wo.T


if __name__ == "__main__":
    # small, lane-friendly config: hidden=128, heads=4 -> head_dim=32, seq=128
    B, S, H, NH = 2, 128, 128, 4
    hd = H // NH
    rope_theta = 10000.0

    key = jax.random.PRNGKey(0)
    kx, kq, kk, kv, ko = jax.random.split(key, 5)
    scale = 1.0 / math.sqrt(H)
    x = jax.random.normal(kx, (B, S, H), dtype=jnp.float32)
    wq = jax.random.normal(kq, (H, H), dtype=jnp.float32) * scale
    wk = jax.random.normal(kk, (H, H), dtype=jnp.float32) * scale
    wv = jax.random.normal(kv, (H, H), dtype=jnp.float32) * scale
    wo = jax.random.normal(ko, (H, H), dtype=jnp.float32) * scale

    cos, sin = make_rope_cache(S, hd, base=rope_theta, dtype=jnp.float32)

    out = hnet_attention_pallas(x, wq, wk, wv, wo, cos, sin, NH)
    out = jax.block_until_ready(out)

    ref = hnet_attention_ref(x, wq, wk, wv, wo, cos, sin, NH)
    assert out.shape == (B, S, H)
    max_err = float(jnp.max(jnp.abs(out - ref)))
    # bf16 MXU operands (f32 accumulation / f32 softmax) -> loosened tolerance
    assert jnp.allclose(out, ref, rtol=5e-2, atol=5e-2), max_err

    print("KERNEL_OK")
</pallas_src>

<mosaic_0001>
module attributes {stable_mosaic.version = 11 : i64} {
  func.func @_attn_kernel(%arg0: i32, %arg1: memref<1x128x128xbf16, #tpu.memory_space<vmem>>, %arg2: memref<128x384xbf16, #tpu.memory_space<vmem>>, %arg3: memref<128x128xbf16, #tpu.memory_space<vmem>>, %arg4: memref<128x32xf32, #tpu.memory_space<vmem>>, %arg5: memref<128x32xf32, #tpu.memory_space<vmem>>, %arg6: memref<128x32xf32, #tpu.memory_space<vmem>>, %arg7: memref<1x128x128xf32, #tpu.memory_space<vmem>>, %arg8: memref<128x384xf32, #tpu.memory_space<vmem>>, %arg9: memref<3x128x128xf32, #tpu.memory_space<vmem>>, %arg10: memref<128x128xbf16, #tpu.memory_space<vmem>>, %arg11: memref<128x128xbf16, #tpu.memory_space<vmem>>, %arg12: memref<128x128xbf16, #tpu.memory_space<vmem>>, %arg13: memref<128x128xbf16, #tpu.memory_space<vmem>>, %arg14: memref<128x128xf32, #tpu.memory_space<vmem>>) attributes {dimension_semantics = [#tpu.dimension_semantics<parallel>], iteration_bounds = array<i64: 2>, scalar_prefetch = 0 : i64, scratch_operands = 7 : i64, tpu.core_type = #tpu.core_type<tc>, window_params = [{transform_indices = @transform_0, window_bounds = array<i64: 1, 128, 128>}, {pipeline_mode = #tpu.pipeline_mode<synchronous>, transform_indices = @transform_1, window_bounds = array<i64: 128, 384>}, {pipeline_mode = #tpu.pipeline_mode<synchronous>, transform_indices = @transform_2, window_bounds = array<i64: 128, 128>}, {pipeline_mode = #tpu.pipeline_mode<synchronous>, transform_indices = @transform_3, window_bounds = array<i64: 128, 32>}, {pipeline_mode = #tpu.pipeline_mode<synchronous>, transform_indices = @transform_4, window_bounds = array<i64: 128, 32>}, {pipeline_mode = #tpu.pipeline_mode<synchronous>, transform_indices = @transform_5, window_bounds = array<i64: 128, 32>}, {transform_indices = @transform_6, window_bounds = array<i64: 1, 128, 128>}]} {
    %c0 = arith.constant 0 : index
    %c0_0 = arith.constant 0 : index
    %c0_1 = arith.constant 0 : index
    %0 = vector.load %arg1[%c0, %c0_0, %c0_1] : memref<1x128x128xbf16, #tpu.memory_space<vmem>>, vector<1x128x128xbf16>
    %1 = vector.shape_cast %0 : vector<1x128x128xbf16> to vector<128x128xbf16>
    %c0_2 = arith.constant 0 : index
    %c0_3 = arith.constant 0 : index
    %2 = vector.load %arg2[%c0_2, %c0_3] : memref<128x384xbf16, #tpu.memory_space<vmem>>, vector<128x384xbf16>
    %cst = arith.constant dense<0.000000e+00> : vector<128x384xf32>
    %3 = tpu.matmul %1, %2, %cst {dimension_numbers = #tpu.dot_dimension_numbers<[1], [0], [0], [1], [0, 0, 1, 1], [], []>} : vector<128x128xbf16>, vector<128x384xbf16>, vector<128x384xf32> -> vector<128x384xf32>
    %c0_4 = arith.constant 0 : index
    %c0_5 = arith.constant 0 : index
    %4 = vector.load %arg8[%c0_4, %c0_5] : memref<128x384xf32, #tpu.memory_space<vmem>>, vector<128x384xf32>
    tpu.vector_store %arg8[%c0_4, %c0_5], %3 {strides = array<i32>} : memref<128x384xf32, #tpu.memory_space<vmem>>, vector<128x384xf32>,
    %c0_6 = arith.constant 0 : index
    %c0_7 = arith.constant 0 : index
    %5 = vector.load %arg4[%c0_6, %c0_7] : memref<128x32xf32, #tpu.memory_space<vmem>>, vector<128x32xf32>
    %6 = tpu.concatenate %5, %5, %5, %5 in 1 : vector<128x32xf32>, vector<128x32xf32>, vector<128x32xf32>, vector<128x32xf32> -> vector<128x128xf32>
    %c0_8 = arith.constant 0 : index
    %c0_9 = arith.constant 0 : index
    %c0_10 = arith.constant 0 : index
    %7 = vector.load %arg9[%c0_8, %c0_9, %c0_10] : memref<3x128x128xf32, #tpu.memory_space<vmem>>, vector<1x128x128xf32>
    %8 = vector.shape_cast %7 : vector<1x128x128xf32> to vector<128x128xf32>
    %9 = vector.shape_cast %6 : vector<128x128xf32> to vector<1x128x128xf32>
    tpu.vector_store %arg9[%c0_8, %c0_9, %c0_10], %9 {strides = array<i32>} : memref<3x128x128xf32, #tpu.memory_space<vmem>>, vector<1x128x128xf32>,
    %c0_11 = arith.constant 0 : index
    %c0_12 = arith.constant 0 : index
    %10 = vector.load %arg5[%c0_11, %c0_12] : memref<128x32xf32, #tpu.memory_space<vmem>>, vector<128x32xf32>
    %11 = tpu.concatenate %10, %10, %10, %10 in 1 : vector<128x32xf32>, vector<128x32xf32>, vector<128x32xf32>, vector<128x32xf32> -> vector<128x128xf32>
    %c1 = arith.constant 1 : index
    %c0_13 = arith.constant 0 : index
    %c0_14 = arith.constant 0 : index
    %12 = vector.load %arg9[%c1, %c0_13, %c0_14] : memref<3x128x128xf32, #tpu.memory_space<vmem>>, vector<1x128x128xf32>
    %13 = vector.shape_cast %12 : vector<1x128x128xf32> to vector<128x128xf32>
    %14 = vector.shape_cast %11 : vector<128x128xf32> to vector<1x128x128xf32>
    tpu.vector_store %arg9[%c1, %c0_13, %c0_14], %14 {strides = array<i32>} : memref<3x128x128xf32, #tpu.memory_space<vmem>>, vector<1x128x128xf32>,
    %c0_15 = arith.constant 0 : index
    %c0_16 = arith.constant 0 : index
    %15 = vector.load %arg6[%c0_15, %c0_16] : memref<128x32xf32, #tpu.memory_space<vmem>>, vector<128x32xf32>
    %16 = tpu.concatenate %15, %15, %15, %15 in 1 : vector<128x32xf32>, vector<128x32xf32>, vector<128x32xf32>, vector<128x32xf32> -> vector<128x128xf32>
    %c2 = arith.constant 2 : index
    %c0_17 = arith.constant 0 : index
    %c0_18 = arith.constant 0 : index
    %17 = vector.load %arg9[%c2, %c0_17, %c0_18] : memref<3x128x128xf32, #tpu.memory_space<vmem>>, vector<1x128x128xf32>
    %18 = vector.shape_cast %17 : vector<1x128x128xf32> to vector<128x128xf32>
    %19 = vector.shape_cast %16 : vector<128x128xf32> to vector<1x128x128xf32>
    tpu.vector_store %arg9[%c2, %c0_17, %c0_18], %19 {strides = array<i32>} : memref<3x128x128xf32, #tpu.memory_space<vmem>>, vector<1x128x128xf32>,
    %c0_19 = arith.constant 0 : index
    %c0_20 = arith.constant 0 : index
    %20 = vector.load %arg8[%c0_19, %c0_20] : memref<128x384xf32, #tpu.memory_space<vmem>>, vector<128x128xf32>
    %c0_21 = arith.constant 0 : index
    %c0_22 = arith.constant 0 : index
    %c0_23 = arith.constant 0 : index
    %21 = vector.load %arg9[%c0_21, %c0_22, %c0_23] : memref<3x128x128xf32, #tpu.memory_space<vmem>>, vector<1x128x128xf32>
    %22 = vector.shape_cast %21 : vector<1x128x128xf32> to vector<128x128xf32>
    %23 = arith.mulf %20, %22 : vector<128x128xf32>
    %c112_i32 = arith.constant 112 : i32
    %24 = tpu.dynamic_rotate %20 by %c112_i32 dim 1 : vector<128x128xf32>, i32 -> vector<128x128xf32>
    %c1_24 = arith.constant 1 : index
    %c0_25 = arith.constant 0 : index
    %c0_26 = arith.constant 0 : index
    %25 = vector.load %arg9[%c1_24, %c0_25, %c0_26] : memref<3x128x128xf32, #tpu.memory_space<vmem>>, vector<1x128x128xf32>
    %26 = vector.shape_cast %25 : vector<1x128x128xf32> to vector<128x128xf32>
    %27 = arith.mulf %24, %26 : vector<128x128xf32>
    %28 = arith.addf %23, %27 : vector<128x128xf32>
    %c16_i32 = arith.constant 16 : i32
    %29 = tpu.dynamic_rotate %20 by %c16_i32 dim 1 : vector<128x128xf32>, i32 -> vector<128x128xf32>
    %c2_27 = arith.constant 2 : index
    %c0_28 = arith.constant 0 : index
    %c0_29 = arith.constant 0 : index
    %30 = vector.load %arg9[%c2_27, %c0_28, %c0_29] : memref<3x128x128xf32, #tpu.memory_space<vmem>>, vector<1x128x128xf32>
    %31 = vector.shape_cast %30 : vector<1x128x128xf32> to vector<128x128xf32>
    %32 = arith.mulf %29, %31 : vector<128x128xf32>
    %33 = arith.addf %28, %32 : vector<128x128xf32>
    %34 = arith.truncf %33 : vector<128x128xf32> to vector<128x128xbf16>
    %c0_30 = arith.constant 0 : index
    %c0_31 = arith.constant 0 : index
    %35 = vector.load %arg10[%c0_30, %c0_31] : memref<128x128xbf16, #tpu.memory_space<vmem>>, vector<128x128xbf16>
    tpu.vector_store %arg10[%c0_30, %c0_31], %34 {strides = array<i32>} : memref<128x128xbf16, #tpu.memory_space<vmem>>, vector<128x128xbf16>,
    %c0_32 = arith.constant 0 : index
    %c128 = arith.constant 128 : index
    %36 = vector.load %arg8[%c0_32, %c128] : memref<128x384xf32, #tpu.memory_space<vmem>>, vector<128x128xf32>
    %c0_33 = arith.constant 0 : index
    %c0_34 = arith.constant 0 : index
    %c0_35 = arith.constant 0 : index
    %37 = vector.load %arg9[%c0_33, %c0_34, %c0_35] : memref<3x128x128xf32, #tpu.memory_space<vmem>>, vector<1x128x128xf32>
    %38 = vector.shape_cast %37 : vector<1x128x128xf32> to vector<128x128xf32>
    %39 = arith.mulf %36, %38 : vector<128x128xf32>
    %c112_i32_36 = arith.constant 112 : i32
    %40 = tpu.dynamic_rotate %36 by %c112_i32_36 dim 1 : vector<128x128xf32>, i32 -> vector<128x128xf32>
    %c1_37 = arith.constant 1 : index
    %c0_38 = arith.constant 0 : index
    %c0_39 = arith.constant 0 : index
    %41 = vector.load %arg9[%c1_37, %c0_38, %c0_39] : memref<3x128x128xf32, #tpu.memory_space<vmem>>, vector<1x128x128xf32>
    %42 = vector.shape_cast %41 : vector<1x128x128xf32> to vector<128x128xf32>
    %43 = arith.mulf %40, %42 : vector<128x128xf32>
    %44 = arith.addf %39, %43 : vector<128x128xf32>
    %c16_i32_40 = arith.constant 16 : i32
    %45 = tpu.dynamic_rotate %36 by %c16_i32_40 dim 1 : vector<128x128xf32>, i32 -> vector<128x128xf32>
    %c2_41 = arith.constant 2 : index
    %c0_42 = arith.constant 0 : index
    %c0_43 = arith.constant 0 : index
    %46 = vector.load %arg9[%c2_41, %c0_42, %c0_43] : memref<3x128x128xf32, #tpu.memory_space<vmem>>, vector<1x128x128xf32>
    %47 = vector.shape_cast %46 : vector<1x128x128xf32> to vector<128x128xf32>
    %48 = arith.mulf %45, %47 : vector<128x128xf32>
    %49 = arith.addf %44, %48 : vector<128x128xf32>
    %50 = arith.truncf %49 : vector<128x128xf32> to vector<128x128xbf16>
    %c0_44 = arith.constant 0 : index
    %c0_45 = arith.constant 0 : index
    %51 = vector.load %arg11[%c0_44, %c0_45] : memref<128x128xbf16, #tpu.memory_space<vmem>>, vector<128x128xbf16>
    tpu.vector_store %arg11[%c0_44, %c0_45], %50 {strides = array<i32>} : memref<128x128xbf16, #tpu.memory_space<vmem>>, vector<128x128xbf16>,
    %c0_46 = arith.constant 0 : index
    %c256 = arith.constant 256 : index
    %52 = vector.load %arg8[%c0_46, %c256] : memref<128x384xf32, #tpu.memory_space<vmem>>, vector<128x128xf32>
    %53 = arith.truncf %52 : vector<128x128xf32> to vector<128x128xbf16>
    %c0_47 = arith.constant 0 : index
    %c0_48 = arith.constant 0 : index
    %54 = vector.load %arg12[%c0_47, %c0_48] : memref<128x128xbf16, #tpu.memory_space<vmem>>, vector<128x128xbf16>
    tpu.vector_store %arg12[%c0_47, %c0_48], %53 {strides = array<i32>} : memref<128x128xbf16, #tpu.memory_space<vmem>>, vector<128x128xbf16>,
    %55 = tpu.iota {dimensions = array<i32: 0>} : vector<128x128xi32>
    %56 = tpu.iota {dimensions = array<i32: 1>} : vector<128x128xi32>
    %57 = arith.cmpi sgt, %56, %55 : vector<128x128xi32>
    %cst_49 = arith.constant -1.000000e+30 : f32
    %cst_50 = arith.constant 0.000000e+00 : f32
    %58 = vector.broadcast %cst_49 : f32 to vector<128x128xf32>
    %59 = vector.broadcast %cst_50 : f32 to vector<128x128xf32>
    %60 = arith.select %57, %58, %59 : vector<128x128xi1>, vector<128x128xf32>
    %c0_51 = arith.constant 0 : index
    %c0_52 = arith.constant 0 : index
    %61 = vector.load %arg14[%c0_51, %c0_52] : memref<128x128xf32, #tpu.memory_space<vmem>>, vector<128x128xf32>
    tpu.vector_store %arg14[%c0_51, %c0_52], %60 {strides = array<i32>} : memref<128x128xf32, #tpu.memory_space<vmem>>, vector<128x128xf32>,
    %c0_53 = arith.constant 0 : index
    %c0_54 = arith.constant 0 : index
    %62 = vector.load %arg10[%c0_53, %c0_54] : memref<128x128xbf16, #tpu.memory_space<vmem>>, vector<128x32xbf16>
    %c0_55 = arith.constant 0 : index
    %c0_56 = arith.constant 0 : index
    %63 = vector.load %arg11[%c0_55, %c0_56] : memref<128x128xbf16, #tpu.memory_space<vmem>>, vector<128x32xbf16>
    %c0_57 = arith.constant 0 : index
    %c0_58 = arith.constant 0 : index
    %64 = vector.load %arg12[%c0_57, %c0_58] : memref<128x128xbf16, #tpu.memory_space<vmem>>, vector<128x32xbf16>
    %cst_59 = arith.constant dense<0.000000e+00> : vector<128x128xf32>
    %65 = tpu.matmul %62, %63, %cst_59 {dimension_numbers = #tpu.dot_dimension_numbers<[1], [1], [0], [0], [0, 0, 1, 0], [], []>} : vector<128x32xbf16>, vector<128x32xbf16>, vector<128x128xf32> -> vector<128x128xf32>
    %c0_60 = arith.constant 0 : index
    %c0_61 = arith.constant 0 : index
    %66 = vector.load %arg14[%c0_60, %c0_61] : memref<128x128xf32, #tpu.memory_space<vmem>>, vector<128x128xf32>
    %67 = arith.addf %65, %66 : vector<128x128xf32>
    %cst_62 = arith.constant dense<0xFF800000> : vector<128xf32>
    %68 = vector.multi_reduction <maximumf>, %67, %cst_62 [1] : vector<128x128xf32> to vector<128xf32>
    %69 = vector.shape_cast %68 : vector<128xf32> to vector<128x1xf32>
    %70 = vector.broadcast %69 : vector<128x1xf32> to vector<128x128xf32>
    %71 = arith.subf %67, %70 : vector<128x128xf32>
    %72 = math.exp %71 : vector<128x128xf32>
    %cst_63 = arith.constant dense<0.000000e+00> : vector<128xf32>
    %73 = vector.multi_reduction <add>, %72, %cst_63 [1] : vector<128x128xf32> to vector<128xf32>
    %74 = vector.shape_cast %73 : vector<128xf32> to vector<128x1xf32>
    %75 = tpu.reciprocal %74 {approx = true} : vector<128x1xf32> -> vector<128x1xf32>
    %76 = vector.broadcast %75 : vector<128x1xf32> to vector<128x128xf32>
    %77 = arith.mulf %72, %76 : vector<128x128xf32>
    %78 = arith.truncf %77 : vector<128x128xf32> to vector<128x128xbf16>
    %cst_64 = arith.constant dense<0.000000e+00> : vector<128x32xf32>
    %79 = tpu.matmul %78, %64, %cst_64 {dimension_numbers = #tpu.dot_dimension_numbers<[1], [0], [0], [1], [0, 0, 1, 1], [], []>} : vector<128x128xbf16>, vector<128x32xbf16>, vector<128x32xf32> -> vector<128x32xf32>
    %80 = arith.truncf %79 : vector<128x32xf32> to vector<128x32xbf16>
    %c0_65 = arith.constant 0 : index
    %c0_66 = arith.constant 0 : index
    %81 = vector.load %arg13[%c0_65, %c0_66] : memref<128x128xbf16, #tpu.memory_space<vmem>>, vector<128x32xbf16>
    tpu.vector_store %arg13[%c0_65, %c0_66], %80 {strides = array<i32>} : memref<128x128xbf16, #tpu.memory_space<vmem>>, vector<128x32xbf16>,
    %c0_67 = arith.constant 0 : index
    %c32 = arith.constant 32 : index
    %82 = vector.load %arg10[%c0_67, %c32] : memref<128x128xbf16, #tpu.memory_space<vmem>>, vector<128x32xbf16>
    %c0_68 = arith.constant 0 : index
    %c32_69 = arith.constant 32 : index
    %83 = vector.load %arg11[%c0_68, %c32_69] : memref<128x128xbf16, #tpu.memory_space<vmem>>, vector<128x32xbf16>
    %c0_70 = arith.constant 0 : index
    %c32_71 = arith.constant 32 : index
    %84 = vector.load %arg12[%c0_70, %c32_71] : memref<128x128xbf16, #tpu.memory_space<vmem>>, vector<128x32xbf16>
    %cst_72 = arith.constant dense<0.000000e+00> : vector<128x128xf32>
    %85 = tpu.matmul %82, %83, %cst_72 {dimension_numbers = #tpu.dot_dimension_numbers<[1], [1], [0], [0], [0, 0, 1, 0], [], []>} : vector<128x32xbf16>, vector<128x32xbf16>, vector<128x128xf32> -> vector<128x128xf32>
    %c0_73 = arith.constant 0 : index
    %c0_74 = arith.constant 0 : index
    %86 = vector.load %arg14[%c0_73, %c0_74] : memref<128x128xf32, #tpu.memory_space<vmem>>, vector<128x128xf32>
    %87 = arith.addf %85, %86 : vector<128x128xf32>
    %cst_75 = arith.constant dense<0xFF800000> : vector<128xf32>
    %88 = vector.multi_reduction <maximumf>, %87, %cst_75 [1] : vector<128x128xf32> to vector<128xf32>
    %89 = vector.shape_cast %88 : vector<128xf32> to vector<128x1xf32>
    %90 = vector.broadcast %89 : vector<128x1xf32> to vector<128x128xf32>
    %91 = arith.subf %87, %90 : vector<128x128xf32>
    %92 = math.exp %91 : vector<128x128xf32>
    %cst_76 = arith.constant dense<0.000000e+00> : vector<128xf32>
    %93 = vector.multi_reduction <add>, %92, %cst_76 [1] : vector<128x128xf32> to vector<128xf32>
    %94 = vector.shape_cast %93 : vector<128xf32> to vector<128x1xf32>
    %95 = tpu.reciprocal %94 {approx = true} : vector<128x1xf32> -> vector<128x1xf32>
    %96 = vector.broadcast %95 : vector<128x1xf32> to vector<128x128xf32>
    %97 = arith.mulf %92, %96 : vector<128x128xf32>
    %98 = arith.truncf %97 : vector<128x128xf32> to vector<128x128xbf16>
    %cst_77 = arith.constant dense<0.000000e+00> : vector<128x32xf32>
    %99 = tpu.matmul %98, %84, %cst_77 {dimension_numbers = #tpu.dot_dimension_numbers<[1], [0], [0], [1], [0, 0, 1, 1], [], []>} : vector<128x128xbf16>, vector<128x32xbf16>, vector<128x32xf32> -> vector<128x32xf32>
    %100 = arith.truncf %99 : vector<128x32xf32> to vector<128x32xbf16>
    %c0_78 = arith.constant 0 : index
    %c32_79 = arith.constant 32 : index
    %101 = vector.load %arg13[%c0_78, %c32_79] : memref<128x128xbf16, #tpu.memory_space<vmem>>, vector<128x32xbf16>
    tpu.vector_store %arg13[%c0_78, %c32_79], %100 {strides = array<i32>} : memref<128x128xbf16, #tpu.memory_space<vmem>>, vector<128x32xbf16>,
    %c0_80 = arith.constant 0 : index
    %c64 = arith.constant 64 : index
    %102 = vector.load %arg10[%c0_80, %c64] : memref<128x128xbf16, #tpu.memory_space<vmem>>, vector<128x32xbf16>
    %c0_81 = arith.constant 0 : index
    %c64_82 = arith.constant 64 : index
    %103 = vector.load %arg11[%c0_81, %c64_82] : memref<128x128xbf16, #tpu.memory_space<vmem>>, vector<128x32xbf16>
    %c0_83 = arith.constant 0 : index
    %c64_84 = arith.constant 64 : index
    %104 = vector.load %arg12[%c0_83, %c64_84] : memref<128x128xbf16, #tpu.memory_space<vmem>>, vector<128x32xbf16>
    %cst_85 = arith.constant dense<0.000000e+00> : vector<128x128xf32>
    %105 = tpu.matmul %102, %103, %cst_85 {dimension_numbers = #tpu.dot_dimension_numbers<[1], [1], [0], [0], [0, 0, 1, 0], [], []>} : vector<128x32xbf16>, vector<128x32xbf16>, vector<128x128xf32> -> vector<128x128xf32>
    %c0_86 = arith.constant 0 : index
    %c0_87 = arith.constant 0 : index
    %106 = vector.load %arg14[%c0_86, %c0_87] : memref<128x128xf32, #tpu.memory_space<vmem>>, vector<128x128xf32>
    %107 = arith.addf %105, %106 : vector<128x128xf32>
    %cst_88 = arith.constant dense<0xFF800000> : vector<128xf32>
    %108 = vector.multi_reduction <maximumf>, %107, %cst_88 [1] : vector<128x128xf32> to vector<128xf32>
    %109 = vector.shape_cast %108 : vector<128xf32> to vector<128x1xf32>
    %110 = vector.broadcast %109 : vector<128x1xf32> to vector<128x128xf32>
    %111 = arith.subf %107, %110 : vector<128x128xf32>
    %112 = math.exp %111 : vector<128x128xf32>
    %cst_89 = arith.constant dense<0.000000e+00> : vector<128xf32>
    %113 = vector.multi_reduction <add>, %112, %cst_89 [1] : vector<128x128xf32> to vector<128xf32>
    %114 = vector.shape_cast %113 : vector<128xf32> to vector<128x1xf32>
    %115 = tpu.reciprocal %114 {approx = true} : vector<128x1xf32> -> vector<128x1xf32>
    %116 = vector.broadcast %115 : vector<128x1xf32> to vector<128x128xf32>
    %117 = arith.mulf %112, %116 : vector<128x128xf32>
    %118 = arith.truncf %117 : vector<128x128xf32> to vector<128x128xbf16>
    %cst_90 = arith.constant dense<0.000000e+00> : vector<128x32xf32>
    %119 = tpu.matmul %118, %104, %cst_90 {dimension_numbers = #tpu.dot_dimension_numbers<[1], [0], [0], [1], [0, 0, 1, 1], [], []>} : vector<128x128xbf16>, vector<128x32xbf16>, vector<128x32xf32> -> vector<128x32xf32>
    %120 = arith.truncf %119 : vector<128x32xf32> to vector<128x32xbf16>
    %c0_91 = arith.constant 0 : index
    %c64_92 = arith.constant 64 : index
    %121 = vector.load %arg13[%c0_91, %c64_92] : memref<128x128xbf16, #tpu.memory_space<vmem>>, vector<128x32xbf16>
    tpu.vector_store %arg13[%c0_91, %c64_92], %120 {strides = array<i32>} : memref<128x128xbf16, #tpu.memory_space<vmem>>, vector<128x32xbf16>,
    %c0_93 = arith.constant 0 : index
    %c96 = arith.constant 96 : index
    %122 = vector.load %arg10[%c0_93, %c96] : memref<128x128xbf16, #tpu.memory_space<vmem>>, vector<128x32xbf16>
    %c0_94 = arith.constant 0 : index
    %c96_95 = arith.constant 96 : index
    %123 = vector.load %arg11[%c0_94, %c96_95] : memref<128x128xbf16, #tpu.memory_space<vmem>>, vector<128x32xbf16>
    %c0_96 = arith.constant 0 : index
    %c96_97 = arith.constant 96 : index
    %124 = vector.load %arg12[%c0_96, %c96_97] : memref<128x128xbf16, #tpu.memory_space<vmem>>, vector<128x32xbf16>
    %cst_98 = arith.constant dense<0.000000e+00> : vector<128x128xf32>
    %125 = tpu.matmul %122, %123, %cst_98 {dimension_numbers = #tpu.dot_dimension_numbers<[1], [1], [0], [0], [0, 0, 1, 0], [], []>} : vector<128x32xbf16>, vector<128x32xbf16>, vector<128x128xf32> -> vector<128x128xf32>
    %c0_99 = arith.constant 0 : index
    %c0_100 = arith.constant 0 : index
    %126 = vector.load %arg14[%c0_99, %c0_100] : memref<128x128xf32, #tpu.memory_space<vmem>>, vector<128x128xf32>
    %127 = arith.addf %125, %126 : vector<128x128xf32>
    %cst_101 = arith.constant dense<0xFF800000> : vector<128xf32>
    %128 = vector.multi_reduction <maximumf>, %127, %cst_101 [1] : vector<128x128xf32> to vector<128xf32>
    %129 = vector.shape_cast %128 : vector<128xf32> to vector<128x1xf32>
    %130 = vector.broadcast %129 : vector<128x1xf32> to vector<128x128xf32>
    %131 = arith.subf %127, %130 : vector<128x128xf32>
    %132 = math.exp %131 : vector<128x128xf32>
    %cst_102 = arith.constant dense<0.000000e+00> : vector<128xf32>
    %133 = vector.multi_reduction <add>, %132, %cst_102 [1] : vector<128x128xf32> to vector<128xf32>
    %134 = vector.shape_cast %133 : vector<128xf32> to vector<128x1xf32>
    %135 = tpu.reciprocal %134 {approx = true} : vector<128x1xf32> -> vector<128x1xf32>
    %136 = vector.broadcast %135 : vector<128x1xf32> to vector<128x128xf32>
    %137 = arith.mulf %132, %136 : vector<128x128xf32>
    %138 = arith.truncf %137 : vector<128x128xf32> to vector<128x128xbf16>
    %cst_103 = arith.constant dense<0.000000e+00> : vector<128x32xf32>
    %139 = tpu.matmul %138, %124, %cst_103 {dimension_numbers = #tpu.dot_dimension_numbers<[1], [0], [0], [1], [0, 0, 1, 1], [], []>} : vector<128x128xbf16>, vector<128x32xbf16>, vector<128x32xf32> -> vector<128x32xf32>
    %140 = arith.truncf %139 : vector<128x32xf32> to vector<128x32xbf16>
    %c0_104 = arith.constant 0 : index
    %c96_105 = arith.constant 96 : index
    %141 = vector.load %arg13[%c0_104, %c96_105] : memref<128x128xbf16, #tpu.memory_space<vmem>>, vector<128x32xbf16>
    tpu.vector_store %arg13[%c0_104, %c96_105], %140 {strides = array<i32>} : memref<128x128xbf16, #tpu.memory_space<vmem>>, vector<128x32xbf16>,
    %c0_106 = arith.constant 0 : index
    %c0_107 = arith.constant 0 : index
    %142 = vector.load %arg13[%c0_106, %c0_107] : memref<128x128xbf16, #tpu.memory_space<vmem>>, vector<128x128xbf16>
    %c0_108 = arith.constant 0 : index
    %c0_109 = arith.constant 0 : index
    %143 = vector.load %arg3[%c0_108, %c0_109] : memref<128x128xbf16, #tpu.memory_space<vmem>>, vector<128x128xbf16>
    %cst_110 = arith.constant dense<0.000000e+00> : vector<128x128xf32>
    %144 = tpu.matmul %142, %143, %cst_110 {dimension_numbers = #tpu.dot_dimension_numbers<[1], [0], [0], [1], [0, 0, 1, 1], [], []>} : vector<128x128xbf16>, vector<128x128xbf16>, vector<128x128xf32> -> vector<128x128xf32>
    %c0_111 = arith.constant 0 : index
    %c0_112 = arith.constant 0 : index
    %c0_113 = arith.constant 0 : index
    %145 = vector.load %arg7[%c0_111, %c0_112, %c0_113] : memref<1x128x128xf32, #tpu.memory_space<vmem>>, vector<1x128x128xf32>
    %146 = vector.shape_cast %145 : vector<1x128x128xf32> to vector<128x128xf32>
    %147 = vector.shape_cast %144 : vector<128x128xf32> to vector<1x128x128xf32>
    tpu.vector_store %arg7[%c0_111, %c0_112, %c0_113], %147 {strides = array<i32>} : memref<1x128x128xf32, #tpu.memory_space<vmem>>, vector<1x128x128xf32>,
    return
  }
  func.func @transform_0(%arg0: i32) -> (i32, i32, i32) {
    %c0_i32 = arith.constant 0 : i32
    %c0_i32_0 = arith.constant 0 : i32
    %c0_i32_1 = arith.constant 0 : i32
    return %arg0, %c0_i32, %c0_i32_0 : i32, i32, i32
  }
  func.func @transform_1(%arg0: i32) -> (i32, i32) {
    %c0_i32 = arith.constant 0 : i32
    %c0_i32_0 = arith.constant 0 : i32
    %c0_i32_1 = arith.constant 0 : i32
    return %c0_i32, %c0_i32_0 : i32, i32
  }
  func.func @transform_2(%arg0: i32) -> (i32, i32) {
    %c0_i32 = arith.constant 0 : i32
    %c0_i32_0 = arith.constant 0 : i32
    %c0_i32_1 = arith.constant 0 : i32
    return %c0_i32, %c0_i32_0 : i32, i32
  }
  func.func @transform_3(%arg0: i32) -> (i32, i32) {
    %c0_i32 = arith.constant 0 : i32
    %c0_i32_0 = arith.constant 0 : i32
    %c0_i32_1 = arith.constant 0 : i32
    return %c0_i32, %c0_i32_0 : i32, i32
  }
  func.func @transform_4(%arg0: i32) -> (i32, i32) {
    %c0_i32 = arith.constant 0 : i32
    %c0_i32_0 = arith.constant 0 : i32
    %c0_i32_1 = arith.constant 0 : i32
    return %c0_i32, %c0_i32_0 : i32, i32
  }
  func.func @transform_5(%arg0: i32) -> (i32, i32) {
    %c0_i32 = arith.constant 0 : i32
    %c0_i32_0 = arith.constant 0 : i32
    %c0_i32_1 = arith.constant 0 : i32
    return %c0_i32, %c0_i32_0 : i32, i32
  }
  func.func @transform_6(%arg0: i32) -> (i32, i32, i32) {
    %c0_i32 = arith.constant 0 : i32
    %c0_i32_0 = arith.constant 0 : i32
    %c0_i32_1 = arith.constant 0 : i32
    return %arg0, %c0_i32, %c0_i32_0 : i32, i32, i32
  }
}

</mosaic_0001>

<bundles_post_ra>
// kernel: tpu_custom_call.1
= control target key start
LH: loop header
LB: loop body
LE: loop exit
PB: predicated region body
PF: predicated region fallthrough
CT: control target
= control target key end

     0   :  { %11 = vsyncpa [#allocation10], 0  ;;  %s9822_s0 = inlined_call_operand.vmem [shape: bf16[2,128,128], index: 0, kind: input, shape index: {}]   ;;  %s9823_s1 = inlined_call_operand.vmem [shape: bf16[128,384], index: 1, kind: input, shape index: {}]   ;;  %s9824_s2 = inlined_call_operand.vmem [shape: bf16[128,128], index: 2, kind: input, shape index: {}]   ;;  %s9825_s3 = inlined_call_operand.vmem [shape: f32[128,32], index: 3, kind: input, shape index: {}]   ;;  %s9826_s4 = inlined_call_operand.vmem [shape: f32[128,32], index: 4, kind: input, shape index: {}]   ;;  %s9827_s5 = inlined_call_operand.vmem [shape: f32[128,32], index: 5, kind: input, shape index: {}]   ;;  %s9828_s6 = inlined_call_operand.hbm [shape: f32[2,128,128], index: 6, kind: output, shape index: {}]  }
   0x1   :  { %13 = vsyncpa [#allocation10 + $0x1], 0  ;;  %s7096_s21 = smov 0   ;;  %s7098_s22 = smov 0  }
   0x2   :  { %s7100_s23 = smov 0   ;;  %s7102_s24 = smov 0  }
   0x3 LB: > { %s7117_s25 = sadd.s32 4294967295, %s7049_s24   ;;  %s5422_s26 = sadd.s32 4294967294, %s7049_s24   ;;  %s7049_s24 = sphi %s7102_s24, %s10177_s24   ;;  %s7045_s23 = sphi %s7100_s23, %s10176_s23   ;;  %s7041_s22 = sphi %s7098_s22, %s10175_s22   ;;  %s7037_s21 = sphi %s7096_s21, %s10174_s21  }
   0x4   : > { %s7121_s27 = sadd.s32 1, %s7049_s24   ;;  %s157_s28 = sadd.s32 1, %s7045_s23 }
   0x5   : > { %s154_s29 = ssub.s32 %s7049_s24, %s7121_s27  ;;  %p167_p0 = scmp.ne.s32.totalorder %s7045_s23, %s7041_s22 }
   0x6   : > { %p155_p1 = scmp.eq.s32.totalorder %s154_s29, 0  ;;  %p168_p2 = scmp.eq.s32.totalorder %s7117_s25, 1 }
   0x7   : > { %p173_p3 = scmp.ne.s32.totalorder %s7041_s22, %s7037_s21  ;;  %p174_p4 = scmp.eq.s32.totalorder %s5422_s26, 1 }
   0x8   : > { %s7132_s30 = scalar_select %p155_p1, %s7045_s23, %s157_s28  }
   0x9   : > { %p7134_p5 = por %p168_p2, %p167_p0  ;;  %p7138_p6 = por %p174_p4, %p173_p3 }
   0xa   : > { %p5425_p7 = scmp.ge.s32.totalorder %s7049_s24, 1  ;;  %p215_p8 = scmp.lt.s32.totalorder %s7049_s24, 3 }
   0xc   : > { %p216_p9 = pnand %p5425_p7, %p215_p8 }
   0xe   : > { %219 = sbr.rel (%p216_p9) target bundleno = 3560 (0xde8), region = 44 }
  0x13   : > { %v990_v0 = vld [vmem:[%s9826_s4 + $0x70] sm:$0xff]  ;;  %s7051_s13 = smov 32   ;;  %v6553_v2 = vld [vmem:[%s9823_s1 + $0xac] ss:$12 sps:$4 sm:$0xff]   ;;  %p245_p10 = scmp.lt.s32.totalorder %s7117_s25, 1  ;;  %v7052_v6 = vmov 0  }
  0x14   : > { %v747_v1 = vld [vmem:[%s9825_s3 + $0x70] sm:$0xff]  ;;  %1036 = vrot.lane.b32.xlu1 %v990_v0, %s7051_s13  ;;  %v991_v4 = vld [vmem:[%s9826_s4 + $0x78] sm:$0xff]  ;;  %507 = vmatprep.mubr.bf16.mxu0 %v7052_v6  ;;  %s7053_s18 = smov 64   ;;  %v6564_v12 = vld [vmem:[%s9823_s1 + $0x60] ss:$12 sps:$4 sm:$0xff]   ;;  %s7054_s16 = smov 96  }
  0x15   : > { %793 = vrot.lane.b32.xlu0 %v747_v1, %s7051_s13  ;;  %v6555_v3 = vld [vmem:[%s9823_s1 + $0xa8] ss:$12 sps:$4 sm:$0xff]   ;;  %v748_v5 = vld [vmem:[%s9825_s3 + $0x78] sm:$0xff]  ;;  %475 = vmatprep.subr.bf16.mxu0 %v6553_v2  ;;  %s246_s11 = scalar_select %p245_p10, %s7117_s25, 1  ;;  %v6562_v11 = vld [vmem:[%s9823_s1 + $0x64] ss:$12 sps:$4 sm:$0xff]  }
  0x16   : > { %v6556_v7 = vld [vmem:[%s9823_s1 + $0x94] ss:$12 sps:$4 sm:$0xff]   ;;  %476 = vmatpush1.bf16.msra.mxu0 %v6555_v3  ;;  %v6558_v8 = vld [vmem:[%s9823_s1 + $0x90] ss:$12 sps:$4 sm:$0xff]   ;;  %v6561_v10 = vld [vmem:[%s9823_s1 + $0x78] ss:$12 sps:$4 sm:$0xff]  }
  0x17   : > { %477 = vmatprep.subr.bf16.mxu0 %v6556_v7  ;;  %v6559_v9 = vld [vmem:[%s9823_s1 + $0x7c] ss:$12 sps:$4 sm:$0xff]   ;;  %s5722_s17 = sshll.u32 %s246_s11, 6  ;;  %v6565_v13 = vld [vmem:[%s9823_s1 + $0x4c] ss:$12 sps:$4 sm:$0xff]   ;;  %v1231_v19 = vld [vmem:[%s9827_s5 + $0x70] sm:$0xff] }
  0x18   : > { %1038 = vrot.lane.b32.xlu1 %v991_v4, %s7051_s13  ;;  %s7189_s29 = scalar_lea.vmem %s9822_s0, %s5722_s17  ;;  %v6567_v15 = vld [vmem:[%s9823_s1 + $0x48] ss:$12 sps:$4 sm:$0xff]   ;;  %v6570_v17 = vld [vmem:[%s9823_s1 + $0x30] ss:$12 sps:$4 sm:$0xff]   ;;  %v6573_v21 = vld [vmem:[%s9823_s1 + $0x18] ss:$12 sps:$4 sm:$0xff]  }
  0x19   : > { %795 = vrot.lane.b32.xlu0 %v748_v5, %s7051_s13  ;;  %v6577_v14 = vld [vmem:[%s7189_s29] sm:$0xff]   ;;  %v1232_v18 = vld [vmem:[%s9827_s5 + $0x78] sm:$0xff]  ;;  %v746_v24 = vld [vmem:[%s9825_s3 + $0x68] sm:$0xff]  ;;  %s7056_s11 = smov 16   ;;  %vm909_vm0 = vcmask 261120   ;;  %vm926_vm1 = vcmask 523264  }
  0x1a   : > { %478 = vmatpush1.bf16.msra.mxu0 %v6558_v8  ;;  %6153 = vmatprep.mubr.bf16.mxu1 %v6577_v14  ;;  %v6568_v16 = vld [vmem:[%s9823_s1 + $0x34] ss:$12 sps:$4 sm:$0xff]   ;;  %v6571_v20 = vld [vmem:[%s9823_s1 + $0x1c] ss:$12 sps:$4 sm:$0xff]   ;;  %v6574_v22 = vld [vmem:[%s9823_s1 + $0x4] ss:$12 sps:$4 sm:$0xff]  }
  0x1b   : > { %479 = vmatprep.subr.bf16.mxu0 %v6559_v9  ;;  %v6576_v23 = vld [vmem:[%s9823_s1] ss:$12 sps:$4 sm:$0xff]   ;;  %v7262_v29 = vld [vmem:[%s7189_s29 + $0x10] sm:$0xff]   ;;  %v7271_v30 = vld [vmem:[%s7189_s29 + $0x18] sm:$0xff]   ;;  %vm943_vm2 = vcmask 785408   ;;  %s5835_s12 = sshll.u32 %s7117_s25, 11 }
  0x1c   : > { %843 = vrot.lane.b32.xlu1 %v748_v5, %s7053_s18  ;;  %v745_v25 = vld [vmem:[%s9825_s3 + $0x60] sm:$0xff]  ;;  %v989_v26 = vld [vmem:[%s9826_s4 + $0x68] sm:$0xff]  ;;  %v744_v34 = vld [vmem:[%s9825_s3 + $0x58] sm:$0xff]  ;;  %s7058_s20 = smov [#allocation9]  }
  0x1d   : > { %841 = vrot.lane.b32.xlu0 %v747_v1, %s7053_s18  ;;  %v988_v27 = vld [vmem:[%s9826_s4 + $0x60] sm:$0xff]  ;;  %v7253_v28 = vld [vmem:[%s7189_s29 + $0x8] sm:$0xff]   ;;  %v743_v35 = vld [vmem:[%s9825_s3 + $0x50] sm:$0xff]  ;;  %s6993_s26 = sshll.u32 %s7058_s20, 4  ;;  %s6994_s26 = int_to_ptr.vmem [resolvable:$false] %s6993_s26 }
  0x1e   : > { %480 = vmatpush1.bf16.msra.mxu0 %v6561_v10  ;;  %v1230_v31 = vld [vmem:[%s9827_s5 + $0x68] sm:$0xff]  ;;  %v1229_v32 = vld [vmem:[%s9827_s5 + $0x60] sm:$0xff]  ;;  %v987_v37 = vld [vmem:[%s9826_s4 + $0x58] sm:$0xff]  ;;  %s6995_s28 = scalar_lea.vmem %s6994_s26, 4096 }
  0x1f   : > { %481 = vmatprep.subr.bf16.mxu0 %v6562_v11  ;;  %v7286_v33 = vld [vmem:[%s7189_s29 + $0x20] sm:$0xff]   ;;  %v7301_v36 = vld [vmem:[%s7189_s29 + $0x28] sm:$0xff]   ;;  %v986_v38 = vld [vmem:[%s9826_s4 + $0x50] sm:$0xff] }
  0x20   : > { %1086 = vrot.lane.b32.xlu1 %v991_v4, %s7053_s18  ;;  %v7316_v39 = vld [vmem:[%s7189_s29 + $0x30] sm:$0xff]   ;;  %v7325_v40 = vld [vmem:[%s7189_s29 + $0x38] sm:$0xff]   ;;  %v7347_v43 = vld [vmem:[%s9825_s3 + $0x48] sm:$0xff]  ;;  %s7055_s29 = smov 112  }
  0x21   : > { %1084 = vrot.lane.b32.xlu0 %v990_v0, %s7053_s18  ;;  %v1228_v41 = vld [vmem:[%s9827_s5 + $0x58] sm:$0xff]  ;;  %v1227_v42 = vld [vmem:[%s9827_s5 + $0x50] sm:$0xff]  ;;  %9891 = vst [vmem:[#allocation12_spill] sm:$0xff] %v7347_v43  ;;  %v7352_v44 = vld [vmem:[%s9825_s3 + $0x40] sm:$0xff] }
  0x22   : > { %482 = vmatpush1.bf16.msra.mxu0 %v6564_v12  ;;  %9892 = vst [vmem:[#allocation13_spill] sm:$0xff] %v7352_v44  ;;  %v7361_v45 = vld [vmem:[%s9826_s4 + $0x48] sm:$0xff]  ;;  %v7366_v46 = vld [vmem:[%s9826_s4 + $0x40] sm:$0xff]  ;;  %v6585_v51 = vld [vmem:[%s9823_s1 + $0xb0] ss:$12 sps:$4 sm:$0xff]  }
  0x23   : > { %483 = vmatprep.subr.bf16.mxu0 %v6565_v13  ;;  %9893 = vst [vmem:[#allocation14_spill] sm:$0xff] %v7361_v45  ;;  %9894 = vst [vmem:[#allocation15_spill] sm:$0xff] %v7366_v46  ;;  %6137 = vmatprep.subr.bf16.mxu1 %v6585_v51  ;;  %v6586_v54 = vld [vmem:[%s9823_s1 + $0x98] ss:$12 sps:$4 sm:$0xff]   ;;  %v6587_v57 = vld [vmem:[%s9823_s1 + $0x80] ss:$12 sps:$4 sm:$0xff]  }
  0x24   : > { %891 = vrot.lane.b32.xlu1 %v748_v5, %s7054_s16  ;;  %6138 = vmatpush3.bf16.msra.mxu1 %v6585_v51  ;;  %v7416_v58 = vld [vmem:[%s9827_s5 + $0x48] sm:$0xff]  ;;  %v7421_v59 = vld [vmem:[%s9827_s5 + $0x40] sm:$0xff]  ;;  %v7459_v5 = vld [vmem:[%s9825_s3 + $0x38] sm:$0xff] }
  0x25   : > { %889 = vrot.lane.b32.xlu0 %v747_v1, %s7054_s16  ;;  %6139 = vmatprep.subr.bf16.mxu1 %v6586_v54  ;;  %9903 = vst [vmem:[#allocation24_spill] sm:$0xff] %v7416_v58  ;;  %9904 = vst [vmem:[#allocation25_spill] sm:$0xff] %v7421_v59  ;;  %v6588_v62 = vld [vmem:[%s9823_s1 + $0x68] ss:$12 sps:$4 sm:$0xff]   ;;  %v6589_v1 = vld [vmem:[%s9823_s1 + $0x50] ss:$12 sps:$4 sm:$0xff]  }
  0x26   : > { %484 = vmatpush1.bf16.msra.mxu0 %v6567_v15  ;;  %v6591_v9 = vld [vmem:[%s9823_s1 + $0x20] ss:$12 sps:$4 sm:$0xff]   ;;  %v7480_v10 = vld [vmem:[%s9826_s4 + $0x38] sm:$0xff]  ;;  %v7485_v11 = vld [vmem:[%s9826_s4 + $0x30] sm:$0xff] }
  0x27   : > { %485 = vmatprep.subr.bf16.mxu0 %v6568_v16 }
  0x28   : > { %1134 = vrot.lane.b32.xlu1 %v991_v4, %s7054_s16  ;;  %6140 = vmatpush3.bf16.msra.mxu1 %v6586_v54  ;;  %v6590_v4 = vld [vmem:[%s9823_s1 + $0x38] ss:$12 sps:$4 sm:$0xff]  }
  0x29   : > { %1132 = vrot.lane.b32.xlu0 %v990_v0, %s7054_s16  ;;  %6141 = vmatprep.subr.bf16.mxu1 %v6587_v57 }
  0x2a   : > { %486 = vmatpush1.bf16.msra.mxu0 %v6570_v17 }
  0x2b   : > { %487 = vmatprep.subr.bf16.mxu0 %v6571_v20 }
  0x2c   : > { %1279 = vrot.lane.b32.xlu1 %v1232_v18, %s7051_s13  ;;  %6142 = vmatpush3.bf16.msra.mxu1 %v6587_v57 }
  0x2d   : > { %1277 = vrot.lane.b32.xlu0 %v1231_v19, %s7051_s13  ;;  %6143 = vmatprep.subr.bf16.mxu1 %v6588_v62 }
  0x2e   : > { %488 = vmatpush1.bf16.msra.mxu0 %v6573_v21 }
  0x2f   : > { %489 = vmatprep.subr.bf16.mxu0 %v6574_v22 }
  0x30   : > { %1327 = vrot.lane.b32.xlu1 %v1232_v18, %s7053_s18  ;;  %6144 = vmatpush3.bf16.msra.mxu1 %v6588_v62 }
  0x31   : > { %1325 = vrot.lane.b32.xlu0 %v1231_v19, %s7053_s18  ;;  %6145 = vmatprep.subr.bf16.mxu1 %v6589_v1 }
  0x32   : > { %490 = vmatpush1.bf16.msra.mxu0 %v6576_v23  ;;  %v7537_v23 = vld [vmem:[%s9827_s5 + $0x38] sm:$0xff] }
  0x34   : > { %1375 = vrot.lane.b32.xlu1 %v1232_v18, %s7054_s16  ;;  %6146 = vmatpush3.bf16.msra.mxu1 %v6589_v1  ;;  %v7642_v1 = vld [vmem:[%s9827_s5 + $0x28] sm:$0xff] }
  0x35   : > { %1373 = vrot.lane.b32.xlu0 %v1231_v19, %s7054_s16  ;;  %508 = vmatmul.mubr.bf16.vlgmr.msra.gmra.mxu0 %v6577_v14  ;;  %v6592_v14 = vld [vmem:[%s9823_s1 + $0x8] ss:$12 sps:$4 sm:$0xff]  }
  0x36   : > { %517 = vmatprep.mubr.bf16.mxu0 %v7052_v6  ;;  %6147 = vmatprep.subr.bf16.mxu1 %v6590_v4 }
  0x38   : > { %791 = vrot.lane.b32.xlu1 %v746_v24, %s7051_s13  ;;  %6148 = vmatpush3.bf16.msra.mxu1 %v6590_v4  ;;  %v7647_v4 = vld [vmem:[%s9827_s5 + $0x20] sm:$0xff] }
  0x39   : > { %789 = vrot.lane.b32.xlu0 %v745_v25, %s7051_s13  ;;  %6149 = vmatprep.subr.bf16.mxu1 %v6591_v9 }
  0x3c   : > { %1034 = vrot.lane.b32.xlu1 %v989_v26, %s7051_s13  ;;  %6150 = vmatpush3.bf16.msra.mxu1 %v6591_v9 }
  0x3d   : > { %1032 = vrot.lane.b32.xlu0 %v988_v27, %s7051_s13  ;;  %518 = vmatmul.mubr.bf16.gmra.mxu0 %v7253_v28 }
  0x3e   : > { %527 = vmatprep.mubr.bf16.mxu0 %v7052_v6  ;;  %6151 = vmatprep.subr.bf16.mxu1 %v6592_v14 }
  0x40   : > { %839 = vrot.lane.b32.xlu1 %v746_v24, %s7053_s18  ;;  %6152 = vmatpush3.bf16.msra.mxu1 %v6592_v14 }
  0x41   : > { %837 = vrot.lane.b32.xlu0 %v745_v25, %s7053_s18 }
  0x43   : > { %6154 = vmatmul.mubr.bf16.vlgmr.msra.gmra.mxu1 %v7253_v28 }
  0x44   : > { %1082 = vrot.lane.b32.xlu1 %v989_v26, %s7053_s18  ;;  %6157 = vmatprep.mubr.bf16.mxu1 %v7262_v29 }
  0x45   : > { %1080 = vrot.lane.b32.xlu0 %v988_v27, %s7053_s18  ;;  %528 = vmatmul.mubr.bf16.gmra.mxu0 %v7262_v29 }
  0x46   : > { %537 = vmatprep.mubr.bf16.mxu0 %v7052_v6 }
  0x48   : > { %887 = vrot.lane.b32.xlu1 %v746_v24, %s7054_s16  ;;  %v7542_v24 = vld [vmem:[%s9827_s5 + $0x30] sm:$0xff] }
  0x49   : > { %885 = vrot.lane.b32.xlu0 %v745_v25, %s7054_s16 }
  0x4b   : > { %6158 = vmatmul.mubr.bf16.gmra.mxu1 %v7271_v30 }
  0x4c   : > { %1130 = vrot.lane.b32.xlu1 %v989_v26, %s7054_s16  ;;  %6161 = vmatprep.mubr.bf16.mxu1 %v7286_v33 }
  0x4d   : > { %1128 = vrot.lane.b32.xlu0 %v988_v27, %s7054_s16  ;;  %538 = vmatmul.mubr.bf16.gmra.mxu0 %v7271_v30 }
  0x4e   : > { %547 = vmatprep.mubr.bf16.mxu0 %v7052_v6 }
  0x50   : > { %1275 = vrot.lane.b32.xlu1 %v1230_v31, %s7051_s13 }
  0x51   : > { %1273 = vrot.lane.b32.xlu0 %v1229_v32, %s7051_s13 }
  0x53   : > { %6162 = vmatmul.mubr.bf16.gmra.mxu1 %v7301_v36 }
  0x54   : > { %1323 = vrot.lane.b32.xlu1 %v1230_v31, %s7053_s18  ;;  %6165 = vmatprep.mubr.bf16.mxu1 %v7316_v39 }
  0x55   : > { %1321 = vrot.lane.b32.xlu0 %v1229_v32, %s7053_s18  ;;  %548 = vmatmul.mubr.bf16.gmra.mxu0 %v7286_v33 }
  0x56   : > { %557 = vmatprep.mubr.bf16.mxu0 %v7052_v6 }
  0x58   : > { %1371 = vrot.lane.b32.xlu1 %v1230_v31, %s7054_s16  ;;  %v7573_v31 = vld [vmem:[%s9825_s3 + $0x28] sm:$0xff] }
  0x59   : > { %1369 = vrot.lane.b32.xlu0 %v1229_v32, %s7054_s16  ;;  %v7578_v32 = vld [vmem:[%s9825_s3 + $0x20] sm:$0xff] }
  0x5b   : > { %6166 = vmatmul.mubr.bf16.gmra.mxu1 %v7325_v40 }
  0x5c   : > { %787 = vrot.lane.b32.xlu1 %v744_v34, %s7051_s13 }
  0x5d   : > { %785 = vrot.lane.b32.xlu0 %v743_v35, %s7051_s13  ;;  %558 = vmatmul.mubr.bf16.gmra.mxu0 %v7301_v36  ;;  %v7597_v36 = vld [vmem:[%s9826_s4 + $0x20] sm:$0xff] }
  0x5e   : > { %567 = vmatprep.mubr.bf16.mxu0 %v7052_v6 }
  0x60   : > { %1030 = vrot.lane.b32.xlu1 %v987_v37, %s7051_s13 }
  0x61   : > { %1028 = vrot.lane.b32.xlu0 %v986_v38, %s7051_s13 }
  0x64   : > { %835 = vrot.lane.b32.xlu1 %v744_v34, %s7053_s18 }
  0x65   : > { %833 = vrot.lane.b32.xlu0 %v743_v35, %s7053_s18  ;;  %568 = vmatmul.mubr.bf16.gmra.mxu0 %v7316_v39 }
  0x66   : > { %577 = vmatprep.mubr.bf16.mxu0 %v7052_v6  ;;  %v7464_v6 = vld [vmem:[%s9825_s3 + $0x30] sm:$0xff] }
  0x68   : > { %1078 = vrot.lane.b32.xlu1 %v987_v37, %s7053_s18 }
  0x69   : > { %1076 = vrot.lane.b32.xlu0 %v986_v38, %s7053_s18 }
  0x6c   : > { %883 = vrot.lane.b32.xlu1 %v744_v34, %s7054_s16 }
  0x6d   : > { %881 = vrot.lane.b32.xlu0 %v743_v35, %s7054_s16  ;;  %578 = vmatmul.mubr.bf16.gmra.mxu0 %v7325_v40  ;;  %v7592_v35 = vld [vmem:[%s9826_s4 + $0x28] sm:$0xff] }
  0x70   : > { %1126 = vrot.lane.b32.xlu1 %v987_v37, %s7054_s16 }
  0x71   : > { %1124 = vrot.lane.b32.xlu0 %v986_v38, %s7054_s16 }
  0x74   : > { %1271 = vrot.lane.b32.xlu1 %v1228_v41, %s7051_s13 }
  0x75   : > { %1269 = vrot.lane.b32.xlu0 %v1227_v42, %s7051_s13 }
  0x78   : > { %1319 = vrot.lane.b32.xlu1 %v1228_v41, %s7053_s18 }
  0x79   : > { %1317 = vrot.lane.b32.xlu0 %v1227_v42, %s7053_s18 }
  0x7c   : > { %1367 = vrot.lane.b32.xlu1 %v1228_v41, %s7054_s16 }
  0x7d   : > { %1365 = vrot.lane.b32.xlu0 %v1227_v42, %s7054_s16 }
  0x80   : > { %783 = vrot.lane.b32.xlu1 %v7347_v43, %s7051_s13 }
  0x81   : > { %781 = vrot.lane.b32.xlu0 %v7352_v44, %s7051_s13 }
  0x84   : > { %1026 = vrot.lane.b32.xlu1 %v7361_v45, %s7051_s13 }
  0x85   : > { %1024 = vrot.lane.b32.xlu0 %v7366_v46, %s7051_s13 }
  0x86   : > { %v7372_v47 = vpop.permute.xlu1 %1036 }
  0x87   : > { %9895 = vst [vmem:[#allocation16_spill] sm:$0xff] %v7372_v47  ;;  %v7374_v48 = vpop.permute.xlu0 %793 }
  0x88   : > { %9896 = vst [vmem:[#allocation17_spill] sm:$0xff] %v7374_v48  ;;  %831 = vrot.lane.b32.xlu1 %v7347_v43, %s7053_s18 }
  0x89   : > { %829 = vrot.lane.b32.xlu0 %v7352_v44, %s7053_s18 }
  0x8a   : > { %v7380_v49 = vpop.permute.xlu1 %1038 }
  0x8b   : > { %9897 = vst [vmem:[#allocation18_spill] sm:$0xff] %v7380_v49  ;;  %v7382_v50 = vpop.permute.xlu0 %795 }
  0x8c   : > { %9898 = vst [vmem:[#allocation19_spill] sm:$0xff] %v7382_v50  ;;  %1074 = vrot.lane.b32.xlu1 %v7361_v45, %s7053_s18 }
  0x8d   : > { %1072 = vrot.lane.b32.xlu0 %v7366_v46, %s7053_s18 }
  0x8e   : > { %v7391_v52 = vpop.permute.xlu1 %843 }
  0x8f   : > { %9899 = vst [vmem:[#allocation20_spill] sm:$0xff] %v7391_v52  ;;  %v7393_v53 = vpop.permute.xlu0 %841  ;;  %v979_v52 = vld [vmem:[%s9826_s4 + $0x18] sm:$0xff] }
  0x90   : > { %9900 = vst [vmem:[#allocation21_spill] sm:$0xff] %v7393_v53  ;;  %879 = vrot.lane.b32.xlu1 %v7347_v43, %s7054_s16  ;;  %v735_v53 = vld [vmem:[%s9825_s3 + $0x10] sm:$0xff] }
  0x91   : > { %877 = vrot.lane.b32.xlu0 %v7352_v44, %s7054_s16 }
  0x92   : > { %v7402_v55 = vpop.permute.xlu1 %1086 }
  0x93   : > { %9901 = vst [vmem:[#allocation22_spill] sm:$0xff] %v7402_v55  ;;  %v7404_v56 = vpop.permute.xlu0 %1084 }
  0x94   : > { %9902 = vst [vmem:[#allocation23_spill] sm:$0xff] %v7404_v56  ;;  %1122 = vrot.lane.b32.xlu1 %v7361_v45, %s7054_s16 }
  0x95   : > { %1120 = vrot.lane.b32.xlu0 %v7366_v46, %s7054_s16 }
  0x96   : > { %v7423_v60 = vpop.permute.xlu1 %891 }
  0x97   : > { %9905 = vst [vmem:[#allocation26_spill] sm:$0xff] %v7423_v60  ;;  %v7425_v61 = vpop.permute.xlu0 %889 }
  0x98   : > { %9906 = vst [vmem:[#allocation27_spill] sm:$0xff] %v7425_v61  ;;  %1267 = vrot.lane.b32.xlu1 %v7416_v58, %s7051_s13 }
  0x99   : > { %1265 = vrot.lane.b32.xlu0 %v7421_v59, %s7051_s13 }
  0x9a   : > { %v7434_v63 = vpop.permute.xlu1 %1134 }
  0x9b   : > { %9907 = vst [vmem:[#allocation28_spill] sm:$0xff] %v7434_v63  ;;  %v7436_v0 = vpop.permute.xlu0 %1132 }
  0x9c   : > { %9908 = vst [vmem:[#allocation29_spill] sm:$0xff] %v7436_v0  ;;  %1315 = vrot.lane.b32.xlu1 %v7416_v58, %s7053_s18 }
  0x9d   : > { %1313 = vrot.lane.b32.xlu0 %v7421_v59, %s7053_s18 }
  0x9e   : > { %v7445_v2 = vpop.permute.xlu1 %1279 }
  0x9f   : > { %9909 = vst [vmem:[#allocation30_spill] sm:$0xff] %v7445_v2  ;;  %v7447_v3 = vpop.permute.xlu0 %1277 }
  0xa0   : > { %9910 = vst [vmem:[#allocation31_spill] sm:$0xff] %v7447_v3  ;;  %1363 = vrot.lane.b32.xlu1 %v7416_v58, %s7054_s16 }
  0xa1   : > { %1361 = vrot.lane.b32.xlu0 %v7421_v59, %s7054_s16 }
  0xa2   : > { %v7466_v7 = vpop.permute.xlu1 %1327 }
  0xa3   : > { %9911 = vst [vmem:[#allocation32_spill] sm:$0xff] %v7466_v7  ;;  %v7468_v8 = vpop.permute.xlu0 %1325  ;;  %v736_v7 = vld [vmem:[%s9825_s3 + $0x18] sm:$0xff] }
  0xa4   : > { %9912 = vst [vmem:[#allocation33_spill] sm:$0xff] %v7468_v8  ;;  %779 = vrot.lane.b32.xlu1 %v7459_v5, %s7051_s13  ;;  %v978_v8 = vld [vmem:[%s9826_s4 + $0x10] sm:$0xff] }
  0xa5   : > { %777 = vrot.lane.b32.xlu0 %v7464_v6, %s7051_s13 }
  0xa6   : > { %v7487_v12 = vpop.permute.xlu1 %1375 }
  0xa7   : > { %9913 = vst [vmem:[#allocation34_spill] sm:$0xff] %v7487_v12  ;;  %v7489_v13 = vpop.permute.xlu0 %1373 }
  0xa8   : > { %9914 = vst [vmem:[#allocation35_spill] sm:$0xff] %v7489_v13  ;;  %1022 = vrot.lane.b32.xlu1 %v7480_v10, %s7051_s13 }
  0xa9   : > { %1020 = vrot.lane.b32.xlu0 %v7485_v11, %s7051_s13 }
  0xaa   : > { %v7498_v15 = vpop.permute.xlu1 %791 }
  0xab   : > { %9915 = vst [vmem:[#allocation36_spill] sm:$0xff] %v7498_v15  ;;  %v7500_v16 = vpop.permute.xlu0 %789 }
  0xac   : > { %9916 = vst [vmem:[#allocation37_spill] sm:$0xff] %v7500_v16  ;;  %827 = vrot.lane.b32.xlu1 %v7459_v5, %s7053_s18 }
  0xad   : > { %825 = vrot.lane.b32.xlu0 %v7464_v6, %s7053_s18 }
  0xae   : > { %v7506_v17 = vpop.permute.xlu1 %1034 }
  0xaf   : > { %9917 = vst [vmem:[#allocation38_spill] sm:$0xff] %v7506_v17  ;;  %v7508_v18 = vpop.permute.xlu0 %1032 }
  0xb0   : > { %9918 = vst [vmem:[#allocation39_spill] sm:$0xff] %v7508_v18  ;;  %1070 = vrot.lane.b32.xlu1 %v7480_v10, %s7053_s18 }
  0xb1   : > { %1068 = vrot.lane.b32.xlu0 %v7485_v11, %s7053_s18 }
  0xb2   : > { %v7516_v19 = vpop.permute.xlu1 %839 }
  0xb3   : > { %9919 = vst [vmem:[#allocation40_spill] sm:$0xff] %v7516_v19  ;;  %v7518_v20 = vpop.permute.xlu0 %837 }
  0xb4   : > { %9920 = vst [vmem:[#allocation41_spill] sm:$0xff] %v7518_v20  ;;  %875 = vrot.lane.b32.xlu1 %v7459_v5, %s7054_s16 }
  0xb5   : > { %873 = vrot.lane.b32.xlu0 %v7464_v6, %s7054_s16 }
  0xb6   : > { %v7524_v21 = vpop.permute.xlu1 %1082 }
  0xb7   : > { %9921 = vst [vmem:[#allocation42_spill] sm:$0xff] %v7524_v21  ;;  %v7526_v22 = vpop.permute.xlu0 %1080 }
  0xb8   : > { %9922 = vst [vmem:[#allocation43_spill] sm:$0xff] %v7526_v22  ;;  %1118 = vrot.lane.b32.xlu1 %v7480_v10, %s7054_s16 }
  0xb9   : > { %1116 = vrot.lane.b32.xlu0 %v7485_v11, %s7054_s16 }
  0xba   : > { %v7544_v25 = vpop.permute.xlu1 %887 }
  0xbb   : > { %9923 = vst [vmem:[#allocation44_spill] sm:$0xff] %v7544_v25  ;;  %v7546_v26 = vpop.permute.xlu0 %885 }
  0xbc   : > { %9924 = vst [vmem:[#allocation45_spill] sm:$0xff] %v7546_v26  ;;  %1263 = vrot.lane.b32.xlu1 %v7537_v23, %s7051_s13 }
  0xbd   : > { %1261 = vrot.lane.b32.xlu0 %v7542_v24, %s7051_s13 }
  0xbe   : > { %v7552_v27 = vpop.permute.xlu1 %1130 }
  0xbf   : > { %9925 = vst [vmem:[#allocation46_spill] sm:$0xff] %v7552_v27  ;;  %v7554_v28 = vpop.permute.xlu0 %1128 }
  0xc0   : > { %9926 = vst [vmem:[#allocation47_spill] sm:$0xff] %v7554_v28  ;;  %1311 = vrot.lane.b32.xlu1 %v7537_v23, %s7053_s18 }
  0xc1   : > { %1309 = vrot.lane.b32.xlu0 %v7542_v24, %s7053_s18 }
  0xc2   : > { %v7562_v29 = vpop.permute.xlu1 %1275 }
  0xc3   : > { %9927 = vst [vmem:[#allocation48_spill] sm:$0xff] %v7562_v29  ;;  %v7564_v30 = vpop.permute.xlu0 %1273 }
  0xc4   : > { %9928 = vst [vmem:[#allocation49_spill] sm:$0xff] %v7564_v30  ;;  %1359 = vrot.lane.b32.xlu1 %v7537_v23, %s7054_s16 }
  0xc5   : > { %1357 = vrot.lane.b32.xlu0 %v7542_v24, %s7054_s16 }
  0xc6   : > { %v7580_v33 = vpop.permute.xlu1 %1323 }
  0xc7   : > { %9929 = vst [vmem:[#allocation50_spill] sm:$0xff] %v7580_v33  ;;  %v7582_v34 = vpop.permute.xlu0 %1321 }
  0xc8   : > { %9930 = vst [vmem:[#allocation51_spill] sm:$0xff] %v7582_v34  ;;  %775 = vrot.lane.b32.xlu1 %v7573_v31, %s7051_s13 }
  0xc9   : > { %773 = vrot.lane.b32.xlu0 %v7578_v32, %s7051_s13 }
  0xca   : > { %v7599_v37 = vpop.permute.xlu1 %1371 }
  0xcb   : > { %9931 = vst [vmem:[#allocation52_spill] sm:$0xff] %v7599_v37  ;;  %v7601_v38 = vpop.permute.xlu0 %1369 }
  0xcc   : > { %9932 = vst [vmem:[#allocation53_spill] sm:$0xff] %v7601_v38  ;;  %1018 = vrot.lane.b32.xlu1 %v7592_v35, %s7051_s13 }
  0xcd   : > { %1016 = vrot.lane.b32.xlu0 %v7597_v36, %s7051_s13 }
  0xce   : > { %v7607_v39 = vpop.permute.xlu1 %787 }
  0xcf   : > { %9933 = vst [vmem:[#allocation54_spill] sm:$0xff] %v7607_v39  ;;  %v7609_v40 = vpop.permute.xlu0 %785 }
  0xd0   : > { %9934 = vst [vmem:[#allocation55_spill] sm:$0xff] %v7609_v40  ;;  %823 = vrot.lane.b32.xlu1 %v7573_v31, %s7053_s18 }
  0xd1   : > { %821 = vrot.lane.b32.xlu0 %v7578_v32, %s7053_s18 }
  0xd2   : > { %v7615_v41 = vpop.permute.xlu1 %1030 }
  0xd3   : > { %9935 = vst [vmem:[#allocation56_spill] sm:$0xff] %v7615_v41  ;;  %v7617_v42 = vpop.permute.xlu0 %1028 }
  0xd4   : > { %9936 = vst [vmem:[#allocation57_spill] sm:$0xff] %v7617_v42  ;;  %1066 = vrot.lane.b32.xlu1 %v7592_v35, %s7053_s18 }
  0xd5   : > { %1064 = vrot.lane.b32.xlu0 %v7597_v36, %s7053_s18 }
  0xd6   : > { %v7623_v51 = vpop.permute.xlu1 %835 }
  0xd7   : > { %9937 = vst [vmem:[#allocation58_spill] sm:$0xff] %v7623_v51  ;;  %v7625_v54 = vpop.permute.xlu0 %833 }
  0xd8   : > { %9938 = vst [vmem:[#allocation59_spill] sm:$0xff] %v7625_v54  ;;  %871 = vrot.lane.b32.xlu1 %v7573_v31, %s7054_s16 }
  0xd9   : > { %869 = vrot.lane.b32.xlu0 %v7578_v32, %s7054_s16 }
  0xda   : > { %v7631_v57 = vpop.permute.xlu1 %1078 }
  0xdb   : > { %9939 = vst [vmem:[#allocation60_spill] sm:$0xff] %v7631_v57  ;;  %v7633_v62 = vpop.permute.xlu0 %1076 }
  0xdc   : > { %9940 = vst [vmem:[#allocation61_spill] sm:$0xff] %v7633_v62  ;;  %1114 = vrot.lane.b32.xlu1 %v7592_v35, %s7054_s16 }
  0xdd   : > { %1112 = vrot.lane.b32.xlu0 %v7597_v36, %s7054_s16 }
  0xde   : > { %v7649_v9 = vpop.permute.xlu1 %883 }
  0xdf   : > { %9941 = vst [vmem:[#allocation62_spill] sm:$0xff] %v7649_v9  ;;  %v7651_v14 = vpop.permute.xlu0 %881 }
  0xe0   : > { %9942 = vst [vmem:[#allocation63_spill] sm:$0xff] %v7651_v14  ;;  %1259 = vrot.lane.b32.xlu1 %v7642_v1, %s7051_s13 }
  0xe1   : > { %1257 = vrot.lane.b32.xlu0 %v7647_v4, %s7051_s13 }
  0xe2   : > { %v7657_v12 = vpop.permute.xlu1 %1126 }
  0xe3   : > { %9943 = vst [vmem:[#allocation64_spill] sm:$0xff] %v7657_v12  ;;  %v7659_v13 = vpop.permute.xlu0 %1124 }
  0xe4   : > { %9944 = vst [vmem:[#allocation65_spill] sm:$0xff] %v7659_v13  ;;  %1307 = vrot.lane.b32.xlu1 %v7642_v1, %s7053_s18 }
  0xe5   : > { %1305 = vrot.lane.b32.xlu0 %v7647_v4, %s7053_s18 }
  0xe6   : > { %v7665_v61 = vpop.permute.xlu1 %1271 }
  0xe7   : > { %9945 = vst [vmem:[#allocation66_spill] sm:$0xff] %v7665_v61  ;;  %v7667_v60 = vpop.permute.xlu0 %1269 }
  0xe8   : > { %9946 = vst [vmem:[#allocation67_spill] sm:$0xff] %v7667_v60  ;;  %1355 = vrot.lane.b32.xlu1 %v7642_v1, %s7054_s16 }
  0xe9   : > { %1353 = vrot.lane.b32.xlu0 %v7647_v4, %s7054_s16 }
  0xea   : > { %v7679_v0 = vpop.permute.xlu1 %1319 }
  0xeb   : > { %9947 = vst [vmem:[#allocation68_spill] sm:$0xff] %v7679_v0  ;;  %v7681_v63 = vpop.permute.xlu0 %1317 }
  0xec   : > { %9948 = vst [vmem:[#allocation69_spill] sm:$0xff] %v7681_v63  ;;  %771 = vrot.lane.b32.xlu1 %v736_v7, %s7051_s13 }
  0xed   : > { %769 = vrot.lane.b32.xlu0 %v735_v53, %s7051_s13 }
  0xee   : > { %v7691_v56 = vpop.permute.xlu1 %1367 }
  0xef   : > { %9949 = vst [vmem:[#allocation70_spill] sm:$0xff] %v7691_v56  ;;  %v7693_v55 = vpop.permute.xlu0 %1365 }
  0xf0   : > { %9950 = vst [vmem:[#allocation71_spill] sm:$0xff] %v7693_v55  ;;  %1014 = vrot.lane.b32.xlu1 %v979_v52, %s7051_s13 }
  0xf1   : > { %1012 = vrot.lane.b32.xlu0 %v978_v8, %s7051_s13 }
  0xf2   : > { %v7697_v2 = vpop.permute.xlu1 %783 }
  0xf3   : > { %9951 = vst [vmem:[#allocation72_spill] sm:$0xff] %v7697_v2  ;;  %v7699_v48 = vpop.permute.xlu0 %781 }
  0xf4   : > { %9952 = vst [vmem:[#allocation73_spill] sm:$0xff] %v7699_v48  ;;  %819 = vrot.lane.b32.xlu1 %v736_v7, %s7053_s18 }
  0xf5   : > { %817 = vrot.lane.b32.xlu0 %v735_v53, %s7053_s18  ;;  %v7707_v3 = vpop.f32.mrf.mxu0 }
  0xf6   : > { %v7703_v47 = vpop.permute.xlu1 %1026 }
  0xf7   : > { %9953 = vst [vmem:[#allocation74_spill] sm:$0xff] %v7703_v47  ;;  %v7705_v50 = vpop.permute.xlu0 %1024  ;;  %v7711_v49 = vpop.f32.mrf.mxu0 }
  0xf8   : > { %9954 = vst [vmem:[#allocation75_spill] sm:$0xff] %v7705_v50  ;;  %1062 = vrot.lane.b32.xlu1 %v979_v52, %s7053_s18 }
  0xf9   : > { %1060 = vrot.lane.b32.xlu0 %v978_v8, %s7053_s18  ;;  %v7717_v26 = vpop.f32.mrf.mxu0 }
  0xfa   : > { %v7713_v37 = vpop.permute.xlu1 %831 }
  0xfb   : > { %9955 = vst [vmem:[#allocation76_spill] sm:$0xff] %v7713_v37  ;;  %v7715_v38 = vpop.permute.xlu0 %829  ;;  %v7721_v25 = vpop.f32.mrf.mxu0  ;;  %v7893_v37 = vld [vmem:[%s9827_s5 + $0x10] sm:$0xff] }
  0xfc   : > { %9956 = vst [vmem:[#allocation77_spill] sm:$0xff] %v7715_v38  ;;  %867 = vrot.lane.b32.xlu1 %v736_v7, %s7054_s16  ;;  %9997 = vst [vmem:[#allocation118_spill] sm:$0xff] %v7893_v37 }
  0xfd   : > { %865 = vrot.lane.b32.xlu0 %v735_v53, %s7054_s16  ;;  %v7727_v27 = vpop.f32.mrf.mxu0 }
  0xfe   : > { %v7723_v33 = vpop.permute.xlu1 %1074 }
  0xff   : > { %9957 = vst [vmem:[#allocation78_spill] sm:$0xff] %v7723_v33  ;;  %v7725_v28 = vpop.permute.xlu0 %1072  ;;  %v7731_v20 = vpop.f32.mrf.mxu0 }
 0x100   : > { %9958 = vst [vmem:[#allocation79_spill] sm:$0xff] %v7725_v28  ;;  %1110 = vrot.lane.b32.xlu1 %v979_v52, %s7054_s16  ;;  %9959 = vst [vmem:[#allocation80_spill] sm:$0xff] %v7731_v20 }
 0x101   : > { %1108 = vrot.lane.b32.xlu0 %v978_v8, %s7054_s16  ;;  %v7737_v7 = vpop.f32.mrf.mxu0 }
 0x102   : > { %v7733_v19 = vpop.permute.xlu1 %879 }
 0x103   : > { %9960 = vst [vmem:[#allocation81_spill] sm:$0xff] %v7733_v19  ;;  %v7735_v34 = vpop.permute.xlu0 %877  ;;  %v7739_v53 = vpop.f32.mrf.mxu0 }
 0x104   : > { %9961 = vst [vmem:[#allocation82_spill] sm:$0xff] %v7735_v34  ;;  %9962 = vst [vmem:[#allocation83_spill] sm:$0xff] %v7739_v53 }
 0x105   : > { %v7745_v21 = vpop.f32.mrf.mxu0 }
 0x106   : > { %v7741_v22 = vpop.permute.xlu1 %1122  ;;  %9965 = vst [vmem:[#allocation86_spill] sm:$0xff] %v7745_v21 }
 0x107   : > { %9963 = vst [vmem:[#allocation84_spill] sm:$0xff] %v7741_v22  ;;  %v7743_v29 = vpop.permute.xlu0 %1120  ;;  %v7747_v16 = vpop.f32.mrf.mxu0  ;;  %v7878_v22 = vld [vmem:[%s9827_s5 + $0x18] sm:$0xff] }
 0x108   : > { %9964 = vst [vmem:[#allocation85_spill] sm:$0xff] %v7743_v29  ;;  %1802 = vrot.lane.b32.xlu0 %v7747_v16, %s7055_s29  ;;  %9993 = vst [vmem:[#allocation114_spill] sm:$0xff] %v7878_v22 }
 0x109   : > { %v7755_v56 = vpop.f32.mrf.mxu0 }
 0x10a   : > { %v7751_v52 = vpop.permute.xlu1 %1267  ;;  %9968 = vst [vmem:[#allocation89_spill] sm:$0xff] %v7755_v56 }
 0x10b   : > { %9966 = vst [vmem:[#allocation87_spill] sm:$0xff] %v7751_v52  ;;  %v7753_v8 = vpop.permute.xlu0 %1265  ;;  %v7757_v30 = vpop.f32.mrf.mxu0 }
 0x10c   : > { %9967 = vst [vmem:[#allocation88_spill] sm:$0xff] %v7753_v8  ;;  %1882 = vrot.lane.b32.xlu0 %v7747_v16, %s7056_s11  ;;  %1804 = vrot.lane.b32.xlu1 %v7757_v30, %s7055_s29 }
 0x10d   : > { %v7767_v17 = vpop.f32.mrf.mxu0 }
 0x10e   : > { %v7763_v18 = vpop.permute.xlu1 %1315  ;;  %9971 = vst [vmem:[#allocation92_spill] sm:$0xff] %v7767_v17 }
 0x10f   : > { %9969 = vst [vmem:[#allocation90_spill] sm:$0xff] %v7763_v18  ;;  %v7765_v15 = vpop.permute.xlu0 %1313  ;;  %v7769_v55 = vpop.f32.mrf.mxu0 }
 0x110   : > { %9970 = vst [vmem:[#allocation91_spill] sm:$0xff] %v7765_v15  ;;  %9972 = vst [vmem:[#allocation93_spill] sm:$0xff] %v7769_v55  ;;  %1884 = vrot.lane.b32.xlu1 %v7757_v30, %s7056_s11  ;;  %1806 = vrot.lane.b32.xlu0 %v7769_v55, %s7055_s29 }
 0x111   : > { %v7779_v0 = vpop.f32.mrf.mxu0 }
 0x112   : > { %v7775_v14 = vpop.permute.xlu1 %1363  ;;  %9975 = vst [vmem:[#allocation96_spill] sm:$0xff] %v7779_v0 }
 0x113   : > { %9973 = vst [vmem:[#allocation94_spill] sm:$0xff] %v7775_v14  ;;  %v7777_v9 = vpop.permute.xlu0 %1361  ;;  %v7781_v13 = vpop.f32.mrf.mxu0 }
 0x114   : > { %9974 = vst [vmem:[#allocation95_spill] sm:$0xff] %v7777_v9  ;;  %9976 = vst [vmem:[#allocation97_spill] sm:$0xff] %v7781_v13  ;;  %1886 = vrot.lane.b32.xlu0 %v7769_v55, %s7056_s11  ;;  %1808 = vrot.lane.b32.xlu1 %v7781_v13, %s7055_s29 }
 0x115   : > { %v7791_v51 = vpop.f32.mrf.mxu0 }
 0x116   : > { %v7787_v12 = vpop.permute.xlu1 %779  ;;  %9977 = vst [vmem:[#allocation98_spill] sm:$0xff] %v7791_v51 }
 0x117   : > { %v7789_v54 = vpop.permute.xlu0 %777  ;;  %v7793_v63 = vpop.f32.mrf.mxu0 }
 0x118   : > { %9978 = vst [vmem:[#allocation99_spill] sm:$0xff] %v7793_v63  ;;  %1888 = vrot.lane.b32.xlu1 %v7781_v13, %s7056_s11  ;;  %1810 = vrot.lane.b32.xlu0 %v7793_v63, %s7055_s29 }
 0x119   : > { %v7803_v57 = vpop.f32.mrf.mxu0 }
 0x11a   : > { %v7799_v62 = vpop.permute.xlu1 %1022  ;;  %9979 = vst [vmem:[#allocation100_spill] sm:$0xff] %v7803_v57 }
 0x11b   : > { %v7801_v61 = vpop.permute.xlu0 %1020  ;;  %v7805_v40 = vpop.f32.mrf.mxu0 }
 0x11c   : > { %9980 = vst [vmem:[#allocation101_spill] sm:$0xff] %v7805_v40  ;;  %1890 = vrot.lane.b32.xlu0 %v7793_v63, %s7056_s11  ;;  %1812 = vrot.lane.b32.xlu1 %v7805_v40, %s7055_s29 }
 0x11d   : > { %v7815_v60 = vpop.f32.mrf.mxu0 }
 0x11e   : > { %v7811_v51 = vpop.permute.xlu1 %827  ;;  %9981 = vst [vmem:[#allocation102_spill] sm:$0xff] %v7815_v60 }
 0x11f   : > { %v7813_v14 = vpop.permute.xlu0 %825  ;;  %v7817_v42 = vpop.f32.mrf.mxu0 }
 0x120   : > { %9982 = vst [vmem:[#allocation103_spill] sm:$0xff] %v7817_v42  ;;  %1892 = vrot.lane.b32.xlu1 %v7805_v40, %s7056_s11  ;;  %1814 = vrot.lane.b32.xlu0 %v7817_v42, %s7055_s29 }
 0x121   : > { %v7827_v63 = vpop.f32.mrf.mxu0 }
 0x122   : > { %v7823_v57 = vpop.permute.xlu1 %1070  ;;  %9983 = vst [vmem:[#allocation104_spill] sm:$0xff] %v7827_v63 }
 0x123   : > { %v7825_v39 = vpop.permute.xlu0 %1068  ;;  %v7829_v41 = vpop.f32.mrf.mxu0 }
 0x124   : > { %9984 = vst [vmem:[#allocation105_spill] sm:$0xff] %v7829_v41  ;;  %1894 = vrot.lane.b32.xlu0 %v7817_v42, %s7056_s11  ;;  %1816 = vrot.lane.b32.xlu1 %v7829_v41, %s7055_s29 }
 0x125   : > { %v7839_v0 = vpop.f32.mrf.mxu0 }
 0x126   : > { %v7835_v60 = vpop.permute.xlu1 %875  ;;  %9985 = vst [vmem:[#allocation106_spill] sm:$0xff] %v7839_v0 }
 0x127   : > { %v7837_v40 = vpop.permute.xlu0 %873  ;;  %v7841_v9 = vpop.f32.mrf.mxu0 }
 0x128   : > { %9986 = vst [vmem:[#allocation107_spill] sm:$0xff] %v7841_v9  ;;  %1896 = vrot.lane.b32.xlu1 %v7829_v41, %s7056_s11  ;;  %1818 = vrot.lane.b32.xlu0 %v7841_v9, %s7055_s29 }
 0x129   : > { %v7851_v34 = vpop.f32.mrf.mxu0 }
 0x12a   : > { %v7847_v63 = vpop.permute.xlu1 %1118  ;;  %9988 = vst [vmem:[#allocation109_spill] sm:$0xff] %v7851_v34 }
 0x12b   : > { %v7849_v42 = vpop.permute.xlu0 %1116  ;;  %v7853_v19 = vpop.f32.mrf.mxu0 }
 0x12c   : > { %9987 = vst [vmem:[#allocation108_spill] sm:$0xff] %v7849_v42  ;;  %9989 = vst [vmem:[#allocation110_spill] sm:$0xff] %v7853_v19  ;;  %1898 = vrot.lane.b32.xlu0 %v7841_v9, %s7056_s11  ;;  %1820 = vrot.lane.b32.xlu1 %v7853_v19, %s7055_s29 }
 0x12d   : > { %v7863_v18 = vpop.f32.mrf.mxu0 }
 0x12e   : > { %v7859_v0 = vpop.permute.xlu1 %1263  ;;  %9990 = vst [vmem:[#allocation111_spill] sm:$0xff] %v7863_v18 }
 0x12f   : > { %v7861_v41 = vpop.permute.xlu0 %1261  ;;  %v7865_v29 = vpop.f32.mrf.mxu0 }
 0x130   : > { %9991 = vst [vmem:[#allocation112_spill] sm:$0xff] %v7865_v29  ;;  %1900 = vrot.lane.b32.xlu1 %v7853_v19, %s7056_s11  ;;  %1822 = vrot.lane.b32.xlu0 %v7865_v29, %s7055_s29 }
 0x131   : > { %v7880_v38 = vpop.f32.mrf.mxu0 }
 0x132   : > { %v7871_v34 = vpop.permute.xlu1 %1311  ;;  %9994 = vst [vmem:[#allocation115_spill] sm:$0xff] %v7880_v38 }
 0x133   : > { %9992 = vst [vmem:[#allocation113_spill] sm:$0xff] %v7871_v34  ;;  %v7873_v9 = vpop.permute.xlu0 %1309  ;;  %v7895_v15 = vpop.f32.mrf.mxu0 }
 0x134   : > { %1255 = vrot.lane.b32.xlu1 %v7878_v22, %s7051_s13  ;;  %1902 = vrot.lane.b32.xlu0 %v7865_v29, %s7056_s11  ;;  %9998 = vst [vmem:[#allocation119_spill] sm:$0xff] %v7895_v15 }
 0x136   : > { %v7886_v18 = vpop.permute.xlu1 %1359 }
 0x137   : > { %9995 = vst [vmem:[#allocation116_spill] sm:$0xff] %v7886_v18  ;;  %v7888_v19 = vpop.permute.xlu0 %1357 }
 0x138   : > { %9996 = vst [vmem:[#allocation117_spill] sm:$0xff] %v7888_v19  ;;  %1253 = vrot.lane.b32.xlu0 %v7893_v37, %s7051_s13  ;;  %1824 = vrot.lane.b32.xlu1 %v7895_v15, %s7055_s29  ;;  %v1217_v19 = vld [vmem:[%s9827_s5] sm:$0xff] }
 0x13a   : > { %v7901_v38 = vpop.permute.xlu1 %775 }
 0x13b   : > { %v7903_v29 = vpop.permute.xlu0 %773 }
 0x13c   : > { %1301 = vrot.lane.b32.xlu0 %v7893_v37, %s7053_s18  ;;  %1904 = vrot.lane.b32.xlu1 %v7895_v15, %s7056_s11 }
 0x13e   : > { %v7909_v56 = vpop.permute.xlu1 %1018 }
 0x13f   : > { %v7911_v17 = vpop.permute.xlu0 %1016 }
 0x140   : > { %1798 = vrot.lane.b32.xlu0 %v7731_v20, %s7055_s29  ;;  %1303 = vrot.lane.b32.xlu1 %v7878_v22, %s7053_s18 }
 0x142   : > { %v7917_v58 = vpop.permute.xlu1 %823 }
 0x143   : > { %v7919_v52 = vpop.permute.xlu0 %821 }
 0x144   : > { %1349 = vrot.lane.b32.xlu0 %v7893_v37, %s7054_s16  ;;  %1800 = vrot.lane.b32.xlu1 %v7739_v53, %s7055_s29  ;;  %v733_v37 = vld [vmem:[%s9825_s3] sm:$0xff] }
 0x146   : > { %v7925_v15 = vpop.permute.xlu1 %1066 }
 0x147   : > { %v7927_v28 = vpop.permute.xlu0 %1064 }
 0x148   : > { %1878 = vrot.lane.b32.xlu0 %v7731_v20, %s7056_s11  ;;  %1351 = vrot.lane.b32.xlu1 %v7878_v22, %s7054_s16  ;;  %v976_v20 = vld [vmem:[%s9826_s4] sm:$0xff]  ;;  %v734_v22 = vld [vmem:[%s9825_s3 + $0x8] sm:$0xff] }
 0x14a   : > { %v7933_v33 = vpop.permute.xlu1 %871 }
 0x14b   : > { %v7935_v44 = vpop.permute.xlu0 %869 }
 0x14c   : > { %765 = vrot.lane.b32.xlu0 %v733_v37, %s7051_s13  ;;  %1880 = vrot.lane.b32.xlu1 %v7739_v53, %s7056_s11  ;;  %v977_v53 = vld [vmem:[%s9826_s4 + $0x8] sm:$0xff] }
 0x14e   : > { %v7943_v48 = vpop.permute.xlu1 %1114 }
 0x14f   : > { %v7945_v18 = vpop.permute.xlu0 %1112 }
 0x150   : > { %1008 = vrot.lane.b32.xlu0 %v976_v20, %s7051_s13  ;;  %767 = vrot.lane.b32.xlu1 %v734_v22, %s7051_s13 }
 0x152   : > { %v7955_v59 = vpop.permute.xlu1 %1259 }
 0x153   : > { %v1258_v8 = vpop.permute.xlu0 %1257 }
 0x154   : > { %813 = vrot.lane.b32.xlu0 %v733_v37, %s7053_s18  ;;  %1010 = vrot.lane.b32.xlu1 %v977_v53, %s7051_s13 }
 0x156   : > { %v7962_v43 = vpop.permute.xlu1 %1307 }
 0x157   : > { %v7964_v2 = vpop.permute.xlu0 %1305 }
 0x158   : > { %1056 = vrot.lane.b32.xlu0 %v976_v20, %s7053_s18  ;;  %815 = vrot.lane.b32.xlu1 %v734_v22, %s7053_s18 }
 0x15a   : > { %v7968_v55 = vpop.permute.xlu1 %1355 }
 0x15b   : > { %v7970_v13 = vpop.permute.xlu0 %1353 }
 0x15c   : > { %861 = vrot.lane.b32.xlu0 %v733_v37, %s7054_s16  ;;  %1058 = vrot.lane.b32.xlu1 %v977_v53, %s7053_s18 }
 0x15e   : > { %v7974_v46 = vpop.permute.xlu1 %771 }
 0x15f   : > { %9999 = vst [vmem:[#allocation120_spill] sm:$0xff] %v7974_v46  ;;  %v7976_v50 = vpop.permute.xlu0 %769 }
 0x160   : > { %10000 = vst [vmem:[#allocation121_spill] sm:$0xff] %v7976_v50  ;;  %1104 = vrot.lane.b32.xlu0 %v976_v20, %s7054_s16  ;;  %863 = vrot.lane.b32.xlu1 %v734_v22, %s7054_s16  ;;  %v1218_v20 = vld [vmem:[%s9827_s5 + $0x8] sm:$0xff] }
 0x162   : > { %v7985_v45 = vpop.permute.xlu1 %1014 }
 0x163   : > { %v7980_v21 = vpop.permute.xlu0 %1012  ;;  %10002 = vst [vmem:[#allocation123_spill] sm:$0xff] %v7985_v45 }
 0x164   : > { %10001 = vst [vmem:[#allocation122_spill] sm:$0xff] %v7980_v21  ;;  %1249 = vrot.lane.b32.xlu0 %v1217_v19, %s7051_s13  ;;  %1106 = vrot.lane.b32.xlu1 %v977_v53, %s7054_s16  ;;  %v6155_v53 = vpop.f32.mrf.mxu1 }
 0x166   : > { %v7994_v50 = vpop.permute.xlu1 %819 }
 0x167   : > { %v7989_v37 = vpop.permute.xlu0 %817  ;;  %10004 = vst [vmem:[#allocation125_spill] sm:$0xff] %v7994_v50 }
 0x168   : > { %10003 = vst [vmem:[#allocation124_spill] sm:$0xff] %v7989_v37  ;;  %1297 = vrot.lane.b32.xlu0 %v1217_v19, %s7053_s18  ;;  %1251 = vrot.lane.b32.xlu1 %v1218_v20, %s7051_s13  ;;  %v622_v37 = vpop.f32.mrf.mxu1 }
 0x16a   : > { %v8003_v21 = vpop.permute.xlu1 %1062  ;;  %v6156_v50 = vpop.f32.mrf.mxu1 }
 0x16b   : > { %v7998_v22 = vpop.permute.xlu0 %1060  ;;  %10006 = vst [vmem:[#allocation127_spill] sm:$0xff] %v8003_v21  ;;  %v5924_v46 = vpack.c.bf16 %v6156_v50, %v6155_v53  ;;  %v915_v50 = vsel %vm909_vm0, %v7573_v31, %v7901_v38  ;;  %v1156_v31 = vsel %vm909_vm0, %v7597_v36, %v7911_v17  ;;  %v1397_v38 = vsel %vm909_vm0, %v7647_v4, %v1258_v8 }
 0x16c   : > { %10005 = vst [vmem:[#allocation126_spill] sm:$0xff] %v7998_v22  ;;  %1794 = vrot.lane.b32.xlu0 %v7711_v49, %s7055_s29  ;;  %1299 = vrot.lane.b32.xlu1 %v1218_v20, %s7053_s18  ;;  %v625_v47 = vpop.f32.mrf.mxu1  ;;  %v1398_v17 = vsel %vm909_vm0, %v7642_v1, %v7955_v59  ;;  %v1413_v36 = vsel %vm926_vm1, %v1397_v38, %v7964_v2 }
 0x16d   : > { %5970 = vst [vmem:[#allocation6 + $0x8] sm:$0xff] %v5924_v46   ;;  %v5919_v21 = vpack.c.bf16 %v625_v47, %v622_v37  ;;  %v914_v46 = vsel %vm909_vm0, %v7578_v32, %v7903_v29  ;;  %v1157_v47 = vsel %vm909_vm0, %v7592_v35, %v7909_v56  ;;  %v932_v29 = vsel %vm926_vm1, %v915_v50, %v7917_v58 }
 0x16e   : > { %v8010_v22 = vpop.permute.xlu1 %867  ;;  %v6159_v34 = vpop.f32.mrf.mxu1  ;;  %v931_v56 = vsel %vm926_vm1, %v914_v46, %v7919_v52  ;;  %v1173_v35 = vsel %vm926_vm1, %v1157_v47, %v7925_v15  ;;  %v1172_v58 = vsel %vm926_vm1, %v1156_v31, %v7927_v28  ;;  %v8056_v15 = vsel %vm943_vm2, %v932_v29, %v7933_v33 }
 0x16f   : > { %v8005_v45 = vpop.permute.xlu0 %865  ;;  %5920 = vst [vmem:[#allocation6] sm:$0xff] %v5919_v21   ;;  %v8060_v59 = vsel %vm943_vm2, %v931_v56, %v7935_v44  ;;  %v8064_v1 = vsel %vm943_vm2, %v1173_v35, %v7943_v48  ;;  %v8068_v28 = vsel %vm943_vm2, %v1172_v58, %v7945_v18  ;;  %v917_v53 = vsel %vm909_vm0, %v7459_v5, %v7787_v12  ;;  %v10007_v56 = vld [vmem:[#allocation108_spill] sm:$0xff] }
 0x170   : > { %1345 = vrot.lane.b32.xlu0 %v1217_v19, %s7054_s16  ;;  %1796 = vrot.lane.b32.xlu1 %v7721_v25, %s7055_s29  ;;  %v638_v19 = vpop.f32.mrf.mxu1  ;;  %v1414_v33 = vsel %vm926_vm1, %v1398_v17, %v7962_v43  ;;  %v916_v18 = vsel %vm909_vm0, %v7464_v6, %v7789_v54  ;;  %v1159_v50 = vsel %vm909_vm0, %v7480_v10, %v7799_v62  ;;  %v10008_v17 = vld [vmem:[#allocation113_spill] sm:$0xff] }
 0x171   : > { %v8085_v5 = vsel %vm943_vm2, %v1413_v36, %v7970_v13  ;;  %v1158_v43 = vsel %vm909_vm0, %v7485_v11, %v7801_v61  ;;  %v1783_v6 = vmul.f32 %v8056_v15, %v7757_v30  ;;  %v1782_v10 = vmul.f32 %v8060_v59, %v7747_v16 }
 0x172   : > { %v6160_v21 = vpop.f32.mrf.mxu1  ;;  %v8035_v37 = vpop.permute.xlu1 %1110  ;;  %v934_v54 = vsel %vm926_vm1, %v917_v53, %v7811_v51  ;;  %v1399_v62 = vsel %vm909_vm0, %v7542_v24, %v7861_v41  ;;  %v8106_v46 = vsel %vm943_vm2, %v1414_v33, %v7968_v55  ;;  %v933_v16 = vsel %vm926_vm1, %v916_v18, %v7813_v14  ;;  %v10012_v53 = vld [vmem:[#allocation86_spill] sm:$0xff]  ;;  %v10013_v33 = vld [vmem:[#allocation75_spill] sm:$0xff] }
 0x173   : > { %v8015_v42 = vpop.permute.xlu0 %1108  ;;  %v5934_v4 = vpack.c.bf16 %v6160_v21, %v6159_v34  ;;  %v1175_v51 = vsel %vm926_vm1, %v1159_v50, %v7823_v57  ;;  %v1400_v24 = vsel %vm909_vm0, %v7537_v23, %v7859_v0  ;;  %v1174_v41 = vsel %vm926_vm1, %v1158_v43, %v7825_v39  ;;  %v10016_v50 = vld [vmem:[#allocation93_spill] sm:$0xff] }
 0x174   : > { %1874 = vrot.lane.b32.xlu0 %v7711_v49, %s7056_s11  ;;  %1347 = vrot.lane.b32.xlu1 %v1218_v20, %s7054_s16  ;;  %v641_v32 = vpop.f32.mrf.mxu1  ;;  %v1415_v14 = vsel %vm926_vm1, %v1399_v62, %v7873_v9  ;;  %v8126_v0 = vsel %vm943_vm2, %v934_v54, %v7835_v60  ;;  %v8130_v23 = vsel %vm943_vm2, %v933_v16, %v7837_v40  ;;  %v10019_v62 = vld [vmem:[#allocation88_spill] sm:$0xff] }
 0x175   : > { %v5929_v52 = vpack.c.bf16 %v641_v32, %v638_v19  ;;  %5972 = vst [vmem:[#allocation6 + $0x18] sm:$0xff] %v5934_v4   ;;  %v8134_v32 = vsel %vm943_vm2, %v1175_v51, %v7847_v63  ;;  %v8138_v39 = vsel %vm943_vm2, %v1174_v41, %v10007_v56  ;;  %v1416_v58 = vsel %vm926_vm1, %v1400_v24, %v10008_v17  ;;  %v10023_v51 = vld [vmem:[#allocation13_spill] sm:$0xff]  ;;  %v10025_v56 = vld [vmem:[#allocation79_spill] sm:$0xff]  ;;  %v10027_v17 = vld [vmem:[#allocation24_spill] sm:$0xff] }
 0x176   : > { %v6163_v8 = vpop.f32.mrf.mxu1  ;;  %v1784_v43 = vmul.f32 %v8130_v23, %v10016_v50 }
 0x177   : > { %5971 = vst [vmem:[#allocation6 + $0x10] sm:$0xff] %v5929_v52   ;;  %v10009_v52 = vld [vmem:[#allocation74_spill] sm:$0xff] }
 0x178   : > { %1506 = vrot.lane.b32.xlu0 %v7707_v3, %s7055_s29  ;;  %1876 = vrot.lane.b32.xlu1 %v7721_v25, %s7056_s11  ;;  %v654_v48 = vpop.f32.mrf.mxu1 }
 0x17a   : > { %v1803_v20 = vpop.permute.xlu0 %1802  ;;  %v6164_v13 = vpop.f32.mrf.mxu1 }
 0x17b   : > { %v1846_v44 = vmul.f32 %v1803_v20, %v8068_v28  ;;  %v5944_v30 = vpack.c.bf16 %v6164_v13, %v6163_v8  ;;  %v10010_v8 = vld [vmem:[#allocation14_spill] sm:$0xff]  ;;  %v10018_v13 = vld [vmem:[#allocation12_spill] sm:$0xff] }
 0x17c   : > { %1510 = vrot.lane.b32.xlu0 %v7727_v27, %s7055_s29  ;;  %1508 = vrot.lane.b32.xlu1 %v7717_v26, %s7055_s29  ;;  %v657_v38 = vpop.f32.mrf.mxu1  ;;  %v1161_v63 = vsel %vm909_vm0, %v10010_v8, %v10009_v52 }
 0x17d   : > { %v1862_v47 = vadd.f32 %v1846_v44, %v1782_v10  ;;  %5974 = vst [vmem:[#allocation6 + $0x28] sm:$0xff] %v5944_v30   ;;  %v5939_v55 = vpack.c.bf16 %v657_v38, %v654_v48  ;;  %v10014_v44 = vld [vmem:[#allocation15_spill] sm:$0xff]  ;;  %v10015_v48 = vld [vmem:[#allocation97_spill] sm:$0xff]  ;;  %v10021_v30 = vld [vmem:[#allocation116_spill] sm:$0xff] }
 0x17e   : > { %v1883_v2 = vpop.permute.xlu0 %1882  ;;  %v1805_v34 = vpop.permute.xlu1 %1804  ;;  %v1785_v18 = vmul.f32 %v8126_v0, %v10015_v48  ;;  %v8171_v16 = vsel %vm943_vm2, %v1416_v58, %v10021_v30  ;;  %v10022_v38 = vld [vmem:[#allocation73_spill] sm:$0xff] }
 0x17f   : > { %v1847_v19 = vmul.f32 %v1805_v34, %v8064_v1  ;;  %v1926_v12 = vmul.f32 %v1883_v2, %v8085_v5  ;;  %v6167_v29 = vpop.f32.mrf.mxu1  ;;  %5973 = vst [vmem:[#allocation6 + $0x20] sm:$0xff] %v5939_v55   ;;  %v10011_v2 = vld [vmem:[#allocation117_spill] sm:$0xff]  ;;  %v918_v24 = vsel %vm909_vm0, %v10023_v51, %v10022_v38  ;;  %v10039_v38 = vld [vmem:[#allocation95_spill] sm:$0xff] }
 0x180   : > { %1586 = vrot.lane.b32.xlu0 %v7707_v3, %s7056_s11  ;;  %1512 = vrot.lane.b32.xlu1 %v7737_v7, %s7055_s29  ;;  %v8149_v34 = vsel %vm943_vm2, %v1415_v14, %v10011_v2 }
 0x181   : > { %v1863_v21 = vadd.f32 %v1847_v19, %v1783_v6  ;;  %v1942_v20 = vadd.f32 %v1926_v12, %v1862_v47  ;;  %v670_v4 = vpop.f32.mrf.mxu1  ;;  %v1160_v19 = vsel %vm909_vm0, %v10014_v44, %v10013_v33  ;;  %v10017_v12 = vld [vmem:[#allocation72_spill] sm:$0xff] }
 0x182   : > { %v1885_v61 = vpop.permute.xlu1 %1884  ;;  %v1807_v11 = vpop.permute.xlu0 %1806  ;;  %v919_v54 = vsel %vm909_vm0, %v10018_v13, %v10017_v12  ;;  %v10031_v33 = vld [vmem:[#allocation76_spill] sm:$0xff] }
 0x183   : > { %v1927_v31 = vmul.f32 %v1885_v61, %v8106_v46  ;;  %v1848_v36 = vmul.f32 %v1807_v11, %v8138_v39  ;;  %v6168_v10 = vpop.f32.mrf.mxu1  ;;  %v10020_v61 = vld [vmem:[#allocation25_spill] sm:$0xff]  ;;  %v936_v44 = vsel %vm926_vm1, %v919_v54, %v10031_v33  ;;  %v10048_v33 = vld [vmem:[#allocation94_spill] sm:$0xff] }
 0x184   : > { %1590 = vrot.lane.b32.xlu0 %v7727_v27, %s7056_s11  ;;  %1588 = vrot.lane.b32.xlu1 %v7717_v26, %s7056_s11  ;;  %v1401_v11 = vsel %vm909_vm0, %v10020_v61, %v10019_v62  ;;  %v10035_v62 = vld [vmem:[#allocation90_spill] sm:$0xff] }
 0x185   : > { %v1943_v57 = vadd.f32 %v1927_v31, %v1863_v21  ;;  %v5954_v31 = vpack.c.bf16 %v6168_v10, %v6167_v29  ;;  %v1864_v55 = vadd.f32 %v1848_v36, %v1784_v43  ;;  %v10028_v29 = vld [vmem:[#allocation92_spill] sm:$0xff]  ;;  %v673_v36 = vpop.f32.mrf.mxu1  ;;  %v10034_v43 = vld [vmem:[#allocation85_spill] sm:$0xff] }
 0x186   : > { %v1887_v9 = vpop.permute.xlu0 %1886  ;;  %v1809_v35 = vpop.permute.xlu1 %1808  ;;  %v5949_v2 = vpack.c.bf16 %v673_v36, %v670_v4  ;;  %v6963_v36 = vld [vmem:[%s9826_s4 + $0x50] sm:$0xff] }
 0x187   : > { %v5889_v60 = vpack.c.bf16 %v1943_v57, %v1942_v20  ;;  %v1849_v40 = vmul.f32 %v1809_v35, %v8134_v32  ;;  %v1928_v6 = vmul.f32 %v1887_v9, %v8149_v34  ;;  %v10024_v20 = vld [vmem:[#allocation78_spill] sm:$0xff]  ;;  %v1176_v9 = vsel %vm926_vm1, %v1160_v19, %v10025_v56  ;;  %v10026_v35 = vld [vmem:[#allocation87_spill] sm:$0xff]  ;;  %5976 = vst [vmem:[#allocation6 + $0x38] sm:$0xff] %v5954_v31   ;;  %v10032_v19 = vld [vmem:[#allocation77_spill] sm:$0xff] }
 0x188   : > { %1514 = vrot.lane.b32.xlu0 %v10012_v53, %s7055_s29  ;;  %1592 = vrot.lane.b32.xlu1 %v7737_v7, %s7056_s11  ;;  %v1177_v57 = vsel %vm926_vm1, %v1161_v63, %v10024_v20  ;;  %v1402_v58 = vsel %vm909_vm0, %v10027_v17, %v10026_v35  ;;  %v935_v48 = vsel %vm926_vm1, %v918_v24, %v10032_v19  ;;  %v6961_v24 = vld [vmem:[%s9826_s4 + $0x58] sm:$0xff]  ;;  %v10045_v17 = vld [vmem:[#allocation54_spill] sm:$0xff] }
 0x189   : > { %5964 = vst [vmem:[#allocation5 + $0x10] sm:$0xff] %v5889_v60   ;;  %v1865_v41 = vadd.f32 %v1849_v40, %v1785_v18  ;;  %v10029_v60 = vld [vmem:[#allocation89_spill] sm:$0xff]  ;;  %v10030_v40 = vld [vmem:[#allocation91_spill] sm:$0xff]  ;;  %v1944_v8 = vadd.f32 %v1928_v6, %v1864_v55  ;;  %v10033_v18 = vld [vmem:[#allocation84_spill] sm:$0xff]  ;;  %v8200_v10 = vsel %vm943_vm2, %v1176_v9, %v10034_v43  ;;  %v1418_v6 = vsel %vm926_vm1, %v1402_v58, %v10035_v62 }
 0x18a   : > { %v1889_v47 = vpop.permute.xlu1 %1888  ;;  %v1811_v21 = vpop.permute.xlu0 %1810  ;;  %v1417_v52 = vsel %vm926_vm1, %v1401_v11, %v10030_v40  ;;  %v8196_v50 = vsel %vm943_vm2, %v1177_v57, %v10033_v18  ;;  %5975 = vst [vmem:[#allocation6 + $0x30] sm:$0xff] %v5949_v2   ;;  %v10036_v11 = vld [vmem:[#allocation81_spill] sm:$0xff]  ;;  %v10042_v55 = vld [vmem:[#allocation56_spill] sm:$0xff]  ;;  %v6962_v35 = vld [vmem:[%s9825_s3 + $0x58] sm:$0xff] }
 0x18b   : > { %v1929_v14 = vmul.f32 %v1889_v47, %v8171_v16  ;;  %v1850_v61 = vmul.f32 %v1811_v21, %v8200_v10  ;;  %v8208_v30 = vsel %vm943_vm2, %v936_v44, %v10036_v11  ;;  %v10038_v47 = vld [vmem:[#allocation82_spill] sm:$0xff]  ;;  %v8216_v51 = vsel %vm943_vm2, %v1417_v52, %v10039_v38  ;;  %v10041_v21 = vld [vmem:[#allocation96_spill] sm:$0xff]  ;;  %v10044_v57 = vld [vmem:[#allocation101_spill] sm:$0xff] }
 0x18c   : > { %1518 = vrot.lane.b32.xlu0 %v10028_v29, %s7055_s29  ;;  %1516 = vrot.lane.b32.xlu1 %v10029_v60, %s7055_s29  ;;  %10037 = vst [vmem:[#allocation108_spill] sm:$0xff] %v8208_v30  ;;  %v8212_v31 = vsel %vm943_vm2, %v935_v48, %v10038_v47  ;;  %10040 = vst [vmem:[#allocation113_spill] sm:$0xff] %v8216_v51  ;;  %v1787_v56 = vmul.f32 %v8208_v30, %v10044_v57  ;;  %v10046_v40 = vld [vmem:[#allocation57_spill] sm:$0xff]  ;;  %v6965_v18 = vld [vmem:[%s9825_s3 + $0x50] sm:$0xff] }
 0x18d   : > { %v1945_v63 = vadd.f32 %v1929_v14, %v1865_v41  ;;  %v1163_v41 = vsel %vm909_vm0, %v6961_v24, %v10042_v55  ;;  %v10043_v14 = vld [vmem:[#allocation99_spill] sm:$0xff]  ;;  %v921_v58 = vsel %vm909_vm0, %v6962_v35, %v10045_v17  ;;  %v1162_v52 = vsel %vm909_vm0, %v6963_v36, %v10046_v40  ;;  %v10051_v47 = vld [vmem:[#allocation60_spill] sm:$0xff]  ;;  %v10052_v24 = vld [vmem:[#allocation66_spill] sm:$0xff] }
 0x18e   : > { %v1891_v12 = vpop.permute.xlu0 %1890  ;;  %v1813_v13 = vpop.permute.xlu1 %1812  ;;  %v1786_v20 = vmul.f32 %v8212_v31, %v10043_v14  ;;  %v8249_v44 = vsel %vm943_vm2, %v1418_v6, %v10048_v33  ;;  %v10050_v43 = vld [vmem:[#allocation55_spill] sm:$0xff]  ;;  %v1179_v38 = vsel %vm926_vm1, %v1163_v41, %v10051_v47  ;;  %v10054_v14 = vld [vmem:[#allocation69_spill] sm:$0xff]  ;;  %v10057_v40 = vld [vmem:[#allocation64_spill] sm:$0xff] }
 0x18f   : > { %v5894_v4 = vpack.c.bf16 %v1945_v63, %v1944_v8  ;;  %v1851_v54 = vmul.f32 %v1813_v13, %v8196_v50  ;;  %v1930_v9 = vmul.f32 %v1891_v12, %v8216_v51  ;;  %v6964_v8 = vld [vmem:[%s9827_s5 + $0x50] sm:$0xff]  ;;  %v10047_v63 = vld [vmem:[#allocation67_spill] sm:$0xff]  ;;  %10049 = vst [vmem:[#allocation74_spill] sm:$0xff] %v8249_v44  ;;  %v920_v12 = vsel %vm909_vm0, %v6965_v18, %v10050_v43 }
 0x190   : > { %1594 = vrot.lane.b32.xlu0 %v10012_v53, %s7056_s11  ;;  %1520 = vrot.lane.b32.xlu1 %v10041_v21, %s7055_s29  ;;  %v1403_v2 = vsel %vm909_vm0, %v6964_v8, %v10047_v63  ;;  %v1866_v13 = vadd.f32 %v1850_v61, %v1786_v20  ;;  %v6604_v11 = vld [vmem:[#allocation6 + $0x38] sm:$0xff]   ;;  %v10053_v61 = vld [vmem:[#allocation61_spill] sm:$0xff]  ;;  %v8278_v8 = vsel %vm943_vm2, %v1179_v38, %v10057_v40 }
 0x191   : > { %5965 = vst [vmem:[#allocation5 + $0x18] sm:$0xff] %v5894_v4   ;;  %v1867_v62 = vadd.f32 %v1851_v54, %v1787_v56  ;;  %v6966_v6 = vld [vmem:[%s9827_s5 + $0x58] sm:$0xff]  ;;  %v1178_v54 = vsel %vm926_vm1, %v1162_v52, %v10053_v61  ;;  %v1419_v20 = vsel %vm926_vm1, %v1403_v2, %v10054_v14  ;;  %6201 = vmatprep.subr.bf16.mxu1 %v6604_v11  ;;  %v10055_v56 = vld [vmem:[#allocation58_spill] sm:$0xff]  ;;  %10058 = vst [vmem:[#allocation14_spill] sm:$0xff] %v8278_v8 }
 0x192   : > { %v1893_v19 = vpop.permute.xlu1 %1892  ;;  %v1815_v48 = vpop.permute.xlu0 %1814  ;;  %v1404_v55 = vsel %vm909_vm0, %v6966_v6, %v10052_v24  ;;  %v1946_v41 = vadd.f32 %v1930_v9, %v1866_v13  ;;  %v938_v35 = vsel %vm926_vm1, %v921_v58, %v10055_v56  ;;  %v10056_v17 = vld [vmem:[#allocation59_spill] sm:$0xff]  ;;  %v10059_v63 = vld [vmem:[#allocation65_spill] sm:$0xff]  ;;  %6202 = vmatpush3.bf16.msra.mxu1 %v6604_v11  ;;  %v6606_v9 = vld [vmem:[#allocation6 + $0x30] sm:$0xff]  }
 0x193   : > { %v1931_v4 = vmul.f32 %v1893_v19, %v8249_v44  ;;  %v937_v36 = vsel %vm926_vm1, %v920_v12, %v10056_v17  ;;  %v8282_v33 = vsel %vm943_vm2, %v1178_v54, %v10059_v63  ;;  %v10061_v2 = vld [vmem:[#allocation68_spill] sm:$0xff]  ;;  %v10062_v13 = vld [vmem:[#allocation62_spill] sm:$0xff]  ;;  %v10066_v38 = vld [vmem:[#allocation71_spill] sm:$0xff]  ;;  %6203 = vmatprep.subr.bf16.mxu1 %v6606_v9 }
 0x194   : > { %1598 = vrot.lane.b32.xlu0 %v10028_v29, %s7056_s11  ;;  %1596 = vrot.lane.b32.xlu1 %v10029_v60, %s7056_s11  ;;  %10060 = vst [vmem:[#allocation117_spill] sm:$0xff] %v8282_v33  ;;  %v1420_v18 = vsel %vm926_vm1, %v1404_v55, %v10061_v2  ;;  %v1852_v58 = vmul.f32 %v1815_v48, %v8282_v33  ;;  %v10068_v6 = vld [vmem:[#allocation98_spill] sm:$0xff]  ;;  %v6967_v48 = vld [vmem:[%s9826_s4 + $0x68] sm:$0xff]  ;;  %v10070_v61 = vld [vmem:[#allocation103_spill] sm:$0xff] }
 0x195   : > { %v1947_v57 = vadd.f32 %v1931_v4, %v1867_v62  ;;  %v8290_v62 = vsel %vm943_vm2, %v938_v35, %v10062_v13  ;;  %v10064_v4 = vld [vmem:[#allocation63_spill] sm:$0xff]  ;;  %v8298_v11 = vsel %vm943_vm2, %v1419_v20, %v10066_v38  ;;  %v10069_v24 = vld [vmem:[#allocation38_spill] sm:$0xff]  ;;  %v10071_v14 = vld [vmem:[#allocation105_spill] sm:$0xff] }
 0x196   : > { %v1895_v52 = vpop.permute.xlu0 %1894  ;;  %v1817_v19 = vpop.permute.xlu1 %1816  ;;  %10063 = vst [vmem:[#allocation86_spill] sm:$0xff] %v8290_v62  ;;  %v8294_v47 = vsel %vm943_vm2, %v937_v36, %v10064_v4  ;;  %10067 = vst [vmem:[#allocation15_spill] sm:$0xff] %v8298_v11  ;;  %v1165_v55 = vsel %vm909_vm0, %v6967_v48, %v10069_v24  ;;  %v1789_v20 = vmul.f32 %v8290_v62, %v10071_v14  ;;  %v10072_v56 = vld [vmem:[#allocation36_spill] sm:$0xff]  ;;  %v10073_v36 = vld [vmem:[#allocation39_spill] sm:$0xff]  ;;  %6204 = vmatpush3.bf16.msra.mxu1 %v6606_v9 }
 0x197   : > { %v5899_v43 = vpack.c.bf16 %v1947_v57, %v1946_v41  ;;  %v1853_v12 = vmul.f32 %v1817_v19, %v8278_v8  ;;  %10065 = vst [vmem:[#allocation75_spill] sm:$0xff] %v8294_v47  ;;  %v1788_v54 = vmul.f32 %v8294_v47, %v10070_v61  ;;  %v1932_v41 = vmul.f32 %v1895_v52, %v8298_v11  ;;  %v6968_v57 = vld [vmem:[%s9825_s3 + $0x68] sm:$0xff]  ;;  %v6969_v17 = vld [vmem:[%s9826_s4 + $0x60] sm:$0xff]  ;;  %v10075_v2 = vld [vmem:[#allocation70_spill] sm:$0xff] }
 0x198   : > { %1522 = vrot.lane.b32.xlu0 %v10068_v6, %s7055_s29  ;;  %1600 = vrot.lane.b32.xlu1 %v10041_v21, %s7056_s11  ;;  %v923_v35 = vsel %vm909_vm0, %v6968_v57, %v10072_v56  ;;  %v1164_v40 = vsel %vm909_vm0, %v6969_v17, %v10073_v36  ;;  %v6970_v63 = vld [vmem:[%s9827_s5 + $0x60] sm:$0xff]  ;;  %v10074_v52 = vld [vmem:[#allocation49_spill] sm:$0xff]  ;;  %v10078_v17 = vld [vmem:[#allocation42_spill] sm:$0xff] }
 0x199   : > { %5966 = vst [vmem:[#allocation5 + $0x20] sm:$0xff] %v5899_v43   ;;  %v1405_v19 = vsel %vm909_vm0, %v6970_v63, %v10074_v52  ;;  %v8331_v43 = vsel %vm943_vm2, %v1420_v18, %v10075_v2  ;;  %v6608_v38 = vld [vmem:[#allocation6 + $0x28] sm:$0xff]   ;;  %v6971_v48 = vld [vmem:[%s9825_s3 + $0x60] sm:$0xff]  ;;  %v1868_v14 = vadd.f32 %v1852_v58, %v1788_v54  ;;  %v1869_v57 = vadd.f32 %v1853_v12, %v1789_v20  ;;  %v10080_v52 = vld [vmem:[#allocation102_spill] sm:$0xff] }
 0x19a   : > { %10076 = vst [vmem:[#allocation97_spill] sm:$0xff] %v8331_v43  ;;  %v1897_v13 = vpop.permute.xlu1 %1896  ;;  %v1819_v4 = vpop.permute.xlu0 %1818  ;;  %v10077_v24 = vld [vmem:[#allocation37_spill] sm:$0xff]  ;;  %v1181_v36 = vsel %vm926_vm1, %v1165_v55, %v10078_v17  ;;  %v10079_v9 = vld [vmem:[#allocation48_spill] sm:$0xff]  ;;  %v10082_v58 = vld [vmem:[#allocation43_spill] sm:$0xff]  ;;  %6205 = vmatprep.subr.bf16.mxu1 %v6608_v38 }
 0x19b   : > { %v922_v61 = vsel %vm909_vm0, %v6971_v48, %v10077_v24  ;;  %v1933_v56 = vmul.f32 %v1897_v13, %v8331_v43  ;;  %v6972_v18 = vld [vmem:[%s9827_s5 + $0x68] sm:$0xff]  ;;  %v10081_v2 = vld [vmem:[#allocation100_spill] sm:$0xff]  ;;  %v1180_v12 = vsel %vm926_vm1, %v1164_v40, %v10082_v58  ;;  %v10083_v54 = vld [vmem:[#allocation51_spill] sm:$0xff]  ;;  %v1948_v55 = vadd.f32 %v1932_v41, %v1868_v14  ;;  %6206 = vmatpush3.bf16.msra.mxu1 %v6608_v38 }
 0x19c   : > { %v1406_v63 = vsel %vm909_vm0, %v6972_v18, %v10079_v9  ;;  %1526 = vrot.lane.b32.xlu0 %v10080_v52, %s7055_s29  ;;  %1524 = vrot.lane.b32.xlu1 %v10081_v2, %s7055_s29  ;;  %v1421_v20 = vsel %vm926_vm1, %v1405_v19, %v10083_v54  ;;  %v10084_v48 = vld [vmem:[#allocation40_spill] sm:$0xff]  ;;  %v10085_v17 = vld [vmem:[#allocation41_spill] sm:$0xff]  ;;  %v10086_v9 = vld [vmem:[#allocation46_spill] sm:$0xff] }
 0x19d   : > { %v1949_v13 = vadd.f32 %v1933_v56, %v1869_v57  ;;  %v940_v24 = vsel %vm926_vm1, %v923_v35, %v10084_v48  ;;  %v939_v18 = vsel %vm926_vm1, %v922_v61, %v10085_v17  ;;  %v8360_v43 = vsel %vm943_vm2, %v1181_v36, %v10086_v9  ;;  %v10088_v11 = vld [vmem:[#allocation47_spill] sm:$0xff]  ;;  %v6609_v41 = vld [vmem:[#allocation6 + $0x20] sm:$0xff]   ;;  %v10090_v19 = vld [vmem:[#allocation50_spill] sm:$0xff] }
 0x19e   : > { %10087 = vst [vmem:[#allocation93_spill] sm:$0xff] %v8360_v43  ;;  %v8364_v62 = vsel %vm943_vm2, %v1180_v12, %v10088_v11  ;;  %v1899_v40 = vpop.permute.xlu0 %1898  ;;  %v1821_v58 = vpop.permute.xlu1 %1820  ;;  %v1422_v14 = vsel %vm926_vm1, %v1406_v63, %v10090_v19  ;;  %v10091_v56 = vld [vmem:[#allocation44_spill] sm:$0xff]  ;;  %v10093_v54 = vld [vmem:[#allocation45_spill] sm:$0xff]  ;;  %6207 = vmatprep.subr.bf16.mxu1 %v6609_v41 }
 0x19f   : > { %10089 = vst [vmem:[#allocation72_spill] sm:$0xff] %v8364_v62  ;;  %v5904_v57 = vpack.c.bf16 %v1949_v13, %v1948_v55  ;;  %v1854_v35 = vmul.f32 %v1819_v4, %v8364_v62  ;;  %v1855_v61 = vmul.f32 %v1821_v58, %v8360_v43  ;;  %v8372_v36 = vsel %vm943_vm2, %v940_v24, %v10091_v56  ;;  %v10095_v12 = vld [vmem:[#allocation53_spill] sm:$0xff]  ;;  %v10097_v63 = vld [vmem:[#allocation104_spill] sm:$0xff]  ;;  %v10098_v4 = vld [vmem:[#allocation107_spill] sm:$0xff] }
 0x1a0   : > { %10092 = vst [vmem:[#allocation12_spill] sm:$0xff] %v8372_v36  ;;  %v8376_v11 = vsel %vm943_vm2, %v939_v18, %v10093_v54  ;;  %v8380_v38 = vsel %vm943_vm2, %v1421_v20, %v10095_v12  ;;  %1602 = vrot.lane.b32.xlu0 %v10068_v6, %s7056_s11  ;;  %1528 = vrot.lane.b32.xlu1 %v10097_v63, %s7055_s29  ;;  %v10099_v13 = vld [vmem:[#allocation110_spill] sm:$0xff]  ;;  %v10100_v17 = vld [vmem:[#allocation52_spill] sm:$0xff]  ;;  %v6610_v58 = vld [vmem:[#allocation6 + $0x18] sm:$0xff]  }
 0x1a1   : > { %10094 = vst [vmem:[#allocation88_spill] sm:$0xff] %v8376_v11  ;;  %10096 = vst [vmem:[#allocation25_spill] sm:$0xff] %v8380_v38  ;;  %v1790_v55 = vmul.f32 %v8376_v11, %v10098_v4  ;;  %v1791_v48 = vmul.f32 %v8372_v36, %v10099_v13  ;;  %v1934_v24 = vmul.f32 %v1899_v40, %v8380_v38  ;;  %6208 = vmatpush3.bf16.msra.mxu1 %v6609_v41  ;;  %v10102_v12 = vld [vmem:[#allocation18_spill] sm:$0xff]  ;;  %v10112_v38 = vld [vmem:[#allocation20_spill] sm:$0xff] }
 0x1a2   : > { %5967 = vst [vmem:[#allocation5 + $0x28] sm:$0xff] %v5904_v57   ;;  %v8393_v20 = vsel %vm943_vm2, %v1422_v14, %v10100_v17  ;;  %v1901_v18 = vpop.permute.xlu1 %1900  ;;  %v1823_v9 = vpop.permute.xlu0 %1822  ;;  %6209 = vmatprep.subr.bf16.mxu1 %v6610_v58  ;;  %v6973_v14 = vld [vmem:[%s9826_s4 + $0x78] sm:$0xff]  ;;  %v10115_v11 = vld [vmem:[#allocation29_spill] sm:$0xff]  ;;  %v6984_v47 = vld [vmem:[%s9826_s4] sm:$0xff] }
 0x1a3   : > { %10101 = vst [vmem:[#allocation116_spill] sm:$0xff] %v8393_v20  ;;  %v1870_v19 = vadd.f32 %v1854_v35, %v1790_v55  ;;  %v1871_v56 = vadd.f32 %v1855_v61, %v1791_v48  ;;  %v1935_v54 = vmul.f32 %v1901_v18, %v8393_v20  ;;  %v1167_v41 = vsel %vm909_vm0, %v6973_v14, %v10102_v12  ;;  %v6974_v35 = vld [vmem:[%s9827_s5 + $0x70] sm:$0xff]  ;;  %v10103_v61 = vld [vmem:[#allocation31_spill] sm:$0xff]  ;;  %v10106_v12 = vld [vmem:[#allocation17_spill] sm:$0xff] }
 0x1a4   : > { %1606 = vrot.lane.b32.xlu0 %v10080_v52, %s7056_s11  ;;  %1604 = vrot.lane.b32.xlu1 %v10081_v2, %s7056_s11  ;;  %v1407_v4 = vsel %vm909_vm0, %v6974_v35, %v10103_v61  ;;  %v6612_v48 = vld [vmem:[#allocation6 + $0x10] sm:$0xff]   ;;  %v10104_v17 = vld [vmem:[#allocation19_spill] sm:$0xff]  ;;  %v6986_v44 = vld [vmem:[%s9826_s4 + $0x8] sm:$0xff] }
 0x1a5   : > { %v1950_v40 = vadd.f32 %v1934_v24, %v1870_v19  ;;  %v1951_v57 = vadd.f32 %v1935_v54, %v1871_v56  ;;  %6210 = vmatpush3.bf16.msra.mxu1 %v6610_v58  ;;  %v6975_v24 = vld [vmem:[%s9825_s3 + $0x78] sm:$0xff]  ;;  %v6976_v56 = vld [vmem:[%s9826_s4 + $0x70] sm:$0xff]  ;;  %v10105_v54 = vld [vmem:[#allocation16_spill] sm:$0xff] }
 0x1a6   : > { %v8410_v55 = vpop.permute.xlu1 %1255  ;;  %v1903_v13 = vpop.permute.xlu0 %1902  ;;  %v925_v18 = vsel %vm909_vm0, %v6975_v24, %v10104_v17  ;;  %v1166_v14 = vsel %vm909_vm0, %v6976_v56, %v10105_v54  ;;  %v6977_v58 = vld [vmem:[%s9825_s3 + $0x70] sm:$0xff]  ;;  %v6978_v61 = vld [vmem:[%s9827_s5 + $0x78] sm:$0xff]  ;;  %6211 = vmatprep.subr.bf16.mxu1 %v6612_v48 }
 0x1a7   : > { %v5909_v19 = vpack.c.bf16 %v1951_v57, %v1950_v40  ;;  %v924_v35 = vsel %vm909_vm0, %v6977_v58, %v10106_v12  ;;  %v10107_v24 = vld [vmem:[#allocation30_spill] sm:$0xff]  ;;  %v10110_v54 = vld [vmem:[#allocation23_spill] sm:$0xff]  ;;  %v10111_v58 = vld [vmem:[#allocation33_spill] sm:$0xff] }
 0x1a8   : > { %v1408_v40 = vsel %vm909_vm0, %v6978_v61, %v10107_v24  ;;  %v10108_v57 = vld [vmem:[#allocation106_spill] sm:$0xff]  ;;  %1608 = vrot.lane.b32.xlu1 %v10097_v63, %s7056_s11  ;;  %v1182_v20 = vsel %vm926_vm1, %v1166_v14, %v10110_v54  ;;  %v1423_v12 = vsel %vm926_vm1, %v1407_v4, %v10111_v58  ;;  %v942_v61 = vsel %vm926_vm1, %v925_v18, %v10112_v38  ;;  %v10113_v24 = vld [vmem:[#allocation28_spill] sm:$0xff]  ;;  %v6614_v14 = vld [vmem:[#allocation6 + $0x8] sm:$0xff]  }
 0x1a9   : > { %1530 = vrot.lane.b32.xlu0 %v10108_v57, %s7055_s29  ;;  %v10109_v17 = vld [vmem:[#allocation22_spill] sm:$0xff]  ;;  %5968 = vst [vmem:[#allocation5 + $0x30] sm:$0xff] %v5909_v19   ;;  %v8450_v43 = vsel %vm943_vm2, %v1182_v20, %v10115_v11  ;;  %6212 = vmatpush3.bf16.msra.mxu1 %v6612_v48  ;;  %v10117_v54 = vld [vmem:[#allocation21_spill] sm:$0xff]  ;;  %v10118_v19 = vld [vmem:[#allocation32_spill] sm:$0xff] }
 0x1aa   : > { %v1183_v56 = vsel %vm926_vm1, %v1167_v41, %v10109_v17  ;;  %10116 = vst [vmem:[#allocation13_spill] sm:$0xff] %v8450_v43  ;;  %v1254_v41 = vpop.permute.xlu0 %1253  ;;  %v1825_v17 = vpop.permute.xlu1 %1824  ;;  %v941_v4 = vsel %vm926_vm1, %v924_v35, %v10117_v54  ;;  %v1424_v58 = vsel %vm926_vm1, %v1408_v40, %v10118_v19  ;;  %v1856_v38 = vmul.f32 %v1823_v9, %v8450_v43  ;;  %v10121_v11 = vld [vmem:[#allocation27_spill] sm:$0xff]  ;;  %v10126_v40 = vld [vmem:[#allocation109_spill] sm:$0xff]  ;;  %v10127_v9 = vld [vmem:[#allocation112_spill] sm:$0xff] }
 0x1ab   : > { %v8446_v36 = vsel %vm943_vm2, %v1183_v56, %v10113_v24  ;;  %v10119_v56 = vld [vmem:[#allocation26_spill] sm:$0xff]  ;;  %v8464_v20 = vsel %vm943_vm2, %v941_v4, %v10121_v11  ;;  %v10123_v48 = vld [vmem:[#allocation35_spill] sm:$0xff]  ;;  %6213 = vmatprep.subr.bf16.mxu1 %v6614_v14 }
 0x1ac   : > { %10114 = vst [vmem:[#allocation73_spill] sm:$0xff] %v8446_v36  ;;  %v1857_v18 = vmul.f32 %v1825_v17, %v8446_v36  ;;  %v8460_v24 = vsel %vm943_vm2, %v942_v61, %v10119_v56  ;;  %10122 = vst [vmem:[#allocation79_spill] sm:$0xff] %v8464_v20  ;;  %v8468_v62 = vsel %vm943_vm2, %v1423_v12, %v10123_v48  ;;  %v10125_v35 = vld [vmem:[#allocation111_spill] sm:$0xff]  ;;  %1532 = vrot.lane.b32.xlu1 %v10126_v40, %s7055_s29  ;;  %v10129_v4 = vld [vmem:[#allocation34_spill] sm:$0xff] }
 0x1ad   : > { %10120 = vst [vmem:[#allocation78_spill] sm:$0xff] %v8460_v24  ;;  %10124 = vst [vmem:[#allocation87_spill] sm:$0xff] %v8468_v62  ;;  %1534 = vrot.lane.b32.xlu0 %v10125_v35, %s7055_s29  ;;  %v1792_v17 = vmul.f32 %v8464_v20, %v10127_v9  ;;  %v10128_v54 = vld [vmem:[#allocation119_spill] sm:$0xff]  ;;  %v1936_v19 = vmul.f32 %v1903_v13, %v8468_v62  ;;  %v8481_v56 = vsel %vm943_vm2, %v1424_v58, %v10129_v4  ;;  %v6615_v48 = vld [vmem:[#allocation6] sm:$0xff]  }
 0x1ae   : > { %v1793_v61 = vmul.f32 %v8460_v24, %v10128_v54  ;;  %10130 = vst [vmem:[#allocation24_spill] sm:$0xff] %v8481_v56  ;;  %v1302_v12 = vpop.permute.xlu0 %1301  ;;  %v1905_v11 = vpop.permute.xlu1 %1904  ;;  %6214 = vmatpush3.bf16.msra.mxu1 %v6614_v14  ;;  %v10131_v9 = vld [vmem:[#allocation115_spill] sm:$0xff]  ;;  %v10140_v20 = vld [vmem:[#allocation126_spill] sm:$0xff] }
 0x1af   : > { %v1872_v36 = vadd.f32 %v1856_v38, %v1792_v17  ;;  %v1937_v63 = vmul.f32 %v1905_v11, %v8481_v56  ;;  %6215 = vmatprep.subr.bf16.mxu1 %v6615_v48  ;;  %v6979_v14 = vld [vmem:[%s9825_s3 + $0x18] sm:$0xff]  ;;  %v10132_v38 = vld [vmem:[#allocation120_spill] sm:$0xff]  ;;  %v6982_v11 = vld [vmem:[%s9826_s4 + $0x10] sm:$0xff] }
 0x1b0   : > { %v1873_v43 = vadd.f32 %v1857_v18, %v1793_v61  ;;  %1536 = vrot.lane.b32.xlu1 %v10131_v9, %s7055_s29  ;;  %v6981_v17 = vld [vmem:[%s9826_s4 + $0x18] sm:$0xff]  ;;  %v10138_v56 = vld [vmem:[#allocation124_spill] sm:$0xff]  ;;  %s9774_s29 = scalar_lea.hbm %s9828_s6, %s5835_s12 }
 0x1b1   : > { %1610 = vrot.lane.b32.xlu0 %v10108_v57, %s7056_s11  ;;  %v1952_v13 = vadd.f32 %v1936_v19, %v1872_v36  ;;  %v913_v36 = vsel %vm909_vm0, %v6979_v14, %v10132_v38  ;;  %v10134_v61 = vld [vmem:[#allocation123_spill] sm:$0xff]  ;;  %v10136_v14 = vld [vmem:[#allocation118_spill] sm:$0xff] }
 0x1b2   : > { %v1953_v54 = vadd.f32 %v1937_v63, %v1873_v43  ;;  %v1799_v62 = vpop.permute.xlu0 %1798  ;;  %v1304_v58 = vpop.permute.xlu1 %1303  ;;  %6216 = vmatpush3.bf16.msra.mxu1 %v6615_v48  ;;  %v6980_v43 = vld [vmem:[%s9825_s3 + $0x10] sm:$0xff]  ;;  %v10133_v63 = vld [vmem:[#allocation121_spill] sm:$0xff]  ;;  %v1155_v19 = vsel %vm909_vm0, %v6981_v17, %v10134_v61  ;;  %v1395_v38 = vsel %vm909_vm0, %v10136_v14, %v1254_v41  ;;  %v10139_v61 = vld [vmem:[#allocation127_spill] sm:$0xff] }
 0x1b3   : > { %v912_v18 = vsel %vm909_vm0, %v6980_v43, %v10133_v63  ;;  %v10135_v48 = vld [vmem:[#allocation122_spill] sm:$0xff]  ;;  %v10137_v43 = vld [vmem:[#allocation125_spill] sm:$0xff]  ;;  %v1171_v24 = vsel %vm926_vm1, %v1155_v19, %v10139_v61 }
 0x1b4   : > { %v5914_v4 = vpack.c.bf16 %v1953_v54, %v1952_v13  ;;  %1612 = vrot.lane.b32.xlu1 %v10126_v40, %s7056_s11  ;;  %v1154_v13 = vsel %vm909_vm0, %v6982_v11, %v10135_v48  ;;  %v930_v63 = vsel %vm926_vm1, %v913_v36, %v10137_v43  ;;  %v929_v17 = vsel %vm926_vm1, %v912_v18, %v10138_v56  ;;  %v10141_v14 = vld [vmem:[#allocation114_spill] sm:$0xff] }
 0x1b5   : > { %1614 = vrot.lane.b32.xlu0 %v10125_v35, %s7056_s11  ;;  %v1170_v11 = vsel %vm926_vm1, %v1154_v13, %v10140_v20  ;;  %v8526_v48 = vsel %vm943_vm2, %v930_v63, %v8010_v22  ;;  %v8530_v41 = vsel %vm943_vm2, %v929_v17, %v8005_v45  ;;  %v8534_v36 = vsel %vm943_vm2, %v1171_v24, %v8035_v37  ;;  %v10142_v24 = vld [vmem:[#allocation83_spill] sm:$0xff]  ;;  %v10143_v63 = vld [vmem:[#allocation80_spill] sm:$0xff]  ;;  %v6599_v40 = vld [vmem:[#allocation5 + $0x10] sm:$0xff]  }
 0x1b6   : > { %5969 = vst [vmem:[#allocation5 + $0x38] sm:$0xff] %v5914_v4   ;;  %v1350_v54 = vpop.permute.xlu0 %1349  ;;  %v1801_v4 = vpop.permute.xlu1 %1800  ;;  %v8538_v56 = vsel %vm943_vm2, %v1170_v11, %v8015_v42  ;;  %v1411_v20 = vsel %vm926_vm1, %v1395_v38, %v1302_v12  ;;  %v1396_v45 = vsel %vm909_vm0, %v10141_v14, %v8410_v55  ;;  %v1781_v42 = vmul.f32 %v8526_v48, %v10142_v24  ;;  %v6595_v24 = vld [vmem:[#allocation5 + $0x30] sm:$0xff]  }
 0x1b7   : > { %v1844_v13 = vmul.f32 %v1799_v62, %v8538_v56  ;;  %v1845_v22 = vmul.f32 %v1801_v4, %v8534_v36  ;;  %v8547_v43 = vsel %vm943_vm2, %v1411_v20, %v1350_v54  ;;  %v1780_v17 = vmul.f32 %v8530_v41, %v10143_v63 }
 0x1b8   : > { %1616 = vrot.lane.b32.xlu1 %v10131_v9, %s7056_s11  ;;  %v1412_v12 = vsel %vm926_vm1, %v1396_v45, %v1304_v58 }
 0x1b9   : > { %v1860_v54 = vadd.f32 %v1844_v13, %v1780_v17  ;;  %v1861_v11 = vadd.f32 %v1845_v22, %v1781_v42  ;;  %v2384_v13 = vsel %vm909_vm0, %v6595_v24, 0  ;;  %v6596_v22 = vld [vmem:[#allocation5 + $0x28] sm:$0xff]  }
 0x1ba   : > { %v1879_v18 = vpop.permute.xlu0 %1878  ;;  %v1352_v19 = vpop.permute.xlu1 %1351 }
 0x1bb   : > { %v1924_v62 = vmul.f32 %v1879_v18, %v8547_v43  ;;  %v8556_v4 = vsel %vm943_vm2, %v1412_v12, %v1352_v19 }
 0x1bd   : > { %v6593_v37 = vld [vmem:[#allocation5 + $0x38] sm:$0xff]   ;;  %v1940_v58 = vadd.f32 %v1924_v62, %v1860_v54  ;;  %v2381_v62 = vsel %vm909_vm0, %v6596_v22, 0  ;;  %v6597_v54 = vld [vmem:[#allocation5 + $0x20] sm:$0xff]  }
 0x1be   : > { %v6594_v38 = vld [vmem:[#allocation5 + $0x38] sm:$0xff]   ;;  %v766_v61 = vpop.permute.xlu0 %765  ;;  %v1881_v55 = vpop.permute.xlu1 %1880  ;;  %3038 = vrot.lane.b32.xlu1 %v6593_v37, %s7054_s16 }
 0x1bf   : > { %v1925_v20 = vmul.f32 %v1881_v55, %v8556_v4  ;;  %6473 = vmatprep.subr.msk.bf16.mxu0 %vm909_vm0, %v6594_v38  ;;  %v2387_v14 = vsel %vm909_vm0, %v6594_v38, 0 }
 0x1c0   : > { %6170 = vmatpush3.bf16.xpose.msra.mxu0 %v2387_v14 }
 0x1c1   : > { %v1941_v18 = vadd.f32 %v1925_v20, %v1861_v11  ;;  %6474 = vmatprep.subr.msk.bf16.mxu0 %vm909_vm0, %v6595_v24  ;;  %v2378_v24 = vsel %vm909_vm0, %v6597_v54, 0 }
 0x1c2   : > { %v1009_v19 = vpop.permute.xlu0 %1008  ;;  %v768_v45 = vpop.permute.xlu1 %767 }
 0x1c3   : > { %v5884_v63 = vpack.c.bf16 %v1941_v18, %v1940_v58  ;;  %v6598_v18 = vld [vmem:[#allocation5 + $0x18] sm:$0xff]   ;;  %v1152_v52 = vsel %vm909_vm0, %v6984_v47, %v1009_v19 }
 0x1c5   : > { %5963 = vst [vmem:[#allocation5 + $0x8] sm:$0xff] %v5884_v63  }
 0x1c6   : > { %v814_v12 = vpop.permute.xlu0 %813  ;;  %v1011_v37 = vpop.permute.xlu1 %1010 }
 0x1c7   : > { %v1153_v8 = vsel %vm909_vm0, %v6986_v44, %v1011_v37 }
 0x1c8   : > { %6172 = vmatpush3.bf16.xpose.msra.mxu0 %v2384_v13 }
 0x1c9   : > { %6475 = vmatprep.subr.msk.bf16.mxu0 %vm909_vm0, %v6596_v22  ;;  %v2375_v22 = vsel %vm909_vm0, %v6598_v18, 0 }
 0x1ca   : > { %v1057_v42 = vpop.permute.xlu0 %1056  ;;  %v816_v17 = vpop.permute.xlu1 %815 }
 0x1cb   : > { %v1168_v19 = vsel %vm926_vm1, %v1152_v52, %v1057_v42  ;;  %v2372_v52 = vsel %vm909_vm0, %v6599_v40, 0 }
 0x1cc   : > { %v6600_v42 = vld [vmem:[#allocation5 + $0x8] sm:$0xff]  }
 0x1ce   : > { %v862_v38 = vpop.permute.xlu0 %861  ;;  %v1059_v55 = vpop.permute.xlu1 %1058 }
 0x1d0   : > { %6174 = vmatpush3.bf16.xpose.msra.mxu0 %v2381_v62 }
 0x1d1   : > { %6476 = vmatprep.subr.msk.bf16.mxu0 %vm909_vm0, %v6597_v54  ;;  %v6983_v54 = vld [vmem:[%s9825_s3] sm:$0xff] }
 0x1d2   : > { %v1105_v11 = vpop.permute.xlu0 %1104  ;;  %v864_v20 = vpop.permute.xlu1 %863 }
 0x1d3   : > { %v1184_v51 = vsel %vm943_vm2, %v1168_v19, %v1105_v11 }
 0x1d6   : > { %v1250_v14 = vpop.permute.xlu0 %1249  ;;  %v1107_v58 = vpop.permute.xlu1 %1106 }
 0x1d8   : > { %6176 = vmatpush3.bf16.xpose.msra.mxu0 %v2378_v24  ;;  %v910_v24 = vsel %vm909_vm0, %v6983_v54, %v766_v61  ;;  %v6987_v61 = vld [vmem:[%s9827_s5] sm:$0xff] }
 0x1d9   : > { %6477 = vmatprep.subr.msk.bf16.mxu0 %vm909_vm0, %v6598_v18  ;;  %v6985_v18 = vld [vmem:[%s9825_s3 + $0x8] sm:$0xff]  ;;  %v1393_v54 = vsel %vm909_vm0, %v6987_v61, %v1250_v14  ;;  %v927_v47 = vsel %vm926_vm1, %v910_v24, %v814_v12 }
 0x1da   : > { %v1298_v63 = vpop.permute.xlu0 %1297  ;;  %v1252_v13 = vpop.permute.xlu1 %1251 }
 0x1db   : > { %v1409_v14 = vsel %vm926_vm1, %v1393_v54, %v1298_v63 }
 0x1de   : > { %v1795_v9 = vpop.permute.xlu0 %1794  ;;  %v1300_v35 = vpop.permute.xlu1 %1299 }
 0x1df   : > { %v1842_v61 = vmul.f32 %v1795_v9, %v1184_v51 }
 0x1e0   : > { %6178 = vmatpush3.bf16.xpose.msra.mxu0 %v2375_v22  ;;  %v911_v22 = vsel %vm909_vm0, %v6985_v18, %v768_v45  ;;  %v1169_v45 = vsel %vm926_vm1, %v1153_v8, %v1059_v55  ;;  %v944_v18 = vsel %vm943_vm2, %v927_v47, %v862_v38  ;;  %v6988_v8 = vld [vmem:[%s9827_s5 + $0x8] sm:$0xff] }
 0x1e1   : > { %6478 = vmatprep.subr.msk.bf16.mxu0 %vm909_vm0, %v6599_v40  ;;  %v928_v33 = vsel %vm926_vm1, %v911_v22, %v816_v17  ;;  %v1185_v37 = vsel %vm943_vm2, %v1169_v45, %v1107_v58  ;;  %v1394_v17 = vsel %vm909_vm0, %v6988_v8, %v1252_v13 }
 0x1e2   : > { %v1346_v62 = vpop.permute.xlu0 %1345  ;;  %v1797_v57 = vpop.permute.xlu1 %1796  ;;  %v945_v44 = vsel %vm943_vm2, %v928_v33, %v864_v20  ;;  %v1778_v33 = vmul.f32 %v944_v18, %v7711_v49  ;;  %v1410_v11 = vsel %vm926_vm1, %v1394_v17, %v1300_v35  ;;  %v2369_v49 = vsel %vm909_vm0, %v6600_v42, 0 }
 0x1e3   : > { %v1843_v12 = vmul.f32 %v1797_v57, %v1185_v37  ;;  %v1425_v38 = vsel %vm943_vm2, %v1409_v14, %v1346_v62  ;;  %v1779_v55 = vmul.f32 %v945_v44, %v7721_v25  ;;  %v1491_v45 = vmul.f32 %v945_v44, %v7717_v26 }
 0x1e4   : > { %v1858_v58 = vadd.f32 %v1842_v61, %v1778_v33 }
 0x1e5   : > { %v1859_v63 = vadd.f32 %v1843_v12, %v1779_v55 }
 0x1e6   : > { %v1875_v30 = vpop.permute.xlu0 %1874  ;;  %v1348_v2 = vpop.permute.xlu1 %1347 }
 0x1e7   : > { %v1922_v9 = vmul.f32 %v1875_v30, %v1425_v38  ;;  %v1426_v57 = vsel %vm943_vm2, %v1410_v11, %v1348_v2  ;;  %v1490_v2 = vmul.f32 %v944_v18, %v7707_v3 }
 0x1e8   : > { %6180 = vmatpush3.bf16.xpose.msra.mxu0 %v2372_v52 }
 0x1e9   : > { %6479 = vmatprep.subr.msk.bf16.mxu0 %vm909_vm0, %v6600_v42  ;;  %v1938_v13 = vadd.f32 %v1922_v9, %v1858_v58 }
 0x1ea   : > { %v1507_v40 = vpop.permute.xlu0 %1506  ;;  %v1877_v20 = vpop.permute.xlu1 %1876 }
 0x1eb   : > { %v1923_v24 = vmul.f32 %v1877_v20, %v1426_v57  ;;  %v1554_v25 = vmul.f32 %v1507_v40, %v1184_v51  ;;  %v1493_v51 = vmul.f32 %v8526_v48, %v7737_v7 }
 0x1ed   : > { %v1939_v22 = vadd.f32 %v1923_v24, %v1859_v63  ;;  %v1570_v61 = vadd.f32 %v1554_v25, %v1490_v2  ;;  %v1494_v24 = vmul.f32 %v8060_v59, %v10012_v53  ;;  %v1497_v59 = vmul.f32 %v8126_v0, %v10041_v21 }
 0x1ee   : > { %v1511_v62 = vpop.permute.xlu0 %1510  ;;  %v1509_v54 = vpop.permute.xlu1 %1508 }
 0x1ef   : > { %v5879_v47 = vpack.c.bf16 %v1939_v22, %v1938_v13  ;;  %v1555_v19 = vmul.f32 %v1509_v54, %v1185_v37  ;;  %v1556_v8 = vmul.f32 %v1511_v62, %v8538_v56  ;;  %v1492_v37 = vmul.f32 %v8530_v41, %v7727_v27 }
 0x1f0   : > { %6182 = vmatpush3.bf16.xpose.msra.mxu0 %v2369_v49 }
 0x1f1   : > { %5880 = vst [vmem:[#allocation5] sm:$0xff] %v5879_v47   ;;  %v1571_v17 = vadd.f32 %v1555_v19, %v1491_v45  ;;  %v1572_v11 = vadd.f32 %v1556_v8, %v1492_v37 }
 0x1f2   : > { %v1587_v30 = vpop.permute.xlu0 %1586  ;;  %v1513_v35 = vpop.permute.xlu1 %1512 }
 0x1f3   : > { %v1634_v14 = vmul.f32 %v1587_v30, %v1425_v38  ;;  %v1557_v33 = vmul.f32 %v1513_v35, %v8534_v36 }
 0x1f5   : > { %v1650_v3 = vadd.f32 %v1634_v14, %v1570_v61  ;;  %v1573_v36 = vadd.f32 %v1557_v33, %v1493_v51  ;;  %v10145_v33 = vld [vmem:[#allocation108_spill] sm:$0xff] }
 0x1f6   : > { %v1591_v12 = vpop.permute.xlu0 %1590  ;;  %v1589_v52 = vpop.permute.xlu1 %1588 }
 0x1f7   : > { %v1635_v42 = vmul.f32 %v1589_v52, %v1426_v57  ;;  %v1636_v26 = vmul.f32 %v1591_v12, %v8547_v43  ;;  %v1498_v52 = vmul.f32 %v8212_v31, %v10068_v6  ;;  %v10151_v31 = vld [vmem:[#allocation75_spill] sm:$0xff] }
 0x1f8   : > { %v6601_v55 = vld [vmem:[#allocation5] sm:$0xff]  }
 0x1f9   : > { %v1651_v18 = vadd.f32 %v1635_v42, %v1571_v17  ;;  %6480 = vmatprep.subr.msk.bf16.mxu0 %vm909_vm0, %v6601_v55  ;;  %v2366_v56 = vsel %vm909_vm0, %v6601_v55, 0  ;;  %v1652_v7 = vadd.f32 %v1636_v26, %v1572_v11  ;;  %v10144_v17 = vld [vmem:[#allocation100_spill] sm:$0xff]  ;;  %v10146_v42 = vld [vmem:[#allocation113_spill] sm:$0xff]  ;;  %v10150_v11 = vld [vmem:[#allocation102_spill] sm:$0xff] }
 0x1fa   : > { %v1515_v44 = vpop.permute.xlu0 %1514  ;;  %v1593_v38 = vpop.permute.xlu1 %1592  ;;  %6184 = vmatpush3.bf16.xpose.msra.mxu0 %v2366_v56  ;;  %v10147_v26 = vld [vmem:[#allocation117_spill] sm:$0xff]  ;;  %v1500_v6 = vmul.f32 %v10151_v31, %v10150_v11 }
 0x1fb   : > { %v5839_v9 = vpack.c.bf16 %v1651_v18, %v1650_v3  ;;  %v1637_v57 = vmul.f32 %v1593_v38, %v8556_v4  ;;  %v1558_v43 = vmul.f32 %v1515_v44, %v8068_v28  ;;  %v1495_v4 = vmul.f32 %v8056_v15, %v10029_v60  ;;  %v10148_v44 = vld [vmem:[#allocation14_spill] sm:$0xff] }
 0x1fc   : > { %v1496_v15 = vmul.f32 %v8130_v23, %v10028_v29 }
 0x1fd   : > { %5840 = vst [vmem:[#allocation4] sm:$0xff] %v5839_v9   ;;  %v1653_v48 = vadd.f32 %v1637_v57, %v1573_v36  ;;  %v1574_v62 = vadd.f32 %v1558_v43, %v1494_v24  ;;  %v10152_v9 = vld [vmem:[#allocation104_spill] sm:$0xff]  ;;  %v10153_v57 = vld [vmem:[#allocation86_spill] sm:$0xff] }
 0x1fe   : > { %v1519_v27 = vpop.permute.xlu0 %1518  ;;  %v1517_v41 = vpop.permute.xlu1 %1516 }
 0x1ff   : > { %v5844_v40 = vpack.c.bf16 %v1653_v48, %v1652_v7  ;;  %v1559_v63 = vmul.f32 %v1517_v41, %v8064_v1  ;;  %v1560_v28 = vmul.f32 %v1519_v27, %v8138_v39  ;;  %v1501_v7 = vmul.f32 %v10153_v57, %v10152_v9  ;;  %v10154_v27 = vld [vmem:[#allocation15_spill] sm:$0xff] }
 0x201   : > { %5956 = vst [vmem:[#allocation4 + $0x8] sm:$0xff] %v5844_v40   ;;  %v1575_v49 = vadd.f32 %v1559_v63, %v1495_v4  ;;  %v1576_v39 = vadd.f32 %v1560_v28, %v1496_v15 }
 0x202   : > { %v1595_v20 = vpop.permute.xlu0 %1594  ;;  %v1521_v58 = vpop.permute.xlu1 %1520 }
 0x203   : > { %v1638_v22 = vmul.f32 %v1595_v20, %v8085_v5  ;;  %v1561_v25 = vmul.f32 %v1521_v58, %v8134_v32 }
 0x204   : > { %v6602_v13 = vld [vmem:[#allocation4] sm:$0xff]  }
 0x205   : > { %6185 = vmatprep.mubr.msk.bf16.mxu0 %vm909_vm0, %v6602_v13  ;;  %v1654_v5 = vadd.f32 %v1638_v22, %v1574_v62  ;;  %v1577_v2 = vadd.f32 %v1561_v25, %v1497_v59  ;;  %v10155_v13 = vld [vmem:[#allocation97_spill] sm:$0xff] }
 0x206   : > { %v1599_v54 = vpop.permute.xlu0 %1598  ;;  %v1597_v47 = vpop.permute.xlu1 %1596 }
 0x207   : > { %v1639_v1 = vmul.f32 %v1597_v47, %v8106_v46  ;;  %v1640_v60 = vmul.f32 %v1599_v54, %v8149_v34 }
 0x208   : > { %v6603_v53 = vld [vmem:[#allocation4 + $0x8] sm:$0xff]  }
 0x209   : > { %v1655_v30 = vadd.f32 %v1639_v1, %v1575_v49  ;;  %6186 = vmatmul.mubr.msk.bf16.vlgmr.msra.gmra.mxu0 %vm909_vm0, %v6603_v53  ;;  %v1656_v45 = vadd.f32 %v1640_v60, %v1576_v39  ;;  %v10156_v49 = vld [vmem:[#allocation72_spill] sm:$0xff]  ;;  %v10157_v53 = vld [vmem:[#allocation93_spill] sm:$0xff] }
 0x20a   : > { %v1523_v35 = vpop.permute.xlu0 %1522  ;;  %v1601_v19 = vpop.permute.xlu1 %1600  ;;  %v10159_v60 = vld [vmem:[#allocation88_spill] sm:$0xff] }
 0x20b   : > { %v5849_v32 = vpack.c.bf16 %v1655_v30, %v1654_v5  ;;  %v1641_v46 = vmul.f32 %v1601_v19, %v8171_v16  ;;  %v1562_v23 = vmul.f32 %v1523_v35, %v8200_v10  ;;  %v1499_v16 = vmul.f32 %v10145_v33, %v10144_v17  ;;  %v10158_v5 = vld [vmem:[#allocation106_spill] sm:$0xff]  ;;  %v10160_v19 = vld [vmem:[#allocation109_spill] sm:$0xff]  ;;  %v10161_v39 = vld [vmem:[#allocation12_spill] sm:$0xff] }
 0x20c   : > { %v1502_v30 = vmul.f32 %v10159_v60, %v10158_v5  ;;  %v10167_v17 = vld [vmem:[#allocation79_spill] sm:$0xff] }
 0x20d   : > { %5957 = vst [vmem:[#allocation4 + $0x10] sm:$0xff] %v5849_v32   ;;  %v1657_v0 = vadd.f32 %v1641_v46, %v1577_v2  ;;  %v1578_v55 = vadd.f32 %v1562_v23, %v1498_v52  ;;  %v1503_v2 = vmul.f32 %v10161_v39, %v10160_v19  ;;  %v10162_v32 = vld [vmem:[#allocation25_spill] sm:$0xff] }
 0x20e   : > { %v1527_v21 = vpop.permute.xlu0 %1526  ;;  %v1525_v14 = vpop.permute.xlu1 %1524 }
 0x20f   : > { %v5854_v61 = vpack.c.bf16 %v1657_v0, %v1656_v45  ;;  %v1563_v12 = vmul.f32 %v1525_v14, %v8196_v50  ;;  %v1564_v10 = vmul.f32 %v1527_v21, %v10147_v26  ;;  %v10149_v50 = vld [vmem:[#allocation74_spill] sm:$0xff]  ;;  %v10163_v14 = vld [vmem:[#allocation13_spill] sm:$0xff] }
 0x211   : > { %5958 = vst [vmem:[#allocation4 + $0x18] sm:$0xff] %v5854_v61   ;;  %v1579_v18 = vadd.f32 %v1563_v12, %v1499_v16  ;;  %v1580_v58 = vadd.f32 %v1564_v10, %v1500_v6  ;;  %v10165_v12 = vld [vmem:[#allocation116_spill] sm:$0xff] }
 0x212   : > { %v1603_v34 = vpop.permute.xlu0 %1602  ;;  %v1529_v29 = vpop.permute.xlu1 %1528 }
 0x213   : > { %v1642_v51 = vmul.f32 %v1603_v34, %v10146_v42  ;;  %v1565_v38 = vmul.f32 %v1529_v29, %v10148_v44  ;;  %v10164_v34 = vld [vmem:[#allocation73_spill] sm:$0xff]  ;;  %v10168_v42 = vld [vmem:[#allocation115_spill] sm:$0xff] }
 0x214   : > { %v6605_v8 = vld [vmem:[#allocation4 + $0x10] sm:$0xff]  }
 0x215   : > { %6189 = vmatprep.mubr.msk.bf16.mxu0 %vm909_vm0, %v6605_v8  ;;  %v1658_v48 = vadd.f32 %v1642_v51, %v1578_v55  ;;  %v1581_v63 = vadd.f32 %v1565_v38, %v1501_v7  ;;  %v10166_v8 = vld [vmem:[#allocation111_spill] sm:$0xff]  ;;  %v10169_v51 = vld [vmem:[#allocation78_spill] sm:$0xff] }
 0x216   : > { %v1607_v37 = vpop.permute.xlu0 %1606  ;;  %v1605_v3 = vpop.permute.xlu1 %1604  ;;  %v1504_v33 = vmul.f32 %v10167_v17, %v10166_v8  ;;  %v1505_v55 = vmul.f32 %v10169_v51, %v10168_v42 }
 0x217   : > { %v1643_v56 = vmul.f32 %v1605_v3, %v10149_v50  ;;  %v1644_v41 = vmul.f32 %v1607_v37, %v10154_v27  ;;  %v10170_v3 = vld [vmem:[#allocation87_spill] sm:$0xff] }
 0x218   : > { %v6607_v36 = vld [vmem:[#allocation4 + $0x18] sm:$0xff]  }
 0x219   : > { %v1659_v40 = vadd.f32 %v1643_v56, %v1579_v18  ;;  %6190 = vmatmul.mubr.msk.bf16.gmra.mxu0 %vm909_vm0, %v6607_v36  ;;  %v1660_v22 = vadd.f32 %v1644_v41, %v1580_v58  ;;  %v10171_v56 = vld [vmem:[#allocation24_spill] sm:$0xff] }
 0x21a   : > { %v1609_v20 = vpop.permute.xlu1 %1608 }
 0x21b   : > { %v1531_v43 = vpop.permute.xlu0 %1530  ;;  %v5859_v24 = vpack.c.bf16 %v1659_v40, %v1658_v48  ;;  %v1645_v4 = vmul.f32 %v1609_v20, %v10155_v13  ;;  %v2130_v48 = vlaneseq  ;;  %v7057_v20 = vmov 0.0  }
 0x21c   : > { %v1566_v25 = vmul.f32 %v1531_v43, %v10156_v49 }
 0x21d   : > { %5959 = vst [vmem:[#allocation4 + $0x20] sm:$0xff] %v5859_v24   ;;  %v1661_v62 = vadd.f32 %v1645_v4, %v1581_v63  ;;  %v8684_v27 = vshrl.u32 %v2130_v48, 7  ;;  %v8687_v40 = vand.u32 127, %v2130_v48 }
 0x21e   : > { %v1533_v47 = vpop.permute.xlu1 %1532  ;;  %v1582_v45 = vadd.f32 %v1566_v25, %v1502_v30 }
 0x21f   : > { %v1535_v54 = vpop.permute.xlu0 %1534  ;;  %v5864_v28 = vpack.c.bf16 %v1661_v62, %v1660_v22  ;;  %v1567_v15 = vmul.f32 %v1533_v47, %v10157_v53  ;;  %v2133_v41 = vadd.s32 16, %v8684_v27  ;;  %v2132_v43 = vadd.s32 8, %v8684_v27 }
 0x220   : > { %v1568_v61 = vmul.f32 %v1535_v54, %v10163_v14  ;;  %vm2149_vm4 = vcmp.gt.s32.totalorder %v8687_v40, %v8684_v27  ;;  %v2134_v63 = vadd.s32 24, %v8684_v27  ;;  %v2135_v53 = vadd.s32 32, %v8684_v27 }
 0x221   : > { %5960 = vst [vmem:[#allocation4 + $0x28] sm:$0xff] %v5864_v28   ;;  %v1583_v23 = vadd.f32 %v1567_v15, %v1503_v2  ;;  %vm2151_vm3 = vcmp.gt.s32.totalorder %v8687_v40, %v2133_v41  ;;  %vm2150_vm5 = vcmp.gt.s32.totalorder %v8687_v40, %v2132_v43  ;;  %v8702_v4 = vsel %vm2149_vm4, -1e+30, %v7057_v20 }
 0x222   : > { %v1537_v59 = vpop.permute.xlu1 %1536  ;;  %v1584_v44 = vadd.f32 %v1568_v61, %v1504_v33  ;;  %v8692_v58 = vsel %vm2151_vm3, -1e+30, %v7057_v20  ;;  %vm2152_vm6 = vcmp.gt.s32.totalorder %v8687_v40, %v2134_v63  ;;  %v8707_v54 = vsel %vm2150_vm5, -1e+30, %v7057_v20 }
 0x223   : > { %v1611_v1 = vpop.permute.xlu0 %1610  ;;  %v1569_v29 = vmul.f32 %v1537_v59, %v10164_v34  ;;  %v8713_v28 = vsel %vm2152_vm6, -1e+30, %v7057_v20  ;;  %vm2153_vm8 = vcmp.gt.s32.totalorder %v8687_v40, %v2135_v53  ;;  %v2141_v39 = vadd.s32 80, %v8684_v27 }
 0x224   : > { %v6611_v35 = vld [vmem:[#allocation4 + $0x20] sm:$0xff]   ;;  %v1646_v46 = vmul.f32 %v1611_v1, %v10162_v32  ;;  %v2137_v1 = vadd.s32 48, %v8684_v27  ;;  %v8735_v30 = vsel %vm2153_vm8, -1e+30, %v7057_v20  ;;  %v2139_v32 = vadd.s32 64, %v8684_v27 }
 0x225   : > { %6193 = vmatprep.mubr.msk.bf16.mxu0 %vm909_vm0, %v6611_v35  ;;  %v1585_v38 = vadd.f32 %v1569_v29, %v1505_v55  ;;  %vm2159_vm9 = vcmp.gt.s32.totalorder %v8687_v40, %v2141_v39  ;;  %v2145_v29 = vadd.s32 112, %v8684_v27  ;;  %v2138_v55 = vadd.s32 56, %v8684_v27 }
 0x226   : > { %v1613_v21 = vpop.permute.xlu1 %1612  ;;  %v1662_v37 = vadd.f32 %v1646_v46, %v1582_v45  ;;  %vm2155_vm7 = vcmp.gt.s32.totalorder %v8687_v40, %v2137_v1  ;;  %v8746_v45 = vsel %vm2159_vm9, -1e+30, %v7057_v20  ;;  %vm2157_vm10 = vcmp.gt.s32.totalorder %v8687_v40, %v2139_v32 }
 0x227   : > { %v1615_v0 = vpop.permute.xlu0 %1614  ;;  %v1647_v52 = vmul.f32 %v1613_v21, %v10165_v12  ;;  %v8728_v15 = vsel %vm2155_vm7, -1e+30, %v7057_v20  ;;  %v8754_v61 = vsel %vm2157_vm10, -1e+30, %v7057_v20  ;;  %vm2163_vm11 = vcmp.gt.s32.totalorder %v8687_v40, %v2145_v29 }
 0x228   : > { %v6613_v16 = vld [vmem:[#allocation4 + $0x28] sm:$0xff]   ;;  %v1648_v26 = vmul.f32 %v1615_v0, %v10170_v3  ;;  %v6618_v0 = vld [vmem:[#allocation5 + $0x30] sm:$0xff]   ;;  %v8765_v17 = vsel %vm2163_vm11, -1e+30, %v7057_v20  ;;  %vm2156_vm13 = vcmp.gt.s32.totalorder %v8687_v40, %v2138_v55  ;;  %v2136_v3 = vadd.s32 40, %v8684_v27 }
 0x229   : > { %v1663_v10 = vadd.f32 %v1647_v52, %v1583_v23  ;;  %6194 = vmatmul.mubr.msk.bf16.gmra.mxu0 %vm909_vm0, %v6613_v16  ;;  %v2143_v52 = vadd.s32 96, %v8684_v27  ;;  %vm2847_vm4 = vcmask 257024   ;;  %vm4341_vm5 = vcmask 781824  }
 0x22a   : > { %v1617_v18 = vpop.permute.xlu1 %1616  ;;  %v1664_v31 = vadd.f32 %v1648_v26, %v1584_v44  ;;  %v8783_v26 = vsel %vm2156_vm13, -1e+30, %v7057_v20  ;;  %vm2154_vm14 = vcmp.gt.s32.totalorder %v8687_v40, %v2136_v3  ;;  %vm5088_vm6 = vcmask 1044224  }
 0x22b   : > { %v5869_v50 = vpack.c.bf16 %v1663_v10, %v1662_v37  ;;  %v1649_v11 = vmul.f32 %v1617_v18, %v10171_v56  ;;  %vm2161_vm12 = vcmp.gt.s32.totalorder %v8687_v40, %v2143_v52  ;;  %v2142_v10 = vadd.s32 88, %v8684_v27 }
 0x22c   : > { %v8772_v42 = vsel %vm2161_vm12, -1e+30, %v7057_v20  ;;  %v8791_v44 = vsel %vm2154_vm14, -1e+30, %v7057_v20 }
 0x22d   : > { %5961 = vst [vmem:[#allocation4 + $0x30] sm:$0xff] %v5869_v50   ;;  %v1665_v6 = vadd.f32 %v1649_v11, %v1585_v38  ;;  %vm2160_vm15 = vcmp.gt.s32.totalorder %v8687_v40, %v2142_v10  ;;  %v2140_v38 = vadd.s32 72, %v8684_v27  ;;  %v2146_v11 = vadd.s32 120, %v8684_v27 }
 0x22e   : > { %v8800_v56 = vsel %vm2160_vm15, -1e+30, %v7057_v20 }
 0x22f   : > { %v5874_v36 = vpack.c.bf16 %v1665_v6, %v1664_v31  ;;  %vm2158_vm1 = vcmp.gt.s32.totalorder %v8687_v40, %v2140_v38  ;;  %v6619_v6 = vld [vmem:[#allocation5 + $0x28] sm:$0xff]   ;;  %vm2164_vm2 = vcmp.gt.s32.totalorder %v8687_v40, %v2146_v11 }
 0x230   : > { %v8678_v9 = vpop.permute.xlu1 %3038  ;;  %v8819_v48 = vsel %vm2164_vm2, -1e+30, %v7057_v20 }
 0x231   : > { %5962 = vst [vmem:[#allocation4 + $0x38] sm:$0xff] %v5874_v36   ;;  %6481 = vmatprep.subr.msk.bf16.mxu1 %vm909_vm0, %v8678_v9  ;;  %v8809_v36 = vsel %vm2158_vm1, -1e+30, %v7057_v20 }
 0x234   : > { %v6616_v57 = vld [vmem:[#allocation4 + $0x30] sm:$0xff]  }
 0x235   : > { %6197 = vmatprep.mubr.msk.bf16.mxu0 %vm909_vm0, %v6616_v57  ;;  %v2144_v57 = vadd.s32 104, %v8684_v27 }
 0x237   : > { %vm2162_vm3 = vcmp.gt.s32.totalorder %v8687_v40, %v2144_v57 }
 0x238   : > { %v6617_v7 = vld [vmem:[#allocation4 + $0x38] sm:$0xff]   ;;  %v8827_v27 = vsel %vm2162_vm3, -1e+30, %v7057_v20 }
 0x239   : > { %6198 = vmatmul.mubr.msk.bf16.gmra.mxu0 %vm909_vm0, %v6617_v7 }
 0x2c9   : > { %v6187_v24 = vpop.f32.mrf.mxu0 }
 0x2ca   : > { %v8698_v13 = vadd.f32 %v6187_v24, %v8692_v58 }
 0x2cb   : > { %v2423_v22 = vpop.f32.mrf.mxu0 }
 0x2cc   : > { %2490 = vmax.xlane.f32.xlu0 %v8698_v13  ;;  %v8710_v47 = vadd.f32 %v2423_v22, %v8702_v4 }
 0x2cd   : > { %v6188_v62 = vpop.f32.mrf.mxu0 }
 0x2ce   : > { %v8721_v59 = vadd.f32 %v6188_v62, %v8713_v28 }
 0x2cf   : > { %v2426_v49 = vpop.f32.mrf.mxu0 }
 0x2d0   : > { %v8716_v25 = vadd.f32 %v2426_v49, %v8707_v54  ;;  %2486 = vmax.xlane.f32.xlu0 %v8710_v47 }
 0x2d2   : > { %2488 = vmax.xlane.f32.xlu1 %v8716_v25 }
 0x2d4   : > { %2492 = vmax.xlane.f32.xlu0 %v8721_v59 }
 0x2d9   : > { %v6191_v5 = vpop.f32.mrf.mxu0 }
 0x2da   : > { %v8732_v60 = vadd.f32 %v6191_v5, %v8728_v15 }
 0x2db   : > { %v2439_v35 = vpop.f32.mrf.mxu0 }
 0x2dc   : > { %2498 = vmax.xlane.f32.xlu1 %v8732_v60  ;;  %v8739_v19 = vadd.f32 %v2439_v35, %v8735_v30 }
 0x2dd   : > { %v6192_v2 = vpop.f32.mrf.mxu0 }
 0x2de   : > { %v8788_v18 = vadd.f32 %v6192_v2, %v8783_v26 }
 0x2df   : > { %v2442_v46 = vpop.f32.mrf.mxu0 }
 0x2e0   : > { %2494 = vmax.xlane.f32.xlu1 %v8739_v19  ;;  %v8797_v50 = vadd.f32 %v2442_v46, %v8791_v44 }
 0x2e9   : > { %v6195_v21 = vpop.f32.mrf.mxu0 }
 0x2ea   : > { %v8750_v14 = vadd.f32 %v6195_v21, %v8746_v45  ;;  %3036 = vrot.lane.b32.xlu0 %v6618_v0, %s7054_s16 }
 0x2eb   : > { %v2455_v23 = vpop.f32.mrf.mxu0 }
 0x2ec   : > { %2506 = vmax.xlane.f32.xlu1 %v8750_v14  ;;  %v8758_v34 = vadd.f32 %v2455_v23, %v8754_v61 }
 0x2ed   : > { %v6196_v12 = vpop.f32.mrf.mxu0 }
 0x2ee   : > { %v8806_v31 = vadd.f32 %v6196_v12, %v8800_v56 }
 0x2ef   : > { %v2458_v8 = vpop.f32.mrf.mxu0 }
 0x2f0   : > { %2502 = vmax.xlane.f32.xlu1 %v8758_v34  ;;  %v8816_v7 = vadd.f32 %v2458_v8, %v8809_v36  ;;  %v6621_v8 = vld [vmem:[#allocation5 + $0x20] sm:$0xff]  }
 0x2f9   : > { %v6199_v33 = vpop.f32.mrf.mxu0 }
 0x2fa   : > { %v8769_v16 = vadd.f32 %v6199_v33, %v8765_v17  ;;  %v6622_v33 = vld [vmem:[#allocation5 + $0x10] sm:$0xff]  }
 0x2fb   : > { %v2471_v51 = vpop.f32.mrf.mxu0 }
 0x2fc   : > { %2514 = vmax.xlane.f32.xlu1 %v8769_v16  ;;  %v8777_v37 = vadd.f32 %v2471_v51, %v8772_v42 }
 0x2fd   : > { %v6200_v41 = vpop.f32.mrf.mxu0 }
 0x2fe   : > { %v8824_v43 = vadd.f32 %v6200_v41, %v8819_v48 }
 0x2ff   : > { %v2474_v63 = vpop.f32.mrf.mxu0 }
 0x300   : > { %2510 = vmax.xlane.f32.xlu1 %v8777_v37  ;;  %v8831_v24 = vadd.f32 %v2474_v63, %v8827_v27 }
 0x309   : > { %2500 = vmax.xlane.f32.xlu0 %v8788_v18 }
 0x30d   : > { %2496 = vmax.xlane.f32.xlu0 %v8797_v50 }
 0x311   : > { %3034 = vrot.lane.b32.xlu1 %v6619_v6, %s7054_s16  ;;  %2508 = vmax.xlane.f32.xlu0 %v8806_v31 }
 0x315   : > { %2504 = vmax.xlane.f32.xlu0 %v8816_v7 }
 0x319   : > { %2516 = vmax.xlane.f32.xlu0 %v8824_v43 }
 0x31d   : > { %2512 = vmax.xlane.f32.xlu0 %v8831_v24 }
 0x355   : > { %v2491_v22 = vpop.xlane.xlu0 %2490 }
 0x356   : > { %v2520_v62 = vsub.f32 %v8698_v13, %v2491_v22 }
 0x358   : > { %v2538_v40 = vmul.f32 1.442695, %v2520_v62 }
 0x359   : > { %v2487_v49 = vpop.xlane.xlu0 %2486 }
 0x35a   : > { %6705 = vpow2.f32 %v2538_v40  ;;  %v2518_v1 = vsub.f32 %v8710_v47, %v2487_v49 }
 0x35b   : > { %v2489_v53 = vpop.xlane.xlu1 %2488 }
 0x35c   : > { %v2534_v5 = vmul.f32 1.442695, %v2518_v1  ;;  %v2519_v35 = vsub.f32 %v8716_v25, %v2489_v53 }
 0x35d   : > { %v2493_v20 = vpop.xlane.xlu0 %2492 }
 0x35e   : > { %6707 = vpow2.f32 %v2534_v5  ;;  %v2521_v39 = vsub.f32 %v8721_v59, %v2493_v20  ;;  %v2536_v32 = vmul.f32 1.442695, %v2519_v35 }
 0x360   : > { %v2540_v2 = vmul.f32 1.442695, %v2521_v39 }
 0x361   : > { %v8860_v51 = vpop.permute.xlu0 %3036 }
 0x362   : > { %6709 = vpow2.f32 %v2540_v2 }
 0x363   : > { %6711 = vpow2.f32 %v2536_v32 }
 0x365   : > { %v2499_v46 = vpop.xlane.xlu1 %2498 }
 0x366   : > { %v2524_v13 = vsub.f32 %v8732_v60, %v2499_v46 }
 0x367   : > { %v8839_v0 = vpop.eup %6705 }
 0x368   : > { %v2546_v21 = vmul.f32 1.442695, %v2524_v13  ;;  %2570 = vadd.xlane.f32.xlu1 %v8839_v0 }
 0x369   : > { %v2495_v47 = vpop.xlane.xlu1 %2494 }
 0x36a   : > { %6713 = vpow2.f32 %v2546_v21  ;;  %v2522_v23 = vsub.f32 %v8739_v19, %v2495_v47  ;;  %v6620_v19 = vld [vmem:[#allocation5 + $0x18] sm:$0xff]  }
 0x36b   : > { %v8843_v29 = vpop.eup %6707 }
 0x36c   : > { %v2542_v25 = vmul.f32 1.442695, %v2522_v23  ;;  %2566 = vadd.xlane.f32.xlu1 %v8843_v29 }
 0x36e   : > { %6715 = vpow2.f32 %v2542_v25 }
 0x36f   : > { %v8846_v59 = vpop.eup %6709 }
 0x370   : > { %2572 = vadd.xlane.f32.xlu0 %v8846_v59  ;;  %v8849_v60 = vpop.eup %6711 }
 0x374   : > { %2568 = vadd.xlane.f32.xlu0 %v8849_v60 }
 0x375   : > { %v2507_v38 = vpop.xlane.xlu1 %2506 }
 0x376   : > { %v2528_v63 = vsub.f32 %v8750_v14, %v2507_v38  ;;  %v6636_v38 = vld [vmem:[#allocation6 + $0x30] sm:$0xff]  }
 0x377   : > { %v8852_v12 = vpop.eup %6713 }
 0x378   : > { %2578 = vadd.xlane.f32.xlu1 %v8852_v12  ;;  %v2554_v1 = vmul.f32 1.442695, %v2528_v63 }
 0x379   : > { %v2503_v22 = vpop.xlane.xlu1 %2502 }
 0x37a   : > { %v2526_v40 = vsub.f32 %v8758_v34, %v2503_v22  ;;  %v6630_v22 = vld [vmem:[#allocation4 + $0x18] sm:$0xff]  }
 0x37b   : > { %v8855_v52 = vpop.eup %6715 }
 0x37c   : > { %2574 = vadd.xlane.f32.xlu1 %v8855_v52  ;;  %v2550_v53 = vmul.f32 1.442695, %v2526_v40  ;;  %v6631_v40 = vld [vmem:[#allocation4 + $0x28] sm:$0xff]  }
 0x38a   : > { %3030 = vrot.lane.b32.xlu0 %v6620_v19, %s7054_s16 }
 0x38d   : > { %3032 = vrot.lane.b32.xlu1 %v6621_v8, %s7054_s16 }
 0x38e   : > { %3028 = vrot.lane.b32.xlu0 %v6622_v33, %s7054_s16  ;;  %v6623_v33 = vld [vmem:[#allocation5] sm:$0xff]  }
 0x392   : > { %v2501_v55 = vpop.xlane.xlu0 %2500 }
 0x393   : > { %v2525_v10 = vsub.f32 %v8788_v18, %v2501_v55 }
 0x395   : > { %v2548_v6 = vmul.f32 1.442695, %v2525_v10  ;;  %v6625_v10 = vld [vmem:[#allocation4 + $0x30] sm:$0xff]  }
 0x396   : > { %v2497_v3 = vpop.xlane.xlu0 %2496 }
 0x397   : > { %v2523_v57 = vsub.f32 %v8797_v50, %v2497_v3  ;;  %6717 = vpow2.f32 %v2548_v6  ;;  %v2515_v50 = vpop.xlane.xlu1 %2514  ;;  %v6624_v3 = vld [vmem:[#allocation4 + $0x20] sm:$0xff]  }
 0x398   : > { %v2532_v34 = vsub.f32 %v8769_v16, %v2515_v50  ;;  %v6627_v6 = vld [vmem:[#allocation4] sm:$0xff]  }
 0x399   : > { %v2544_v62 = vmul.f32 1.442695, %v2523_v57  ;;  %v6628_v57 = vld [vmem:[#allocation4 + $0x8] sm:$0xff]  }
 0x39a   : > { %v2509_v11 = vpop.xlane.xlu0 %2508 }
 0x39b   : > { %6719 = vpow2.f32 %v2544_v62  ;;  %v2529_v18 = vsub.f32 %v8806_v31, %v2509_v11  ;;  %v2511_v31 = vpop.xlane.xlu1 %2510  ;;  %v6626_v11 = vld [vmem:[#allocation5 + $0x8] sm:$0xff]  }
 0x39c   : > { %6721 = vpow2.f32 %v2554_v1  ;;  %v2530_v13 = vsub.f32 %v8777_v37, %v2511_v31 }
 0x39d   : > { %6723 = vpow2.f32 %v2550_v53  ;;  %v2556_v39 = vmul.f32 1.442695, %v2529_v18  ;;  %v6632_v53 = vld [vmem:[#allocation4 + $0x38] sm:$0xff]  }
 0x39e   : > { %v2505_v41 = vpop.xlane.xlu0 %2504  ;;  %v2558_v47 = vmul.f32 1.442695, %v2530_v13 }
 0x39f   : > { %v2527_v14 = vsub.f32 %v8816_v7, %v2505_v41  ;;  %v6629_v41 = vld [vmem:[#allocation4 + $0x10] sm:$0xff]   ;;  %v3035_v63 = vpop.permute.xlu1 %3034 }
 0x3a1   : > { %v2552_v32 = vmul.f32 1.442695, %v2527_v14  ;;  %v6637_v14 = vld [vmem:[#allocation6 + $0x18] sm:$0xff]  }
 0x3a2   : > { %v2517_v49 = vpop.xlane.xlu0 %2516 }
 0x3a3   : > { %v2533_v16 = vsub.f32 %v8824_v43, %v2517_v49 }
 0x3a4   : > { %v8870_v2 = vpop.eup %6717 }
 0x3a5   : > { %v2564_v25 = vmul.f32 1.442695, %v2533_v16 }
 0x3a6   : > { %v2513_v5 = vpop.xlane.xlu0 %2512 }
 0x3a7   : > { %v2531_v20 = vsub.f32 %v8831_v24, %v2513_v5  ;;  %v2562_v24 = vmul.f32 1.442695, %v2532_v34  ;;  %v6633_v5 = vld [vmem:[#allocation6 + $0x38] sm:$0xff]  }
 0x3a8   : > { %v8874_v46 = vpop.eup %6719 }
 0x3a9   : > { %v2560_v35 = vmul.f32 1.442695, %v2531_v20  ;;  %v8878_v21 = vpop.eup %6721  ;;  %v6634_v20 = vld [vmem:[#allocation6 + $0x28] sm:$0xff]  }
 0x3aa   : > { %v8881_v7 = vpop.eup %6723 }
 0x3ab   : > { %6725 = vpow2.f32 %v2560_v35  ;;  %v6635_v35 = vld [vmem:[#allocation6 + $0x20] sm:$0xff]  }
 0x3ac   : > { %6727 = vpow2.f32 %v2556_v39 }
 0x3ad   : > { %2580 = vadd.xlane.f32.xlu0 %v8870_v2  ;;  %6729 = vpow2.f32 %v2552_v32 }
 0x3ae   : > { %6731 = vpow2.f32 %v2562_v24 }
 0x3af   : > { %6733 = vpow2.f32 %v2558_v47 }
 0x3b0   : > { %6735 = vpow2.f32 %v2564_v25 }
 0x3b1   : > { %2576 = vadd.xlane.f32.xlu0 %v8874_v46 }
 0x3b5   : > { %2586 = vadd.xlane.f32.xlu0 %v8878_v21 }
 0x3b8   : > { %v8884_v23 = vpop.eup %6725 }
 0x3b9   : > { %2582 = vadd.xlane.f32.xlu0 %v8881_v7  ;;  %2592 = vadd.xlane.f32.xlu1 %v8884_v23  ;;  %v8888_v37 = vpop.eup %6727 }
 0x3ba   : > { %v8891_v19 = vpop.eup %6729 }
 0x3bb   : > { %v8894_v8 = vpop.eup %6731 }
 0x3bc   : > { %v8897_v43 = vpop.eup %6733 }
 0x3bd   : > { %2588 = vadd.xlane.f32.xlu0 %v8888_v37  ;;  %v8901_v55 = vpop.eup %6735 }
 0x3c1   : > { %2584 = vadd.xlane.f32.xlu0 %v8891_v19 }
 0x3c5   : > { %2594 = vadd.xlane.f32.xlu0 %v8894_v8 }
 0x3c9   : > { %2590 = vadd.xlane.f32.xlu0 %v8897_v43 }
 0x3ca   : > { %3024 = vrot.lane.b32.xlu1 %v6623_v33, %s7054_s16  ;;  %v3086_v33 = vsel %vm909_vm0, %v8678_v9, 0 }
 0x3cd   : > { %2596 = vadd.xlane.f32.xlu0 %v8901_v55 }
 0x3ce   : > { %2976 = vrot.lane.b32.xlu1 %v6624_v3, %s7054_s16 }
 0x3d2   : > { %2980 = vrot.lane.b32.xlu1 %v6625_v10, %s7054_s16 }
 0x3d6   : > { %3389 = vrot.lane.b32.xlu1 %v6636_v38, %s7054_s16 }
 0x3e3   : > { %3026 = vrot.lane.b32.xlu0 %v6626_v11, %s7054_s16 }
 0x3e7   : > { %2968 = vrot.lane.b32.xlu0 %v6627_v6, %s7054_s16 }
 0x3eb   : > { %2970 = vrot.lane.b32.xlu0 %v6628_v57, %s7054_s16 }
 0x3ef   : > { %2972 = vrot.lane.b32.xlu0 %v6629_v41, %s7054_s16 }
 0x3f1   : > { %v2571_v62 = vpop.xlane.xlu1 %2570 }
 0x3f3   : > { %2974 = vrot.lane.b32.xlu0 %v6630_v22, %s7054_s16 }
 0x3f5   : > { %v2567_v49 = vpop.xlane.xlu1 %2566 }
 0x3f7   : > { %2978 = vrot.lane.b32.xlu0 %v6631_v40, %s7054_s16 }
 0x3f9   : > { %v2573_v1 = vpop.xlane.xlu0 %2572 }
 0x3fa   : > { %6737 = vrcp.f32 %v2573_v1 }
 0x3fb   : > { %2982 = vrot.lane.b32.xlu0 %v6632_v53, %s7054_s16  ;;  %6739 = vrcp.f32 %v2567_v49 }
 0x3fc   : > { %6741 = vrcp.f32 %v2571_v62 }
 0x3fd   : > { %v2569_v18 = vpop.xlane.xlu0 %2568 }
 0x3fe   : > { %6743 = vrcp.f32 %v2569_v18 }
 0x3ff   : > { %3391 = vrot.lane.b32.xlu0 %v6633_v5, %s7054_s16 }
 0x401   : > { %v2579_v3 = vpop.xlane.xlu1 %2578  ;;  %v3031_v10 = vpop.permute.xlu0 %3030 }
 0x402   : > { %v3074_v38 = vsel %vm909_vm0, %v3031_v10, 0 }
 0x403   : > { %3387 = vrot.lane.b32.xlu0 %v6634_v20, %s7054_s16 }
 0x405   : > { %v3029_v11 = vpop.permute.xlu0 %3028 }
 0x406   : > { %v3071_v6 = vsel %vm909_vm0, %v3029_v11, 0 }
 0x407   : > { %3385 = vrot.lane.b32.xlu0 %v6635_v35, %s7054_s16  ;;  %v6738_v50 = vpop.eup %6737 }
 0x408   : > { %v6740_v39 = vpop.eup %6739  ;;  %v2617_v31 = vmul.f32 %v6738_v50, %v8846_v59  ;;  %v3083_v59 = vsel %vm909_vm0, %v8860_v51, 0 }
 0x409   : > { %v6742_v34 = vpop.eup %6741  ;;  %v2614_v24 = vmul.f32 %v6740_v39, %v8843_v29  ;;  %v2575_v29 = vpop.xlane.xlu1 %2574 }
 0x40a   : > { %v2616_v47 = vmul.f32 %v6742_v34, %v8839_v0  ;;  %v3080_v0 = vsel %vm909_vm0, %v3035_v63, 0 }
 0x40b   : > { %v6744_v32 = vpop.eup %6743  ;;  %3383 = vrot.lane.b32.xlu0 %v6637_v14, %s7054_s16 }
 0x40c   : > { %v2615_v13 = vmul.f32 %v6744_v32, %v8849_v60  ;;  %v2631_v25 = vpack.c.bf16 %v2617_v31, %v2616_v47 }
 0x40d   : > { %v3033_v60 = vpop.permute.xlu1 %3032 }
 0x40e   : > { %v2630_v16 = vpack.c.bf16 %v2615_v13, %v2614_v24  ;;  %v3077_v9 = vsel %vm909_vm0, %v3033_v60, 0 }
 0x410   : > { %6217 = vmatprep.mubr.bf16.mxu1 %v2630_v16 }
 0x411   : > { %6218 = vmatmul.mubr.bf16.vlgmr.msra.gmra.mxu1 %v2631_v25 }
 0x412   : > { %6234 = vmatpush3.bf16.xpose.msra.mxu1 %v3086_v33 }
 0x413   : > { %6482 = vmatprep.subr.msk.bf16.mxu1 %vm909_vm0, %v8860_v51 }
 0x41a   : > { %6236 = vmatpush3.bf16.xpose.msra.mxu1 %v3083_v59 }
 0x41b   : > { %6483 = vmatprep.subr.msk.bf16.mxu1 %vm909_vm0, %v3035_v63 }
 0x422   : > { %6238 = vmatpush3.bf16.xpose.msra.mxu1 %v3080_v0 }
 0x423   : > { %6484 = vmatprep.subr.msk.bf16.mxu1 %vm909_vm0, %v3033_v60 }
 0x42a   : > { %6240 = vmatpush3.bf16.xpose.msra.mxu1 %v3077_v9 }
 0x42b   : > { %6485 = vmatprep.subr.msk.bf16.mxu1 %vm909_vm0, %v3031_v10 }
 0x432   : > { %6242 = vmatpush3.bf16.xpose.msra.mxu1 %v3074_v38 }
 0x433   : > { %6486 = vmatprep.subr.msk.bf16.mxu1 %vm909_vm0, %v3029_v11 }
 0x436   : > { %v2581_v51 = vpop.xlane.xlu0 %2580 }
 0x437   : > { %6745 = vrcp.f32 %v2581_v51 }
 0x438   : > { %6747 = vrcp.f32 %v2575_v29 }
 0x439   : > { %6749 = vrcp.f32 %v2579_v3 }
 0x43a   : > { %6244 = vmatpush3.bf16.xpose.msra.mxu1 %v3071_v6  ;;  %v2577_v57 = vpop.xlane.xlu0 %2576 }
 0x43b   : > { %6751 = vrcp.f32 %v2577_v57 }
 0x43e   : > { %v2587_v41 = vpop.xlane.xlu0 %2586 }
 0x442   : > { %v2583_v63 = vpop.xlane.xlu0 %2582  ;;  %v2593_v14 = vpop.xlane.xlu1 %2592 }
 0x444   : > { %v6746_v22 = vpop.eup %6745 }
 0x445   : > { %v6748_v62 = vpop.eup %6747  ;;  %v2621_v53 = vmul.f32 %v6746_v22, %v8870_v2 }
 0x446   : > { %v2589_v40 = vpop.xlane.xlu0 %2588  ;;  %v6750_v49 = vpop.eup %6749  ;;  %v2618_v5 = vmul.f32 %v6748_v62, %v8855_v52 }
 0x447   : > { %6753 = vrcp.f32 %v2589_v40  ;;  %v2620_v35 = vmul.f32 %v6750_v49, %v8852_v12  ;;  %v3025_v59 = vpop.permute.xlu1 %3024 }
 0x448   : > { %v6752_v1 = vpop.eup %6751  ;;  %6755 = vrcp.f32 %v2583_v63  ;;  %v3065_v10 = vsel %vm909_vm0, %v3025_v59, 0 }
 0x449   : > { %v2619_v18 = vmul.f32 %v6752_v1, %v8874_v46  ;;  %6757 = vrcp.f32 %v2587_v41  ;;  %v2633_v39 = vpack.c.bf16 %v2621_v53, %v2620_v35 }
 0x44a   : > { %v2585_v20 = vpop.xlane.xlu0 %2584 }
 0x44b   : > { %6759 = vrcp.f32 %v2585_v20  ;;  %v2632_v50 = vpack.c.bf16 %v2619_v18, %v2618_v5  ;;  %v2977_v63 = vpop.permute.xlu1 %2976 }
 0x44c   : > { %6761 = vrcp.f32 %v2593_v14 }
 0x44d   : > { %6221 = vmatprep.mubr.bf16.mxu1 %v2632_v50 }
 0x44e   : > { %6222 = vmatmul.mubr.bf16.gmra.mxu1 %v2633_v39  ;;  %v2595_v34 = vpop.xlane.xlu0 %2594 }
 0x44f   : > { %v2981_v22 = vpop.permute.xlu1 %2980 }
 0x452   : > { %v2591_v32 = vpop.xlane.xlu0 %2590 }
 0x453   : > { %6763 = vrcp.f32 %v2591_v32  ;;  %v3390_v49 = vpop.permute.xlu1 %3389 }
 0x454   : > { %v6754_v2 = vpop.eup %6753  ;;  %6765 = vrcp.f32 %v2595_v34 }
 0x455   : > { %v6756_v31 = vpop.eup %6755  ;;  %v2625_v13 = vmul.f32 %v6754_v2, %v8888_v37 }
 0x456   : > { %v2597_v52 = vpop.xlane.xlu0 %2596  ;;  %v6758_v24 = vpop.eup %6757  ;;  %v2622_v12 = vmul.f32 %v6756_v31, %v8881_v7 }
 0x457   : > { %6767 = vrcp.f32 %v2597_v52  ;;  %v2624_v25 = vmul.f32 %v6758_v24, %v8878_v21 }
 0x458   : > { %v6760_v46 = vpop.eup %6759 }
 0x459   : > { %v2623_v47 = vmul.f32 %v6760_v46, %v8891_v19  ;;  %v2635_v29 = vpack.c.bf16 %v2625_v13, %v2624_v25  ;;  %v6762_v0 = vpop.eup %6761 }
 0x45a   : > { %v3027_v16 = vpop.permute.xlu0 %3026  ;;  %v2627_v60 = vmul.f32 %v6762_v0, %v8884_v23 }
 0x45b   : > { %6487 = vmatprep.subr.msk.bf16.mxu1 %vm909_vm0, %v3027_v16  ;;  %v3068_v33 = vsel %vm909_vm0, %v3027_v16, 0  ;;  %v2634_v3 = vpack.c.bf16 %v2623_v47, %v2622_v12 }
 0x45c   : > { %6246 = vmatpush3.bf16.xpose.msra.mxu1 %v3068_v33 }
 0x45d   : > { %6225 = vmatprep.mubr.bf16.mxu1 %v2634_v3  ;;  %6488 = vmatprep.subr.msk.bf16.mxu1 %vm909_vm0, %v3025_v59 }
 0x45e   : > { %6226 = vmatmul.mubr.bf16.gmra.mxu1 %v2635_v29  ;;  %v2969_v37 = vpop.permute.xlu0 %2968 }
 0x460   : > { %v6764_v7 = vpop.eup %6763 }
 0x461   : > { %v2626_v19 = vmul.f32 %v6764_v7, %v8897_v43  ;;  %v6766_v21 = vpop.eup %6765 }
 0x462   : > { %v2971_v9 = vpop.permute.xlu0 %2970  ;;  %v2628_v51 = vmul.f32 %v6766_v21, %v8894_v8 }
 0x463   : > { %v2636_v38 = vpack.c.bf16 %v2627_v60, %v2626_v19 }
 0x464   : > { %v6768_v11 = vpop.eup %6767  ;;  %6248 = vmatpush3.bf16.xpose.msra.mxu1 %v3065_v10 }
 0x465   : > { %6229 = vmatprep.mubr.bf16.mxu1 %v2636_v38  ;;  %v2629_v6 = vmul.f32 %v6768_v11, %v8901_v55 }
 0x466   : > { %v2973_v57 = vpop.permute.xlu0 %2972 }
 0x467   : > { %v2637_v41 = vpack.c.bf16 %v2629_v6, %v2628_v51 }
 0x469   : > { %6230 = vmatmul.mubr.bf16.gmra.mxu1 %v2637_v41 }
 0x46a   : > { %6249 = vmatprep.mubr.msk.bf16.mxu1 %vm909_vm0, %v2969_v37  ;;  %v2975_v43 = vpop.permute.xlu0 %2974 }
 0x46e   : > { %v2979_v23 = vpop.permute.xlu0 %2978 }
 0x471   : > { %6250 = vmatmul.mubr.msk.bf16.vlgmr.msra.gmra.mxu1 %vm909_vm0, %v2971_v9 }
 0x472   : > { %6253 = vmatprep.mubr.msk.bf16.mxu1 %vm909_vm0, %v2973_v57  ;;  %v2983_v62 = vpop.permute.xlu0 %2982 }
 0x476   : > { %v3392_v40 = vpop.permute.xlu0 %3391 }
 0x477   : > { %6265 = vmatprep.subr.bf16.mxu0 %v3392_v40 }
 0x478   : > { %6266 = vmatpush3.bf16.msra.mxu0 %v3392_v40 }
 0x479   : > { %6254 = vmatmul.mubr.msk.bf16.gmra.mxu1 %vm909_vm0, %v2975_v43  ;;  %6267 = vmatprep.subr.bf16.mxu0 %v3390_v49 }
 0x47a   : > { %6257 = vmatprep.mubr.msk.bf16.mxu1 %vm909_vm0, %v2977_v63  ;;  %v3388_v8 = vpop.permute.xlu0 %3387 }
 0x47c   : > { %6268 = vmatpush3.bf16.msra.mxu0 %v3390_v49 }
 0x47d   : > { %6269 = vmatprep.subr.bf16.mxu0 %v3388_v8 }
 0x47e   : > { %v3386_v55 = vpop.permute.xlu0 %3385 }
 0x480   : > { %6270 = vmatpush3.bf16.msra.mxu0 %v3388_v8 }
 0x481   : > { %6258 = vmatmul.mubr.msk.bf16.gmra.mxu1 %vm909_vm0, %v2979_v23  ;;  %6271 = vmatprep.subr.bf16.mxu0 %v3386_v55  ;;  %v6638_v23 = vld [vmem:[#allocation6 + $0x8] sm:$0xff]  }
 0x482   : > { %6261 = vmatprep.mubr.msk.bf16.mxu1 %vm909_vm0, %v2981_v22  ;;  %v3384_v1 = vpop.permute.xlu0 %3383  ;;  %v6639_v22 = vld [vmem:[#allocation6 + $0x10] sm:$0xff]  }
 0x484   : > { %6272 = vmatpush3.bf16.msra.mxu0 %v3386_v55 }
 0x485   : > { %6273 = vmatprep.subr.bf16.mxu0 %v3384_v1 }
 0x488   : > { %6274 = vmatpush3.bf16.msra.mxu0 %v3384_v1 }
 0x489   : > { %6262 = vmatmul.mubr.msk.bf16.gmra.mxu1 %vm909_vm0, %v2983_v62 }
 0x4d1   : > { %v6219_v53 = vpop.f32.mrf.mxu1 }
 0x4d2   : > { %v5773_v5 = vpack.c.bf16 %v6219_v53, %v6219_v53 }
 0x4d3   : > { %v2720_v18 = vpop.f32.mrf.mxu1 }
 0x4d4   : > { %2850 = vst.msk [vmem:[#allocation7 + $0x8] sm:$0xf] %vm2847_vm4, %v5773_v5  ;;  %v5771_v20 = vpack.c.bf16 %v2720_v18, %v2720_v18 }
 0x4d5   : > { %v6220_v35 = vpop.f32.mrf.mxu1 }
 0x4d6   : > { %2848 = vst.msk [vmem:[#allocation7] sm:$0xf] %vm2847_vm4, %v5771_v20  ;;  %v5774_v50 = vpack.c.bf16 %v6220_v35, %v6220_v35 }
 0x4d7   : > { %v2723_v39 = vpop.f32.mrf.mxu1 }
 0x4d8   : > { %2851 = vst.msk [vmem:[#allocation7 + $0xc] sm:$0xf] %vm2847_vm4, %v5774_v50  ;;  %v5772_v14 = vpack.c.bf16 %v2723_v39, %v2723_v39 }
 0x4da   : > { %2849 = vst.msk [vmem:[#allocation7 + $0x4] sm:$0xf] %vm2847_vm4, %v5772_v14 }
 0x50e   : > { %v6223_v34 = vpop.f32.mrf.mxu1 }
 0x50f   : > { %v5777_v32 = vpack.c.bf16 %v6223_v34, %v6223_v34 }
 0x510   : > { %v2736_v2 = vpop.f32.mrf.mxu1 }
 0x511   : > { %2854 = vst.msk [vmem:[#allocation7 + $0x18] sm:$0xf] %vm2847_vm4, %v5777_v32  ;;  %v5775_v31 = vpack.c.bf16 %v2736_v2, %v2736_v2 }
 0x512   : > { %v6224_v52 = vpop.f32.mrf.mxu1 }
 0x513   : > { %2852 = vst.msk [vmem:[#allocation7 + $0x10] sm:$0xf] %vm2847_vm4, %v5775_v31  ;;  %v5778_v24 = vpack.c.bf16 %v6224_v52, %v6224_v52 }
 0x514   : > { %v2739_v46 = vpop.f32.mrf.mxu1 }
 0x515   : > { %2855 = vst.msk [vmem:[#allocation7 + $0x1c] sm:$0xf] %vm2847_vm4, %v5778_v24  ;;  %v5776_v13 = vpack.c.bf16 %v2739_v46, %v2739_v46  ;;  %v6640_v46 = vld [vmem:[#allocation5 + $0x38] sm:$0xff]  }
 0x517   : > { %2853 = vst.msk [vmem:[#allocation7 + $0x14] sm:$0xf] %vm2847_vm4, %v5776_v13  ;;  %v6641_v13 = vld [vmem:[#allocation6] sm:$0xff]  }
 0x51e   : > { %v6227_v12 = vpop.f32.mrf.mxu1 }
 0x51f   : > { %v5781_v47 = vpack.c.bf16 %v6227_v12, %v6227_v12  ;;  %v6642_v12 = vld [vmem:[#allocation5 + $0x30] sm:$0xff]  }
 0x520   : > { %v2752_v16 = vpop.f32.mrf.mxu1 }
 0x521   : > { %2858 = vst.msk [vmem:[#allocation7 + $0x28] sm:$0xf] %vm2847_vm4, %v5781_v47  ;;  %v5779_v25 = vpack.c.bf16 %v2752_v16, %v2752_v16  ;;  %v6643_v47 = vld [vmem:[#allocation5 + $0x28] sm:$0xff]   ;;  %v6644_v16 = vld [vmem:[#allocation5 + $0x18] sm:$0xff]  }
 0x522   : > { %v6228_v33 = vpop.f32.mrf.mxu1 }
 0x523   : > { %2856 = vst.msk [vmem:[#allocation7 + $0x20] sm:$0xf] %vm2847_vm4, %v5779_v25  ;;  %v5782_v3 = vpack.c.bf16 %v6228_v33, %v6228_v33 }
 0x524   : > { %v2755_v59 = vpop.f32.mrf.mxu1 }
 0x525   : > { %2859 = vst.msk [vmem:[#allocation7 + $0x2c] sm:$0xf] %vm2847_vm4, %v5782_v3  ;;  %v5780_v29 = vpack.c.bf16 %v2755_v59, %v2755_v59 }
 0x527   : > { %2857 = vst.msk [vmem:[#allocation7 + $0x24] sm:$0xf] %vm2847_vm4, %v5780_v29 }
 0x529   : > { %v6231_v0 = vpop.f32.mrf.mxu1 }
 0x52a   : > { %v5785_v37 = vpack.c.bf16 %v6231_v0, %v6231_v0 }
 0x52b   : > { %v2768_v7 = vpop.f32.mrf.mxu1 }
 0x52c   : > { %2862 = vst.msk [vmem:[#allocation7 + $0x38] sm:$0xf] %vm2847_vm4, %v5785_v37  ;;  %v5783_v19 = vpack.c.bf16 %v2768_v7, %v2768_v7 }
 0x52d   : > { %v6232_v60 = vpop.f32.mrf.mxu1 }
 0x52e   : > { %2860 = vst.msk [vmem:[#allocation7 + $0x30] sm:$0xf] %vm2847_vm4, %v5783_v19  ;;  %v5786_v21 = vpack.c.bf16 %v6232_v60, %v6232_v60 }
 0x52f   : > { %v2771_v9 = vpop.f32.mrf.mxu1 }
 0x530   : > { %2863 = vst.msk [vmem:[#allocation7 + $0x3c] sm:$0xf] %vm2847_vm4, %v5786_v21  ;;  %v5784_v10 = vpack.c.bf16 %v2771_v9, %v2771_v9 }
 0x531   : > { %v6251_v38 = vpop.f32.mrf.mxu1 }
 0x532   : > { %2861 = vst.msk [vmem:[#allocation7 + $0x34] sm:$0xf] %vm2847_vm4, %v5784_v10  ;;  %v8977_v11 = vadd.f32 %v6251_v38, %v8692_v58 }
 0x533   : > { %v3122_v51 = vpop.f32.mrf.mxu1 }
 0x534   : > { %v8980_v6 = vadd.f32 %v3122_v51, %v8702_v4  ;;  %3189 = vmax.xlane.f32.xlu0 %v8977_v11 }
 0x535   : > { %v6252_v57 = vpop.f32.mrf.mxu1 }
 0x536   : > { %3185 = vmax.xlane.f32.xlu1 %v8980_v6  ;;  %v8985_v43 = vadd.f32 %v6252_v57, %v8713_v28 }
 0x537   : > { %v3125_v41 = vpop.f32.mrf.mxu1 }
 0x538   : > { %v8988_v63 = vadd.f32 %v3125_v41, %v8707_v54 }
 0x539   : > { %v6255_v62 = vpop.f32.mrf.mxu1 }
 0x53a   : > { %3187 = vmax.xlane.f32.xlu0 %v8988_v63  ;;  %3191 = vmax.xlane.f32.xlu1 %v8985_v43  ;;  %v8995_v1 = vadd.f32 %v6255_v62, %v8728_v15 }
 0x53b   : > { %v3138_v40 = vpop.f32.mrf.mxu1 }
 0x53c   : > { %v9003_v18 = vadd.f32 %v3138_v40, %v8735_v30 }
 0x53d   : > { %v6256_v49 = vpop.f32.mrf.mxu1 }
 0x53e   : > { %v8998_v53 = vadd.f32 %v6256_v49, %v8783_v26 }
 0x53f   : > { %v3141_v8 = vpop.f32.mrf.mxu1 }
 0x540   : > { %v9006_v20 = vadd.f32 %v3141_v8, %v8791_v44 }
 0x541   : > { %v6259_v55 = vpop.f32.mrf.mxu1 }
 0x542   : > { %v9011_v50 = vadd.f32 %v6259_v55, %v8746_v45 }
 0x543   : > { %v3154_v5 = vpop.f32.mrf.mxu1 }
 0x544   : > { %v9019_v34 = vadd.f32 %v3154_v5, %v8754_v61 }
 0x545   : > { %v6260_v35 = vpop.f32.mrf.mxu1 }
 0x546   : > { %v9014_v39 = vadd.f32 %v6260_v35, %v8800_v56 }
 0x547   : > { %v3157_v14 = vpop.f32.mrf.mxu1 }
 0x548   : > { %v9022_v32 = vadd.f32 %v3157_v14, %v8809_v36 }
 0x549   : > { %v6263_v2 = vpop.f32.mrf.mxu1 }
 0x54a   : > { %v9027_v31 = vadd.f32 %v6263_v2, %v8765_v17 }
 0x54b   : > { %3379 = vrot.lane.b32.xlu1 %v6638_v23, %s7054_s16  ;;  %v3170_v52 = vpop.f32.mrf.mxu1 }
 0x54c   : > { %v9031_v24 = vadd.f32 %v3170_v52, %v8772_v42 }
 0x54d   : > { %v6264_v25 = vpop.f32.mrf.mxu1 }
 0x54e   : > { %v9040_v33 = vadd.f32 %v6264_v25, %v8819_v48 }
 0x54f   : > { %v3173_v3 = vpop.f32.mrf.mxu1 }
 0x550   : > { %3381 = vrot.lane.b32.xlu0 %v6639_v22, %s7054_s16  ;;  %v9044_v59 = vadd.f32 %v3173_v3, %v8827_v27  ;;  %v6645_v22 = vld [vmem:[#allocation5 + $0x20] sm:$0xff]  }
 0x56f   : > { %3197 = vmax.xlane.f32.xlu0 %v8995_v1  ;;  %3199 = vmax.xlane.f32.xlu1 %v8998_v53 }
 0x573   : > { %3195 = vmax.xlane.f32.xlu1 %v9006_v20  ;;  %3193 = vmax.xlane.f32.xlu0 %v9003_v18 }
 0x577   : > { %3205 = vmax.xlane.f32.xlu0 %v9011_v50  ;;  %3207 = vmax.xlane.f32.xlu1 %v9014_v39 }
 0x57b   : > { %3203 = vmax.xlane.f32.xlu1 %v9022_v32  ;;  %3201 = vmax.xlane.f32.xlu0 %v9019_v34 }
 0x57f   : > { %3213 = vmax.xlane.f32.xlu0 %v9027_v31 }
 0x583   : > { %3209 = vmax.xlane.f32.xlu0 %v9031_v24 }
 0x58c   : > { %3785 = vrot.lane.b32.xlu1 %v6640_v46, %s7053_s18 }
 0x599   : > { %3377 = vrot.lane.b32.xlu0 %v6641_v13, %s7054_s16 }
 0x59d   : > { %3783 = vrot.lane.b32.xlu0 %v6642_v12, %s7053_s18 }
 0x5a1   : > { %3781 = vrot.lane.b32.xlu0 %v6643_v47, %s7053_s18 }
 0x5a5   : > { %3777 = vrot.lane.b32.xlu0 %v6644_v16, %s7053_s18 }
 0x5b0   : > { %3215 = vmax.xlane.f32.xlu1 %v9040_v33 }
 0x5b4   : > { %3211 = vmax.xlane.f32.xlu1 %v9044_v59 }
 0x5bd   : > { %v3190_v29 = vpop.xlane.xlu0 %3189 }
 0x5be   : > { %v3219_v0 = vsub.f32 %v8977_v11, %v3190_v29 }
 0x5bf   : > { %v3186_v37 = vpop.xlane.xlu1 %3185 }
 0x5c0   : > { %v3237_v7 = vmul.f32 1.442695, %v3219_v0  ;;  %v3217_v19 = vsub.f32 %v8980_v6, %v3186_v37 }
 0x5c2   : > { %6769 = vpow2.f32 %v3237_v7  ;;  %v3233_v60 = vmul.f32 1.442695, %v3217_v19 }
 0x5c3   : > { %v3192_v21 = vpop.xlane.xlu1 %3191  ;;  %v3188_v9 = vpop.xlane.xlu0 %3187 }
 0x5c4   : > { %v3220_v10 = vsub.f32 %v8985_v43, %v3192_v21  ;;  %6771 = vpow2.f32 %v3233_v60  ;;  %v3218_v51 = vsub.f32 %v8988_v63, %v3188_v9 }
 0x5c6   : > { %v3239_v38 = vmul.f32 1.442695, %v3220_v10  ;;  %v3235_v11 = vmul.f32 1.442695, %v3218_v51 }
 0x5c7   : > { %v3382_v57 = vpop.permute.xlu0 %3381  ;;  %v3380_v41 = vpop.permute.xlu1 %3379 }
 0x5c8   : > { %6275 = vmatprep.subr.bf16.mxu0 %v3382_v57  ;;  %6773 = vpow2.f32 %v3239_v38 }
 0x5c9   : > { %6276 = vmatpush3.bf16.msra.mxu0 %v3382_v57  ;;  %6775 = vpow2.f32 %v3235_v11 }
 0x5ca   : > { %6277 = vmatprep.subr.bf16.mxu0 %v3380_v41 }
 0x5cd   : > { %6278 = vmatpush3.bf16.msra.mxu0 %v3380_v41 }
 0x5cf   : > { %v9051_v6 = vpop.eup %6769 }
 0x5d0   : > { %3269 = vadd.xlane.f32.xlu1 %v9051_v6 }
 0x5d1   : > { %v9054_v23 = vpop.eup %6771 }
 0x5d4   : > { %3265 = vadd.xlane.f32.xlu1 %v9054_v23 }
 0x5d5   : > { %v9057_v43 = vpop.eup %6773 }
 0x5d6   : > { %v9060_v63 = vpop.eup %6775 }
 0x5d8   : > { %3271 = vadd.xlane.f32.xlu1 %v9057_v43 }
 0x5dc   : > { %3267 = vadd.xlane.f32.xlu1 %v9060_v63 }
 0x5ed   : > { %3779 = vrot.lane.b32.xlu1 %v6645_v22, %s7053_s18 }
 0x5f8   : > { %v3200_v62 = vpop.xlane.xlu1 %3199  ;;  %v3198_v40 = vpop.xlane.xlu0 %3197 }
 0x5f9   : > { %v3223_v49 = vsub.f32 %v8995_v1, %v3198_v40  ;;  %v3224_v2 = vsub.f32 %v8998_v53, %v3200_v62 }
 0x5fb   : > { %v3245_v8 = vmul.f32 1.442695, %v3223_v49  ;;  %v3247_v12 = vmul.f32 1.442695, %v3224_v2 }
 0x5fc   : > { %v3196_v55 = vpop.xlane.xlu1 %3195  ;;  %v3194_v5 = vpop.xlane.xlu0 %3193 }
 0x5fd   : > { %v3222_v35 = vsub.f32 %v9006_v20, %v3196_v55  ;;  %v3221_v14 = vsub.f32 %v9003_v18, %v3194_v5  ;;  %6777 = vpow2.f32 %v3245_v8 }
 0x5ff   : > { %v3243_v52 = vmul.f32 1.442695, %v3222_v35  ;;  %v3241_v46 = vmul.f32 1.442695, %v3221_v14 }
 0x600   : > { %v3206_v13 = vpop.xlane.xlu0 %3205  ;;  %v3208_v1 = vpop.xlane.xlu1 %3207 }
 0x601   : > { %6779 = vpow2.f32 %v3243_v52  ;;  %v3227_v47 = vsub.f32 %v9011_v50, %v3206_v13  ;;  %v3228_v53 = vsub.f32 %v9014_v39, %v3208_v1  ;;  %v6647_v13 = vld [vmem:[#allocation5 + $0x8] sm:$0xff]  }
 0x602   : > { %6781 = vpow2.f32 %v3241_v46  ;;  %v6646_v46 = vld [vmem:[#allocation5 + $0x10] sm:$0xff]   ;;  %v6651_v1 = vld [vmem:[#allocation4 + $0x8] sm:$0xff]  }
 0x603   : > { %6783 = vpow2.f32 %v3247_v12  ;;  %v3253_v25 = vmul.f32 1.442695, %v3227_v47  ;;  %v6649_v12 = vld [vmem:[#allocation5] sm:$0xff]  }
 0x604   : > { %v3202_v16 = vpop.xlane.xlu0 %3201  ;;  %v3204_v7 = vpop.xlane.xlu1 %3203 }
 0x605   : > { %v3225_v3 = vsub.f32 %v9019_v34, %v3202_v16  ;;  %6785 = vpow2.f32 %v3253_v25  ;;  %v3255_v34 = vmul.f32 1.442695, %v3228_v53  ;;  %v3226_v21 = vsub.f32 %v9022_v32, %v3204_v7  ;;  %v6650_v16 = vld [vmem:[#allocation4 + $0x10] sm:$0xff]   ;;  %v6652_v25 = vld [vmem:[#allocation4 + $0x20] sm:$0xff]   ;;  %v6655_v53 = vld [vmem:[#allocation4 + $0x28] sm:$0xff]  }
 0x607   : > { %v3249_v0 = vmul.f32 1.442695, %v3225_v3  ;;  %v6653_v3 = vld [vmem:[#allocation4 + $0x18] sm:$0xff]  }
 0x608   : > { %v3214_v20 = vpop.xlane.xlu0 %3213  ;;  %v9083_v10 = vpop.permute.xlu1 %3785 }
 0x609   : > { %v3231_v18 = vsub.f32 %v9027_v31, %v3214_v20  ;;  %v6654_v20 = vld [vmem:[#allocation4 + $0x30] sm:$0xff]  }
 0x60a   : > { %v9071_v29 = vpop.eup %6777 }
 0x60b   : > { %v3261_v37 = vmul.f32 1.442695, %v3231_v18  ;;  %3277 = vadd.xlane.f32.xlu0 %v9071_v29 }
 0x60c   : > { %v3210_v50 = vpop.xlane.xlu0 %3209 }
 0x60d   : > { %6787 = vpow2.f32 %v3261_v37  ;;  %v3229_v19 = vsub.f32 %v9031_v24, %v3210_v50  ;;  %v3251_v24 = vmul.f32 1.442695, %v3226_v21  ;;  %v6656_v50 = vld [vmem:[#allocation6 + $0x30] sm:$0xff]  }
 0x60e   : > { %v9076_v60 = vpop.eup %6779  ;;  %6789 = vpow2.f32 %v3249_v0 }
 0x60f   : > { %v3257_v31 = vmul.f32 1.442695, %v3229_v19  ;;  %v9079_v9 = vpop.eup %6781  ;;  %3275 = vadd.xlane.f32.xlu0 %v9076_v60 }
 0x610   : > { %v3378_v39 = vpop.permute.xlu0 %3377  ;;  %v9087_v32 = vpop.eup %6783 }
 0x611   : > { %6791 = vpow2.f32 %v3257_v31  ;;  %3273 = vadd.xlane.f32.xlu1 %v9079_v9  ;;  %6279 = vmatprep.subr.bf16.mxu0 %v3378_v39 }
 0x612   : > { %6280 = vmatpush3.bf16.msra.mxu0 %v3378_v39  ;;  %6793 = vpow2.f32 %v3255_v34  ;;  %v9090_v38 = vpop.eup %6785  ;;  %v6657_v34 = vld [vmem:[#allocation4 + $0x38] sm:$0xff]  }
 0x613   : > { %6489 = vmatprep.subr.msk.bf16.mxu0 %vm909_vm0, %v9083_v10  ;;  %6795 = vpow2.f32 %v3251_v24 }
 0x615   : > { %3279 = vadd.xlane.f32.xlu1 %v9087_v32 }
 0x619   : > { %3285 = vadd.xlane.f32.xlu1 %v9090_v38 }
 0x61a   : > { %v9093_v51 = vpop.eup %6787 }
 0x61b   : > { %3293 = vadd.xlane.f32.xlu0 %v9093_v51  ;;  %v9096_v57 = vpop.eup %6789 }
 0x61d   : > { %3281 = vadd.xlane.f32.xlu1 %v9096_v57 }
 0x61e   : > { %v9099_v41 = vpop.eup %6791 }
 0x61f   : > { %3289 = vadd.xlane.f32.xlu0 %v9099_v41  ;;  %v9102_v11 = vpop.eup %6793 }
 0x620   : > { %v9105_v22 = vpop.eup %6795 }
 0x621   : > { %3287 = vadd.xlane.f32.xlu1 %v9102_v11 }
 0x625   : > { %3283 = vadd.xlane.f32.xlu1 %v9105_v22 }
 0x639   : > { %v3216_v62 = vpop.xlane.xlu1 %3215 }
 0x63a   : > { %v3232_v40 = vsub.f32 %v9040_v33, %v3216_v62 }
 0x63c   : > { %v3263_v49 = vmul.f32 1.442695, %v3232_v40  ;;  %v6658_v40 = vld [vmem:[#allocation6 + $0x38] sm:$0xff]  }
 0x63d   : > { %v3212_v8 = vpop.xlane.xlu1 %3211 }
 0x63e   : > { %6797 = vpow2.f32 %v3263_v49  ;;  %v3230_v55 = vsub.f32 %v9044_v59, %v3212_v8  ;;  %v6648_v59 = vld [vmem:[#allocation4] sm:$0xff]   ;;  %v3833_v49 = vsel %vm909_vm0, %v9083_v10, 0 }
 0x640   : > { %v3259_v5 = vmul.f32 1.442695, %v3230_v55  ;;  %v6661_v55 = vld [vmem:[#allocation6 + $0x18] sm:$0xff]  }
 0x642   : > { %6799 = vpow2.f32 %v3259_v5 }
 0x64b   : > { %v9110_v35 = vpop.eup %6797 }
 0x64c   : > { %3295 = vadd.xlane.f32.xlu0 %v9110_v35 }
 0x64f   : > { %v9113_v14 = vpop.eup %6799 }
 0x650   : > { %3291 = vadd.xlane.f32.xlu1 %v9113_v14 }
 0x659   : > { %v3270_v2 = vpop.xlane.xlu1 %3269 }
 0x65d   : > { %v3266_v52 = vpop.xlane.xlu1 %3265 }
 0x661   : > { %v3272_v33 = vpop.xlane.xlu1 %3271  ;;  %3775 = vrot.lane.b32.xlu1 %v6646_v46, %s7053_s18 }
 0x662   : > { %3773 = vrot.lane.b32.xlu0 %v6647_v13, %s7053_s18  ;;  %6801 = vrcp.f32 %v3272_v33 }
 0x663   : > { %6803 = vrcp.f32 %v3266_v52 }
 0x664   : > { %6805 = vrcp.f32 %v3270_v2 }
 0x665   : > { %v3268_v47 = vpop.xlane.xlu1 %3267  ;;  %3715 = vrot.lane.b32.xlu1 %v6648_v59, %s7053_s18 }
 0x666   : > { %6807 = vrcp.f32 %v3268_v47  ;;  %3771 = vrot.lane.b32.xlu0 %v6649_v12, %s7053_s18 }
 0x669   : > { %3719 = vrot.lane.b32.xlu1 %v6650_v16, %s7053_s18  ;;  %v3780_v5 = vpop.permute.xlu1 %3779 }
 0x66a   : > { %3717 = vrot.lane.b32.xlu0 %v6651_v1, %s7053_s18  ;;  %v3824_v52 = vsel %vm909_vm0, %v3780_v5, 0 }
 0x66d   : > { %3723 = vrot.lane.b32.xlu1 %v6652_v25, %s7053_s18 }
 0x66e   : > { %3721 = vrot.lane.b32.xlu0 %v6653_v3, %s7053_s18 }
 0x66f   : > { %v6802_v18 = vpop.eup %6801 }
 0x670   : > { %v6804_v0 = vpop.eup %6803  ;;  %v3316_v19 = vmul.f32 %v6802_v18, %v9057_v43  ;;  %v3784_v43 = vpop.permute.xlu0 %3783 }
 0x671   : > { %3727 = vrot.lane.b32.xlu1 %v6654_v20, %s7053_s18  ;;  %v6806_v37 = vpop.eup %6805  ;;  %v3313_v21 = vmul.f32 %v6804_v0, %v9054_v23  ;;  %v6659_v23 = vld [vmem:[#allocation6 + $0x28] sm:$0xff]  }
 0x672   : > { %3725 = vrot.lane.b32.xlu0 %v6655_v53, %s7053_s18  ;;  %v3315_v39 = vmul.f32 %v6806_v37, %v9051_v6  ;;  %v6660_v6 = vld [vmem:[#allocation6 + $0x20] sm:$0xff]  }
 0x673   : > { %v6808_v7 = vpop.eup %6807 }
 0x674   : > { %v3314_v31 = vmul.f32 %v6808_v7, %v9060_v63  ;;  %v3330_v62 = vpack.c.bf16 %v3316_v19, %v3315_v39  ;;  %v3830_v63 = vsel %vm909_vm0, %v3784_v43, 0  ;;  %v3782_v8 = vpop.permute.xlu0 %3781 }
 0x675   : > { %4136 = vrot.lane.b32.xlu1 %v6656_v50, %s7053_s18  ;;  %v3827_v10 = vsel %vm909_vm0, %v3782_v8, 0 }
 0x676   : > { %3729 = vrot.lane.b32.xlu0 %v6657_v34, %s7053_s18  ;;  %v3329_v24 = vpack.c.bf16 %v3314_v31, %v3313_v21 }
 0x678   : > { %6281 = vmatprep.mubr.bf16.mxu0 %v3329_v24  ;;  %v3778_v2 = vpop.permute.xlu0 %3777 }
 0x679   : > { %6282 = vmatmul.mubr.bf16.vlgmr.msra.gmra.mxu0 %v3330_v62  ;;  %v3821_v33 = vsel %vm909_vm0, %v3778_v2, 0 }
 0x67a   : > { %6298 = vmatpush3.bf16.xpose.msra.mxu0 %v3833_v49  ;;  %4138 = vrot.lane.b32.xlu0 %v6658_v40, %s7053_s18 }
 0x67b   : > { %6490 = vmatprep.subr.msk.bf16.mxu0 %vm909_vm0, %v3784_v43 }
 0x67e   : > { %4134 = vrot.lane.b32.xlu0 %v6659_v23, %s7053_s18 }
 0x682   : > { %6300 = vmatpush3.bf16.xpose.msra.mxu0 %v3830_v63  ;;  %4132 = vrot.lane.b32.xlu0 %v6660_v6, %s7053_s18 }
 0x683   : > { %6491 = vmatprep.subr.msk.bf16.mxu0 %vm909_vm0, %v3782_v8 }
 0x686   : > { %4130 = vrot.lane.b32.xlu0 %v6661_v55, %s7053_s18 }
 0x68a   : > { %6302 = vmatpush3.bf16.xpose.msra.mxu0 %v3827_v10 }
 0x68b   : > { %6492 = vmatprep.subr.msk.bf16.mxu0 %vm909_vm0, %v3780_v5 }
 0x692   : > { %6304 = vmatpush3.bf16.xpose.msra.mxu0 %v3824_v52 }
 0x693   : > { %6493 = vmatprep.subr.msk.bf16.mxu0 %vm909_vm0, %v3778_v2 }
 0x694   : > { %v3278_v46 = vpop.xlane.xlu0 %3277 }
 0x698   : > { %v3276_v13 = vpop.xlane.xlu0 %3275 }
 0x699   : > { %6809 = vrcp.f32 %v3276_v13 }
 0x69a   : > { %6306 = vmatpush3.bf16.xpose.msra.mxu0 %v3821_v33  ;;  %v3274_v59 = vpop.xlane.xlu1 %3273 }
 0x69b   : > { %6811 = vrcp.f32 %v3274_v59 }
 0x69c   : > { %6813 = vrcp.f32 %v3278_v46 }
 0x69e   : > { %v3280_v12 = vpop.xlane.xlu1 %3279 }
 0x69f   : > { %6815 = vrcp.f32 %v3280_v12 }
 0x6a2   : > { %v3286_v47 = vpop.xlane.xlu1 %3285 }
 0x6a6   : > { %v3282_v16 = vpop.xlane.xlu1 %3281  ;;  %v6810_v1 = vpop.eup %6809 }
 0x6a7   : > { %v3318_v20 = vmul.f32 %v6810_v1, %v9076_v60 }
 0x6a8   : > { %v6812_v25 = vpop.eup %6811 }
 0x6a9   : > { %v3317_v3 = vmul.f32 %v6812_v25, %v9079_v9  ;;  %v6814_v18 = vpop.eup %6813 }
 0x6aa   : > { %v3288_v53 = vpop.xlane.xlu1 %3287  ;;  %v3319_v7 = vmul.f32 %v6814_v18, %v9071_v29 }
 0x6ab   : > { %v3331_v0 = vpack.c.bf16 %v3318_v20, %v3317_v3  ;;  %6817 = vrcp.f32 %v3288_v53 }
 0x6ac   : > { %v6816_v37 = vpop.eup %6815  ;;  %6819 = vrcp.f32 %v3282_v16 }
 0x6ad   : > { %6285 = vmatprep.mubr.bf16.mxu0 %v3331_v0  ;;  %v3320_v50 = vmul.f32 %v6816_v37, %v9087_v32  ;;  %6821 = vrcp.f32 %v3286_v47  ;;  %v3294_v32 = vpop.xlane.xlu0 %3293 }
 0x6ae   : > { %v3284_v19 = vpop.xlane.xlu1 %3283 }
 0x6af   : > { %6823 = vrcp.f32 %v3284_v19  ;;  %v3332_v34 = vpack.c.bf16 %v3320_v50, %v3319_v7 }
 0x6b1   : > { %6286 = vmatmul.mubr.bf16.gmra.mxu0 %v3332_v34  ;;  %v3290_v43 = vpop.xlane.xlu0 %3289 }
 0x6b8   : > { %v6818_v21 = vpop.eup %6817 }
 0x6b9   : > { %v6820_v9 = vpop.eup %6819  ;;  %v3324_v39 = vmul.f32 %v6818_v21, %v9102_v11 }
 0x6ba   : > { %v6822_v31 = vpop.eup %6821  ;;  %v3321_v24 = vmul.f32 %v6820_v9, %v9096_v57 }
 0x6bb   : > { %v3323_v40 = vmul.f32 %v6822_v31, %v9090_v38 }
 0x6bc   : > { %v6824_v60 = vpop.eup %6823 }
 0x6bd   : > { %v3322_v62 = vmul.f32 %v6824_v60, %v9105_v22  ;;  %v3334_v49 = vpack.c.bf16 %v3324_v39, %v3323_v40 }
 0x6bf   : > { %v3333_v29 = vpack.c.bf16 %v3322_v62, %v3321_v24 }
 0x6c1   : > { %6289 = vmatprep.mubr.bf16.mxu0 %v3333_v29 }
 0x6c2   : > { %6290 = vmatmul.mubr.bf16.gmra.mxu0 %v3334_v49 }
 0x6d5   : > { %v3296_v23 = vpop.xlane.xlu0 %3295 }
 0x6d6   : > { %6825 = vrcp.f32 %v3296_v23 }
 0x6d7   : > { %6827 = vrcp.f32 %v3290_v43 }
 0x6d8   : > { %6829 = vrcp.f32 %v3294_v32 }
 0x6d9   : > { %v3292_v6 = vpop.xlane.xlu1 %3291  ;;  %v3774_v63 = vpop.permute.xlu0 %3773 }
 0x6da   : > { %6831 = vrcp.f32 %v3292_v6  ;;  %v3815_v46 = vsel %vm909_vm0, %v3774_v63, 0 }
 0x6dd   : > { %v3776_v11 = vpop.permute.xlu1 %3775  ;;  %v3772_v8 = vpop.permute.xlu0 %3771 }
 0x6de   : > { %6494 = vmatprep.subr.msk.bf16.mxu0 %vm909_vm0, %v3776_v11  ;;  %v3818_v57 = vsel %vm909_vm0, %v3776_v11, 0 }
 0x6df   : > { %6308 = vmatpush3.bf16.xpose.msra.mxu0 %v3818_v57 }
 0x6e0   : > { %6495 = vmatprep.subr.msk.bf16.mxu0 %vm909_vm0, %v3774_v63 }
 0x6e1   : > { %v3716_v38 = vpop.permute.xlu1 %3715  ;;  %v3718_v22 = vpop.permute.xlu0 %3717 }
 0x6e3   : > { %v6826_v55 = vpop.eup %6825 }
 0x6e4   : > { %v6828_v10 = vpop.eup %6827  ;;  %v3328_v33 = vmul.f32 %v6826_v55, %v9110_v35  ;;  %v3812_v35 = vsel %vm909_vm0, %v3772_v8, 0  ;;  %v6663_v55 = vld [vmem:[#allocation6 + $0x10] sm:$0xff]  }
 0x6e5   : > { %v3720_v5 = vpop.permute.xlu1 %3719  ;;  %v3722_v2 = vpop.permute.xlu0 %3721  ;;  %v3325_v59 = vmul.f32 %v6828_v10, %v9099_v41 }
 0x6e6   : > { %v6830_v52 = vpop.eup %6829 }
 0x6e7   : > { %v6832_v13 = vpop.eup %6831  ;;  %6310 = vmatpush3.bf16.xpose.msra.mxu0 %v3815_v46  ;;  %v3327_v1 = vmul.f32 %v6830_v52, %v9093_v51 }
 0x6e8   : > { %6496 = vmatprep.subr.msk.bf16.mxu0 %vm909_vm0, %v3772_v8  ;;  %v3326_v12 = vmul.f32 %v6832_v13, %v9113_v14 }
 0x6e9   : > { %v3724_v47 = vpop.permute.xlu1 %3723  ;;  %v3726_v16 = vpop.permute.xlu0 %3725  ;;  %v3336_v3 = vpack.c.bf16 %v3328_v33, %v3327_v1 }
 0x6ea   : > { %v3335_v25 = vpack.c.bf16 %v3326_v12, %v3325_v59 }
 0x6ec   : > { %6293 = vmatprep.mubr.bf16.mxu0 %v3335_v25 }
 0x6ed   : > { %v3728_v20 = vpop.permute.xlu1 %3727  ;;  %6294 = vmatmul.mubr.bf16.gmra.mxu0 %v3336_v3  ;;  %v3730_v18 = vpop.permute.xlu0 %3729 }
 0x6ee   : > { %6313 = vmatprep.mubr.msk.bf16.mxu0 %vm909_vm0, %v3716_v38 }
 0x6ef   : > { %6312 = vmatpush3.bf16.xpose.msra.mxu0 %v3812_v35 }
 0x6f1   : > { %v4139_v53 = vpop.permute.xlu0 %4138  ;;  %v4137_v41 = vpop.permute.xlu1 %4136 }
 0x6f2   : > { %6329 = vmatprep.subr.bf16.mxu1 %v4139_v53 }
 0x6f3   : > { %6330 = vmatpush3.bf16.msra.mxu1 %v4139_v53 }
 0x6f4   : > { %6331 = vmatprep.subr.bf16.mxu1 %v4137_v41 }
 0x6f5   : > { %v4135_v14 = vpop.permute.xlu0 %4134 }
 0x6f6   : > { %6314 = vmatmul.mubr.msk.bf16.vlgmr.msra.gmra.mxu0 %vm909_vm0, %v3718_v22  ;;  %v6662_v22 = vld [vmem:[#allocation6 + $0x8] sm:$0xff]  }
 0x6f7   : > { %6317 = vmatprep.mubr.msk.bf16.mxu0 %vm909_vm0, %v3720_v5  ;;  %6332 = vmatpush3.bf16.msra.mxu1 %v4137_v41 }
 0x6f8   : > { %6333 = vmatprep.subr.bf16.mxu1 %v4135_v14 }
 0x6f9   : > { %v4133_v51 = vpop.permute.xlu0 %4132 }
 0x6fb   : > { %6334 = vmatpush3.bf16.msra.mxu1 %v4135_v14 }
 0x6fc   : > { %6335 = vmatprep.subr.bf16.mxu1 %v4133_v51 }
 0x6fd   : > { %v4131_v0 = vpop.permute.xlu0 %4130 }
 0x6fe   : > { %6318 = vmatmul.mubr.msk.bf16.gmra.mxu0 %vm909_vm0, %v3722_v2 }
 0x6ff   : > { %6321 = vmatprep.mubr.msk.bf16.mxu0 %vm909_vm0, %v3724_v47  ;;  %6336 = vmatpush3.bf16.msra.mxu1 %v4133_v51  ;;  %v6664_v51 = vld [vmem:[#allocation5 + $0x38] sm:$0xff]  }
 0x700   : > { %6337 = vmatprep.subr.bf16.mxu1 %v4131_v0 }
 0x703   : > { %6338 = vmatpush3.bf16.msra.mxu1 %v4131_v0  ;;  %v6665_v0 = vld [vmem:[#allocation6] sm:$0xff]  }
 0x706   : > { %6322 = vmatmul.mubr.msk.bf16.gmra.mxu0 %vm909_vm0, %v3726_v16 }
 0x707   : > { %6325 = vmatprep.mubr.msk.bf16.mxu0 %vm909_vm0, %v3728_v20 }
 0x70e   : > { %6326 = vmatmul.mubr.msk.bf16.gmra.mxu0 %vm909_vm0, %v3730_v18 }
 0x739   : > { %v9172_v37 = vpop.f32.mrf.mxu0 }
 0x73b   : > { %v9174_v7 = vpop.f32.mrf.mxu0 }
 0x73d   : > { %v9176_v50 = vpop.f32.mrf.mxu0 }
 0x73f   : > { %v9178_v19 = vpop.f32.mrf.mxu0 }
 0x771   : > { %v9180_v34 = vpop.f32.mrf.mxu0 }
 0x773   : > { %v9182_v21 = vpop.f32.mrf.mxu0 }
 0x775   : > { %v9184_v9 = vpop.f32.mrf.mxu0 }
 0x777   : > { %v9186_v31 = vpop.f32.mrf.mxu0 }
 0x782   : > { %v9188_v60 = vpop.f32.mrf.mxu0 }
 0x784   : > { %v9190_v39 = vpop.f32.mrf.mxu0 }
 0x786   : > { %v9192_v24 = vpop.f32.mrf.mxu0 }
 0x788   : > { %v9194_v62 = vpop.f32.mrf.mxu0 }
 0x7ad   : > { %v9196_v40 = vpop.f32.mrf.mxu0 }
 0x7af   : > { %v9198_v29 = vpop.f32.mrf.mxu0 }
 0x7b1   : > { %v9200_v49 = vpop.f32.mrf.mxu0 }
 0x7b3   : > { %v9202_v32 = vpop.f32.mrf.mxu0 }
 0x7b6   : > { %v6315_v43 = vpop.f32.mrf.mxu0 }
 0x7b7   : > { %v9205_v23 = vadd.f32 %v6315_v43, %v8692_v58  ;;  %v6666_v43 = vld [vmem:[#allocation5 + $0x30] sm:$0xff]  }
 0x7b8   : > { %v3869_v6 = vpop.f32.mrf.mxu0 }
 0x7b9   : > { %v9208_v63 = vadd.f32 %v3869_v6, %v8702_v4  ;;  %3936 = vmax.xlane.f32.xlu0 %v9205_v23  ;;  %v6667_v6 = vld [vmem:[#allocation5 + $0x28] sm:$0xff]  }
 0x7ba   : > { %v6316_v11 = vpop.f32.mrf.mxu0 }
 0x7bb   : > { %3932 = vmax.xlane.f32.xlu1 %v9208_v63  ;;  %v9213_v57 = vadd.f32 %v6316_v11, %v8713_v28  ;;  %v6668_v11 = vld [vmem:[#allocation5 + $0x18] sm:$0xff]  }
 0x7bc   : > { %v3872_v8 = vpop.f32.mrf.mxu0 }
 0x7bd   : > { %v9216_v38 = vadd.f32 %v3872_v8, %v8707_v54 }
 0x7be   : > { %v6319_v10 = vpop.f32.mrf.mxu0 }
 0x7bf   : > { %3934 = vmax.xlane.f32.xlu0 %v9216_v38  ;;  %3938 = vmax.xlane.f32.xlu1 %v9213_v57  ;;  %v9223_v13 = vadd.f32 %v6319_v10, %v8728_v15 }
 0x7c0   : > { %v3885_v5 = vpop.f32.mrf.mxu0 }
 0x7c1   : > { %v9231_v12 = vadd.f32 %v3885_v5, %v8735_v30 }
 0x7c2   : > { %v6320_v2 = vpop.f32.mrf.mxu0 }
 0x7c3   : > { %v9226_v33 = vadd.f32 %v6320_v2, %v8783_v26 }
 0x7c4   : > { %v3888_v52 = vpop.f32.mrf.mxu0 }
 0x7c5   : > { %v9234_v47 = vadd.f32 %v3888_v52, %v8791_v44 }
 0x7c6   : > { %v6323_v46 = vpop.f32.mrf.mxu0 }
 0x7c7   : > { %v9239_v1 = vadd.f32 %v6323_v46, %v8746_v45 }
 0x7c8   : > { %v3901_v59 = vpop.f32.mrf.mxu0 }
 0x7c9   : > { %v9247_v20 = vadd.f32 %v3901_v59, %v8754_v61 }
 0x7ca   : > { %v6324_v16 = vpop.f32.mrf.mxu0 }
 0x7cb   : > { %v9242_v25 = vadd.f32 %v6324_v16, %v8800_v56 }
 0x7cc   : > { %v3904_v3 = vpop.f32.mrf.mxu0 }
 0x7cd   : > { %v9250_v18 = vadd.f32 %v3904_v3, %v8809_v36 }
 0x7ce   : > { %v6327_v35 = vpop.f32.mrf.mxu0 }
 0x7cf   : > { %v9255_v53 = vadd.f32 %v6327_v35, %v8765_v17 }
 0x7d0   : > { %4126 = vrot.lane.b32.xlu1 %v6662_v22, %s7053_s18  ;;  %v3917_v41 = vpop.f32.mrf.mxu0 }
 0x7d1   : > { %v9259_v14 = vadd.f32 %v3917_v41, %v8772_v42 }
 0x7d2   : > { %v6328_v8 = vpop.f32.mrf.mxu0 }
 0x7d3   : > { %v9268_v22 = vadd.f32 %v6328_v8, %v8819_v48  ;;  %v6669_v8 = vld [vmem:[#allocation5 + $0x20] sm:$0xff]  }
 0x7d5   : > { %4128 = vrot.lane.b32.xlu0 %v6663_v55, %s7053_s18  ;;  %v3920_v55 = vpop.f32.mrf.mxu0 }
 0x7d6   : > { %v9272_v10 = vadd.f32 %v3920_v55, %v8827_v27 }
 0x7f4   : > { %3944 = vmax.xlane.f32.xlu0 %v9223_v13  ;;  %3946 = vmax.xlane.f32.xlu1 %v9226_v33 }
 0x7f8   : > { %3942 = vmax.xlane.f32.xlu1 %v9234_v47  ;;  %3940 = vmax.xlane.f32.xlu0 %v9231_v12 }
 0x7fc   : > { %3952 = vmax.xlane.f32.xlu0 %v9239_v1  ;;  %3954 = vmax.xlane.f32.xlu1 %v9242_v25 }
 0x800   : > { %3950 = vmax.xlane.f32.xlu1 %v9250_v18  ;;  %3948 = vmax.xlane.f32.xlu0 %v9247_v20 }
 0x804   : > { %3960 = vmax.xlane.f32.xlu0 %v9255_v53 }
 0x808   : > { %3956 = vmax.xlane.f32.xlu0 %v9259_v14 }
 0x811   : > { %4532 = vrot.lane.b32.xlu1 %v6664_v51, %s7051_s13 }
 0x81e   : > { %4124 = vrot.lane.b32.xlu0 %v6665_v0, %s7053_s18 }
 0x822   : > { %4530 = vrot.lane.b32.xlu0 %v6666_v43, %s7051_s13 }
 0x826   : > { %4528 = vrot.lane.b32.xlu0 %v6667_v6, %s7051_s13 }
 0x82a   : > { %4524 = vrot.lane.b32.xlu0 %v6668_v11, %s7051_s13 }
 0x835   : > { %3962 = vmax.xlane.f32.xlu1 %v9268_v22 }
 0x839   : > { %3958 = vmax.xlane.f32.xlu1 %v9272_v10 }
 0x842   : > { %v3937_v5 = vpop.xlane.xlu0 %3936 }
 0x843   : > { %v3966_v2 = vsub.f32 %v9205_v23, %v3937_v5 }
 0x844   : > { %v3933_v52 = vpop.xlane.xlu1 %3932 }
 0x845   : > { %v3984_v46 = vmul.f32 1.442695, %v3966_v2  ;;  %v3964_v59 = vsub.f32 %v9208_v63, %v3933_v52 }
 0x847   : > { %6833 = vpow2.f32 %v3984_v46  ;;  %v3980_v16 = vmul.f32 1.442695, %v3964_v59 }
 0x848   : > { %v3939_v3 = vpop.xlane.xlu1 %3938  ;;  %v3935_v35 = vpop.xlane.xlu0 %3934 }
 0x849   : > { %v3967_v41 = vsub.f32 %v9213_v57, %v3939_v3  ;;  %6835 = vpow2.f32 %v3980_v16  ;;  %v3965_v0 = vsub.f32 %v9216_v38, %v3935_v35 }
 0x84b   : > { %v3986_v51 = vmul.f32 1.442695, %v3967_v41  ;;  %v3982_v23 = vmul.f32 1.442695, %v3965_v0 }
 0x84c   : > { %v4129_v43 = vpop.permute.xlu0 %4128  ;;  %v4127_v6 = vpop.permute.xlu1 %4126 }
 0x84d   : > { %6339 = vmatprep.subr.bf16.mxu1 %v4129_v43  ;;  %6837 = vpow2.f32 %v3986_v51 }
 0x84e   : > { %6340 = vmatpush3.bf16.msra.mxu1 %v4129_v43  ;;  %6839 = vpow2.f32 %v3982_v23 }
 0x84f   : > { %6341 = vmatprep.subr.bf16.mxu1 %v4127_v6 }
 0x852   : > { %6342 = vmatpush3.bf16.msra.mxu1 %v4127_v6 }
 0x854   : > { %v9279_v63 = vpop.eup %6833 }
 0x855   : > { %4016 = vadd.xlane.f32.xlu1 %v9279_v63 }
 0x856   : > { %v9282_v11 = vpop.eup %6835 }
 0x859   : > { %4012 = vadd.xlane.f32.xlu1 %v9282_v11 }
 0x85a   : > { %v9285_v57 = vpop.eup %6837 }
 0x85b   : > { %v9288_v38 = vpop.eup %6839 }
 0x85d   : > { %4018 = vadd.xlane.f32.xlu1 %v9285_v57 }
 0x861   : > { %4014 = vadd.xlane.f32.xlu1 %v9288_v38 }
 0x872   : > { %4526 = vrot.lane.b32.xlu1 %v6669_v8, %s7051_s13 }
 0x87d   : > { %v3947_v55 = vpop.xlane.xlu1 %3946  ;;  %v3945_v5 = vpop.xlane.xlu0 %3944 }
 0x87e   : > { %v3970_v2 = vsub.f32 %v9223_v13, %v3945_v5  ;;  %v3971_v35 = vsub.f32 %v9226_v33, %v3947_v55 }
 0x880   : > { %v3992_v52 = vmul.f32 1.442695, %v3970_v2  ;;  %v3994_v43 = vmul.f32 1.442695, %v3971_v35 }
 0x881   : > { %v3943_v46 = vpop.xlane.xlu1 %3942  ;;  %v3941_v59 = vpop.xlane.xlu0 %3940 }
 0x882   : > { %v3969_v16 = vsub.f32 %v9234_v47, %v3943_v46  ;;  %v3968_v3 = vsub.f32 %v9231_v12, %v3941_v59  ;;  %6841 = vpow2.f32 %v3992_v52 }
 0x884   : > { %v3990_v41 = vmul.f32 1.442695, %v3969_v16  ;;  %v3988_v51 = vmul.f32 1.442695, %v3968_v3 }
 0x885   : > { %v3953_v0 = vpop.xlane.xlu0 %3952  ;;  %v3955_v13 = vpop.xlane.xlu1 %3954 }
 0x886   : > { %6843 = vpow2.f32 %v3990_v41  ;;  %v3974_v6 = vsub.f32 %v9239_v1, %v3953_v0  ;;  %v3975_v33 = vsub.f32 %v9242_v25, %v3955_v13 }
 0x887   : > { %6845 = vpow2.f32 %v3988_v51 }
 0x888   : > { %6847 = vpow2.f32 %v3994_v43  ;;  %v4000_v8 = vmul.f32 1.442695, %v3974_v6 }
 0x889   : > { %v3949_v23 = vpop.xlane.xlu0 %3948  ;;  %v3951_v46 = vpop.xlane.xlu1 %3950 }
 0x88a   : > { %v3972_v5 = vsub.f32 %v9247_v20, %v3949_v23  ;;  %6849 = vpow2.f32 %v4000_v8  ;;  %v4002_v20 = vmul.f32 1.442695, %v3975_v33  ;;  %v3973_v3 = vsub.f32 %v9250_v18, %v3951_v46 }
 0x88c   : > { %v3996_v55 = vmul.f32 1.442695, %v3972_v5 }
 0x88d   : > { %v3961_v47 = vpop.xlane.xlu0 %3960  ;;  %v9311_v41 = vpop.permute.xlu1 %4532 }
 0x88e   : > { %v3978_v12 = vsub.f32 %v9255_v53, %v3961_v47 }
 0x88f   : > { %v9299_v2 = vpop.eup %6841 }
 0x890   : > { %v4008_v52 = vmul.f32 1.442695, %v3978_v12  ;;  %4024 = vadd.xlane.f32.xlu0 %v9299_v2 }
 0x891   : > { %v3957_v1 = vpop.xlane.xlu0 %3956 }
 0x892   : > { %6851 = vpow2.f32 %v4008_v52  ;;  %v3976_v59 = vsub.f32 %v9259_v14, %v3957_v1  ;;  %v3998_v14 = vmul.f32 1.442695, %v3973_v3  ;;  %v6671_v3 = vld [vmem:[#allocation5 + $0x8] sm:$0xff]  }
 0x893   : > { %v9304_v16 = vpop.eup %6843  ;;  %6853 = vpow2.f32 %v3996_v55 }
 0x894   : > { %v4004_v53 = vmul.f32 1.442695, %v3976_v59  ;;  %v9307_v35 = vpop.eup %6845  ;;  %4022 = vadd.xlane.f32.xlu0 %v9304_v16 }
 0x895   : > { %v4125_v25 = vpop.permute.xlu0 %4124  ;;  %v9315_v18 = vpop.eup %6847 }
 0x896   : > { %6855 = vpow2.f32 %v4004_v53  ;;  %4020 = vadd.xlane.f32.xlu1 %v9307_v35  ;;  %6343 = vmatprep.subr.bf16.mxu1 %v4125_v25  ;;  %v6673_v53 = vld [vmem:[#allocation5] sm:$0xff]  }
 0x897   : > { %6344 = vmatpush3.bf16.msra.mxu1 %v4125_v25  ;;  %6857 = vpow2.f32 %v4002_v20  ;;  %v9318_v51 = vpop.eup %6849  ;;  %v6670_v20 = vld [vmem:[#allocation5 + $0x10] sm:$0xff]  }
 0x898   : > { %6497 = vmatprep.subr.msk.bf16.mxu1 %vm909_vm0, %v9311_v41  ;;  %6859 = vpow2.f32 %v3998_v14  ;;  %v6674_v14 = vld [vmem:[#allocation4 + $0x10] sm:$0xff]  }
 0x89a   : > { %4026 = vadd.xlane.f32.xlu1 %v9315_v18 }
 0x89e   : > { %4032 = vadd.xlane.f32.xlu1 %v9318_v51 }
 0x89f   : > { %v9321_v0 = vpop.eup %6851 }
 0x8a0   : > { %4040 = vadd.xlane.f32.xlu0 %v9321_v0  ;;  %v9324_v43 = vpop.eup %6853 }
 0x8a2   : > { %4028 = vadd.xlane.f32.xlu1 %v9324_v43 }
 0x8a3   : > { %v9327_v6 = vpop.eup %6855 }
 0x8a4   : > { %4036 = vadd.xlane.f32.xlu0 %v9327_v6  ;;  %v9330_v23 = vpop.eup %6857 }
 0x8a5   : > { %v9333_v13 = vpop.eup %6859 }
 0x8a6   : > { %4034 = vadd.xlane.f32.xlu1 %v9330_v23 }
 0x8aa   : > { %4030 = vadd.xlane.f32.xlu1 %v9333_v13 }
 0x8be   : > { %v3963_v8 = vpop.xlane.xlu1 %3962 }
 0x8bf   : > { %v3979_v5 = vsub.f32 %v9268_v22, %v3963_v8  ;;  %v6675_v8 = vld [vmem:[#allocation4 + $0x8] sm:$0xff]  }
 0x8c1   : > { %v4010_v47 = vmul.f32 1.442695, %v3979_v5  ;;  %v6676_v5 = vld [vmem:[#allocation4 + $0x20] sm:$0xff]  }
 0x8c2   : > { %v3959_v12 = vpop.xlane.xlu1 %3958 }
 0x8c3   : > { %6861 = vpow2.f32 %v4010_v47  ;;  %v3977_v33 = vsub.f32 %v9272_v10, %v3959_v12  ;;  %v6672_v10 = vld [vmem:[#allocation4] sm:$0xff]   ;;  %v6677_v47 = vld [vmem:[#allocation4 + $0x18] sm:$0xff]   ;;  %v6678_v12 = vld [vmem:[#allocation4 + $0x30] sm:$0xff]  }
 0x8c5   : > { %v4006_v55 = vmul.f32 1.442695, %v3977_v33 }
 0x8c7   : > { %6863 = vpow2.f32 %v4006_v55  ;;  %v6679_v55 = vld [vmem:[#allocation4 + $0x28] sm:$0xff]  }
 0x8d0   : > { %v9338_v52 = vpop.eup %6861 }
 0x8d1   : > { %4042 = vadd.xlane.f32.xlu0 %v9338_v52 }
 0x8d4   : > { %v9341_v46 = vpop.eup %6863 }
 0x8d5   : > { %4038 = vadd.xlane.f32.xlu1 %v9341_v46 }
 0x8de   : > { %v4017_v1 = vpop.xlane.xlu1 %4016 }
 0x8e2   : > { %v4013_v59 = vpop.xlane.xlu1 %4012 }
 0x8e6   : > { %v4019_v22 = vpop.xlane.xlu1 %4018  ;;  %4522 = vrot.lane.b32.xlu1 %v6670_v20, %s7051_s13 }
 0x8e7   : > { %4520 = vrot.lane.b32.xlu0 %v6671_v3, %s7051_s13  ;;  %6865 = vrcp.f32 %v4019_v22  ;;  %v6680_v3 = vld [vmem:[#allocation6 + $0x30] sm:$0xff]  }
 0x8e8   : > { %6867 = vrcp.f32 %v4013_v59 }
 0x8e9   : > { %6869 = vrcp.f32 %v4017_v1 }
 0x8ea   : > { %v4015_v25 = vpop.xlane.xlu1 %4014  ;;  %4462 = vrot.lane.b32.xlu1 %v6672_v10, %s7051_s13  ;;  %v6681_v10 = vld [vmem:[#allocation4 + $0x38] sm:$0xff]  }
 0x8eb   : > { %6871 = vrcp.f32 %v4015_v25  ;;  %4518 = vrot.lane.b32.xlu0 %v6673_v53, %s7051_s13 }
 0x8ee   : > { %4466 = vrot.lane.b32.xlu1 %v6674_v14, %s7051_s13 }
 0x8ef   : > { %4464 = vrot.lane.b32.xlu0 %v6675_v8, %s7051_s13 }
 0x8f2   : > { %4470 = vrot.lane.b32.xlu1 %v6676_v5, %s7051_s13 }
 0x8f3   : > { %4468 = vrot.lane.b32.xlu0 %v6677_v47, %s7051_s13  ;;  %v6682_v47 = vld [vmem:[#allocation6 + $0x38] sm:$0xff]  }
 0x8f4   : > { %v6866_v33 = vpop.eup %6865 }
 0x8f5   : > { %v6868_v1 = vpop.eup %6867  ;;  %v4063_v22 = vmul.f32 %v6866_v33, %v9285_v57  ;;  %v4531_v57 = vpop.permute.xlu0 %4530 }
 0x8f6   : > { %4474 = vrot.lane.b32.xlu1 %v6678_v12, %s7051_s13  ;;  %v6870_v59 = vpop.eup %6869  ;;  %v4060_v53 = vmul.f32 %v6868_v1, %v9282_v11  ;;  %v4580_v12 = vsel %vm909_vm0, %v9311_v41, 0  ;;  %v4577_v11 = vsel %vm909_vm0, %v4531_v57, 0  ;;  %v4527_v33 = vpop.permute.xlu1 %4526 }
 0x8f7   : > { %4472 = vrot.lane.b32.xlu0 %v6679_v55, %s7051_s13  ;;  %v4062_v14 = vmul.f32 %v6870_v59, %v9279_v63  ;;  %v4571_v41 = vsel %vm909_vm0, %v4527_v33, 0 }
 0x8f8   : > { %v6872_v20 = vpop.eup %6871 }
 0x8f9   : > { %v4061_v25 = vmul.f32 %v6872_v20, %v9288_v38  ;;  %v4077_v5 = vpack.c.bf16 %v4063_v22, %v4062_v14  ;;  %v4529_v38 = vpop.permute.xlu0 %4528 }
 0x8fa   : > { %4883 = vrot.lane.b32.xlu1 %v6680_v3, %s7051_s13  ;;  %v4574_v63 = vsel %vm909_vm0, %v4529_v38, 0 }
 0x8fb   : > { %4476 = vrot.lane.b32.xlu0 %v6681_v10, %s7051_s13  ;;  %v4076_v8 = vpack.c.bf16 %v4061_v25, %v4060_v53 }
 0x8fd   : > { %6345 = vmatprep.mubr.bf16.mxu1 %v4076_v8  ;;  %v4525_v55 = vpop.permute.xlu0 %4524 }
 0x8fe   : > { %6346 = vmatmul.mubr.bf16.vlgmr.msra.gmra.mxu1 %v4077_v5  ;;  %v4568_v20 = vsel %vm909_vm0, %v4525_v55, 0 }
 0x8ff   : > { %6362 = vmatpush3.bf16.xpose.msra.mxu1 %v4580_v12  ;;  %4885 = vrot.lane.b32.xlu0 %v6682_v47, %s7051_s13 }
 0x900   : > { %6498 = vmatprep.subr.msk.bf16.mxu1 %vm909_vm0, %v4531_v57 }
 0x907   : > { %6364 = vmatpush3.bf16.xpose.msra.mxu1 %v4577_v11 }
 0x908   : > { %6499 = vmatprep.subr.msk.bf16.mxu1 %vm909_vm0, %v4529_v38 }
 0x90f   : > { %6366 = vmatpush3.bf16.xpose.msra.mxu1 %v4574_v63 }
 0x910   : > { %6500 = vmatprep.subr.msk.bf16.mxu1 %vm909_vm0, %v4527_v33 }
 0x917   : > { %6368 = vmatpush3.bf16.xpose.msra.mxu1 %v4571_v41 }
 0x918   : > { %6501 = vmatprep.subr.msk.bf16.mxu1 %vm909_vm0, %v4525_v55 }
 0x919   : > { %v4025_v1 = vpop.xlane.xlu0 %4024 }
 0x91d   : > { %v4023_v59 = vpop.xlane.xlu0 %4022 }
 0x91e   : > { %6873 = vrcp.f32 %v4023_v59 }
 0x91f   : > { %6370 = vmatpush3.bf16.xpose.msra.mxu1 %v4568_v20  ;;  %v4021_v3 = vpop.xlane.xlu1 %4020 }
 0x920   : > { %6875 = vrcp.f32 %v4021_v3 }
 0x921   : > { %6877 = vrcp.f32 %v4025_v1 }
 0x923   : > { %v4027_v22 = vpop.xlane.xlu1 %4026 }
 0x924   : > { %6879 = vrcp.f32 %v4027_v22 }
 0x927   : > { %v4033_v10 = vpop.xlane.xlu1 %4032 }
 0x92b   : > { %v4029_v53 = vpop.xlane.xlu1 %4028  ;;  %v6874_v25 = vpop.eup %6873 }
 0x92c   : > { %v4065_v5 = vmul.f32 %v6874_v25, %v9304_v16 }
 0x92d   : > { %v6876_v14 = vpop.eup %6875 }
 0x92e   : > { %v4064_v8 = vmul.f32 %v6876_v14, %v9307_v35  ;;  %v6878_v47 = vpop.eup %6877 }
 0x92f   : > { %v4035_v12 = vpop.xlane.xlu1 %4034  ;;  %v4066_v38 = vmul.f32 %v6878_v47, %v9299_v2 }
 0x930   : > { %v4078_v57 = vpack.c.bf16 %v4065_v5, %v4064_v8  ;;  %6881 = vrcp.f32 %v4035_v12 }
 0x931   : > { %v6880_v11 = vpop.eup %6879  ;;  %6883 = vrcp.f32 %v4029_v53 }
 0x932   : > { %6349 = vmatprep.mubr.bf16.mxu1 %v4078_v57  ;;  %v4067_v63 = vmul.f32 %v6880_v11, %v9315_v18  ;;  %6885 = vrcp.f32 %v4033_v10  ;;  %v4041_v18 = vpop.xlane.xlu0 %4040 }
 0x933   : > { %v4031_v33 = vpop.xlane.xlu1 %4030 }
 0x934   : > { %6887 = vrcp.f32 %v4031_v33  ;;  %v4079_v55 = vpack.c.bf16 %v4067_v63, %v4066_v38 }
 0x936   : > { %6350 = vmatmul.mubr.bf16.gmra.mxu1 %v4079_v55  ;;  %v4037_v10 = vpop.xlane.xlu0 %4036 }
 0x93d   : > { %v6882_v41 = vpop.eup %6881 }
 0x93e   : > { %v6884_v35 = vpop.eup %6883  ;;  %v4071_v59 = vmul.f32 %v6882_v41, %v9330_v23 }
 0x93f   : > { %v6886_v1 = vpop.eup %6885  ;;  %v4068_v20 = vmul.f32 %v6884_v35, %v9324_v43 }
 0x940   : > { %v4070_v22 = vmul.f32 %v6886_v1, %v9318_v51 }
 0x941   : > { %v6888_v16 = vpop.eup %6887 }
 0x942   : > { %v4069_v3 = vmul.f32 %v6888_v16, %v9333_v13  ;;  %v4081_v53 = vpack.c.bf16 %v4071_v59, %v4070_v22 }
 0x944   : > { %v4080_v2 = vpack.c.bf16 %v4069_v3, %v4068_v20 }
 0x946   : > { %6353 = vmatprep.mubr.bf16.mxu1 %v4080_v2 }
 0x947   : > { %6354 = vmatmul.mubr.bf16.gmra.mxu1 %v4081_v53 }
 0x95a   : > { %v4043_v25 = vpop.xlane.xlu0 %4042 }
 0x95b   : > { %6889 = vrcp.f32 %v4043_v25 }
 0x95c   : > { %6891 = vrcp.f32 %v4037_v10 }
 0x95d   : > { %6893 = vrcp.f32 %v4041_v18 }
 0x95e   : > { %v4039_v14 = vpop.xlane.xlu1 %4038  ;;  %v4521_v8 = vpop.permute.xlu0 %4520 }
 0x95f   : > { %6895 = vrcp.f32 %v4039_v14  ;;  %v4562_v63 = vsel %vm909_vm0, %v4521_v8, 0 }
 0x962   : > { %v4523_v23 = vpop.permute.xlu1 %4522  ;;  %v4519_v5 = vpop.permute.xlu0 %4518 }
 0x963   : > { %v4565_v43 = vsel %vm909_vm0, %v4523_v23, 0  ;;  %6502 = vmatprep.subr.msk.bf16.mxu1 %vm909_vm0, %v4523_v23  ;;  %v4559_v53 = vsel %vm909_vm0, %v4519_v5, 0 }
 0x964   : > { %6372 = vmatpush3.bf16.xpose.msra.mxu1 %v4565_v43 }
 0x965   : > { %6503 = vmatprep.subr.msk.bf16.mxu1 %vm909_vm0, %v4521_v8 }
 0x966   : > { %v4463_v51 = vpop.permute.xlu1 %4462  ;;  %v4465_v13 = vpop.permute.xlu0 %4464 }
 0x968   : > { %v6890_v47 = vpop.eup %6889 }
 0x969   : > { %v6892_v12 = vpop.eup %6891  ;;  %v4075_v55 = vmul.f32 %v6890_v47, %v9338_v52 }
 0x96a   : > { %v4467_v57 = vpop.permute.xlu1 %4466  ;;  %v4469_v11 = vpop.permute.xlu0 %4468  ;;  %v4072_v41 = vmul.f32 %v6892_v12, %v9327_v6 }
 0x96b   : > { %v6894_v38 = vpop.eup %6893 }
 0x96c   : > { %v6896_v33 = vpop.eup %6895  ;;  %6374 = vmatpush3.bf16.xpose.msra.mxu1 %v4562_v63  ;;  %v4074_v59 = vmul.f32 %v6894_v38, %v9321_v0 }
 0x96d   : > { %6504 = vmatprep.subr.msk.bf16.mxu1 %vm909_vm0, %v4519_v5  ;;  %v4073_v35 = vmul.f32 %v6896_v33, %v9341_v46 }
 0x96e   : > { %v4471_v1 = vpop.permute.xlu1 %4470  ;;  %v4473_v16 = vpop.permute.xlu0 %4472  ;;  %v4083_v3 = vpack.c.bf16 %v4075_v55, %v4074_v59 }
 0x96f   : > { %v4082_v20 = vpack.c.bf16 %v4073_v35, %v4072_v41 }
 0x971   : > { %6357 = vmatprep.mubr.bf16.mxu1 %v4082_v20 }
 0x972   : > { %v4475_v22 = vpop.permute.xlu1 %4474  ;;  %6358 = vmatmul.mubr.bf16.gmra.mxu1 %v4083_v3  ;;  %v4477_v2 = vpop.permute.xlu0 %4476 }
 0x973   : > { %6377 = vmatprep.mubr.msk.bf16.mxu1 %vm909_vm0, %v4463_v51 }
 0x974   : > { %6376 = vmatpush3.bf16.xpose.msra.mxu1 %v4559_v53 }
 0x976   : > { %v4886_v52 = vpop.permute.xlu0 %4885  ;;  %v4884_v6 = vpop.permute.xlu1 %4883 }
 0x977   : > { %6393 = vmatprep.subr.bf16.mxu0 %v4886_v52 }
 0x978   : > { %6394 = vmatpush3.bf16.msra.mxu0 %v4886_v52 }
 0x979   : > { %6395 = vmatprep.subr.bf16.mxu0 %v4884_v6 }
 0x97b   : > { %6378 = vmatmul.mubr.msk.bf16.vlgmr.msra.gmra.mxu1 %vm909_vm0, %v4465_v13 }
 0x97c   : > { %6381 = vmatprep.mubr.msk.bf16.mxu1 %vm909_vm0, %v4467_v57  ;;  %6396 = vmatpush3.bf16.msra.mxu0 %v4884_v6 }
 0x983   : > { %6382 = vmatmul.mubr.msk.bf16.gmra.mxu1 %vm909_vm0, %v4469_v11 }
 0x984   : > { %6385 = vmatprep.mubr.msk.bf16.mxu1 %vm909_vm0, %v4471_v1 }
 0x98b   : > { %6386 = vmatmul.mubr.msk.bf16.gmra.mxu1 %vm909_vm0, %v4473_v16 }
 0x98c   : > { %6389 = vmatprep.mubr.msk.bf16.mxu1 %vm909_vm0, %v4475_v22 }
 0x993   : > { %6390 = vmatmul.mubr.msk.bf16.gmra.mxu1 %vm909_vm0, %v4477_v2  ;;  %vm3594_vm0 = vcmask 519424  }
 0x9be   : > { %v9397_v0 = vpop.f32.mrf.mxu1 }
 0x9c0   : > { %v9399_v46 = vpop.f32.mrf.mxu1 }
 0x9c2   : > { %v9401_v18 = vpop.f32.mrf.mxu1 }
 0x9c4   : > { %v9403_v10 = vpop.f32.mrf.mxu1 }
 0x9f6   : > { %v9405_v25 = vpop.f32.mrf.mxu1 }
 0x9f8   : > { %v9407_v14 = vpop.f32.mrf.mxu1 }
 0x9fa   : > { %v9409_v8 = vpop.f32.mrf.mxu1 }
 0x9fc   : > { %v9411_v23 = vpop.f32.mrf.mxu1 }
 0xa07   : > { %v9413_v5 = vpop.f32.mrf.mxu1 }
 0xa09   : > { %v9415_v43 = vpop.f32.mrf.mxu1 }
 0xa0b   : > { %v9417_v51 = vpop.f32.mrf.mxu1 }
 0xa0d   : > { %v9419_v13 = vpop.f32.mrf.mxu1 }
 0xa32   : > { %v9421_v47 = vpop.f32.mrf.mxu1 }
 0xa34   : > { %v9423_v12 = vpop.f32.mrf.mxu1 }
 0xa36   : > { %v9425_v57 = vpop.f32.mrf.mxu1 }
 0xa37   : > { %10172 = vst [vmem:[#allocation92_spill] sm:$0xff] %v9425_v57 }
 0xa38   : > { %v9427_v11 = vpop.f32.mrf.mxu1 }
 0xa3b   : > { %v6379_v38 = vpop.f32.mrf.mxu1 }
 0xa3c   : > { %v4625_v63 = vadd.f32 %v6379_v38, %v8692_v58 }
 0xa3d   : > { %v4616_v33 = vpop.f32.mrf.mxu1 }
 0xa3e   : > { %v4617_v55 = vadd.f32 %v4616_v33, %v8702_v4  ;;  %4683 = vmax.xlane.f32.xlu0 %v4625_v63 }
 0xa3f   : > { %v6380_v41 = vpop.f32.mrf.mxu1 }
 0xa40   : > { %4679 = vmax.xlane.f32.xlu1 %v4617_v55  ;;  %v4628_v1 = vadd.f32 %v6380_v41, %v8713_v28  ;;  %v6685_v41 = vld [vmem:[#allocation6 + $0x20] sm:$0xff]  }
 0xa41   : > { %v4619_v35 = vpop.f32.mrf.mxu1 }
 0xa42   : > { %v9433_v16 = vadd.f32 %v4619_v35, %v8707_v54 }
 0xa43   : > { %v6383_v59 = vpop.f32.mrf.mxu1 }
 0xa44   : > { %4681 = vmax.xlane.f32.xlu0 %v9433_v16  ;;  %4685 = vmax.xlane.f32.xlu1 %v4628_v1  ;;  %v4641_v3 = vadd.f32 %v6383_v59, %v8728_v15 }
 0xa45   : > { %v4632_v20 = vpop.f32.mrf.mxu1 }
 0xa46   : > { %v9441_v2 = vadd.f32 %v4632_v20, %v8735_v30 }
 0xa47   : > { %v6384_v58 = vpop.f32.mrf.mxu1 }
 0xa48   : > { %v9438_v22 = vadd.f32 %v6384_v58, %v8783_v26  ;;  %4691 = vmax.xlane.f32.xlu0 %v4641_v3  ;;  %v6687_v58 = vld [vmem:[#allocation6 + $0x10] sm:$0xff]  }
 0xa49   : > { %v4635_v4 = vpop.f32.mrf.mxu1 }
 0xa4a   : > { %4693 = vmax.xlane.f32.xlu1 %v9438_v22  ;;  %v9445_v28 = vadd.f32 %v4635_v4, %v8791_v44 }
 0xa4b   : > { %v6387_v54 = vpop.f32.mrf.mxu1 }
 0xa4c   : > { %4687 = vmax.xlane.f32.xlu0 %v9441_v2  ;;  %v9449_v15 = vadd.f32 %v6387_v54, %v8746_v45 }
 0xa4d   : > { %v4648_v53 = vpop.f32.mrf.mxu1 }
 0xa4e   : > { %4689 = vmax.xlane.f32.xlu1 %v9445_v28  ;;  %v9457_v6 = vadd.f32 %v4648_v53, %v8754_v61  ;;  %v6683_v61 = vld [vmem:[#allocation6 + $0x18] sm:$0xff]  }
 0xa4f   : > { %v6388_v26 = vpop.f32.mrf.mxu1 }
 0xa50   : > { %v9453_v52 = vadd.f32 %v6388_v26, %v8800_v56  ;;  %4699 = vmax.xlane.f32.xlu0 %v9449_v15 }
 0xa51   : > { %v4651_v30 = vpop.f32.mrf.mxu1 }
 0xa52   : > { %4701 = vmax.xlane.f32.xlu1 %v9453_v52  ;;  %v9461_v38 = vadd.f32 %v4651_v30, %v8809_v36  ;;  %v6684_v36 = vld [vmem:[#allocation6 + $0x28] sm:$0xff]  }
 0xa53   : > { %v6391_v44 = vpop.f32.mrf.mxu1 }
 0xa54   : > { %4695 = vmax.xlane.f32.xlu0 %v9457_v6  ;;  %v9465_v45 = vadd.f32 %v6391_v44, %v8765_v17  ;;  %v6686_v17 = vld [vmem:[#allocation6 + $0x8] sm:$0xff]  }
 0xa55   : > { %v4664_v56 = vpop.f32.mrf.mxu1 }
 0xa56   : > { %4697 = vmax.xlane.f32.xlu1 %v9461_v38  ;;  %v9470_v33 = vadd.f32 %v4664_v56, %v8772_v42 }
 0xa57   : > { %v6392_v35 = vpop.f32.mrf.mxu1 }
 0xa58   : > { %4707 = vmax.xlane.f32.xlu0 %v9465_v45  ;;  %v9478_v59 = vadd.f32 %v6392_v35, %v8819_v48 }
 0xa59   : > { %v4667_v42 = vpop.f32.mrf.mxu1 }
 0xa5a   : > { %v9482_v20 = vadd.f32 %v4667_v42, %v8827_v27 }
 0xa5c   : > { %4703 = vmax.xlane.f32.xlu0 %v9470_v33 }
 0xa67   : > { %4877 = vrot.lane.b32.xlu1 %v6683_v61, %s7051_s13 }
 0xa72   : > { %4881 = vrot.lane.b32.xlu0 %v6684_v36, %s7051_s13 }
 0xa76   : > { %4879 = vrot.lane.b32.xlu0 %v6685_v41, %s7051_s13 }
 0xa7a   : > { %4873 = vrot.lane.b32.xlu0 %v6686_v17, %s7051_s13 }
 0xa8b   : > { %4709 = vmax.xlane.f32.xlu1 %v9478_v59 }
 0xa8f   : > { %4705 = vmax.xlane.f32.xlu1 %v9482_v20 }
 0xaa0   : > { %4875 = vrot.lane.b32.xlu1 %v6687_v58, %s7051_s13 }
 0xac7   : > { %v4684_v4 = vpop.xlane.xlu0 %4683 }
 0xac8   : > { %v4713_v54 = vsub.f32 %v4625_v63, %v4684_v4 }
 0xac9   : > { %v4680_v53 = vpop.xlane.xlu1 %4679 }
 0xaca   : > { %v4731_v26 = vmul.f32 1.442695, %v4713_v54  ;;  %v4711_v30 = vsub.f32 %v4617_v55, %v4680_v53 }
 0xacc   : > { %6897 = vpow2.f32 %v4731_v26  ;;  %v4727_v44 = vmul.f32 1.442695, %v4711_v30 }
 0xacd   : > { %v4686_v48 = vpop.xlane.xlu1 %4685  ;;  %v4682_v56 = vpop.xlane.xlu0 %4681 }
 0xace   : > { %v4714_v61 = vsub.f32 %v4628_v1, %v4686_v48  ;;  %6899 = vpow2.f32 %v4727_v44  ;;  %v4712_v27 = vsub.f32 %v9433_v16, %v4682_v56 }
 0xad0   : > { %v4733_v36 = vmul.f32 1.442695, %v4714_v61  ;;  %v4729_v42 = vmul.f32 1.442695, %v4712_v27 }
 0xad1   : > { %v4692_v41 = vpop.xlane.xlu0 %4691 }
 0xad2   : > { %v4717_v17 = vsub.f32 %v4641_v3, %v4692_v41  ;;  %6901 = vpow2.f32 %v4733_v36 }
 0xad3   : > { %v4694_v35 = vpop.xlane.xlu1 %4693 }
 0xad4   : > { %v4739_v58 = vmul.f32 1.442695, %v4717_v17  ;;  %v4718_v63 = vsub.f32 %v9438_v22, %v4694_v35 }
 0xad5   : > { %v4688_v57 = vpop.xlane.xlu0 %4687 }
 0xad6   : > { %6903 = vpow2.f32 %v4739_v58  ;;  %v4715_v55 = vsub.f32 %v9441_v2, %v4688_v57  ;;  %v4741_v26 = vmul.f32 1.442695, %v4718_v63 }
 0xad7   : > { %v4690_v4 = vpop.xlane.xlu1 %4689  ;;  %6905 = vpow2.f32 %v4729_v42 }
 0xad8   : > { %v4735_v54 = vmul.f32 1.442695, %v4715_v55  ;;  %v4716_v1 = vsub.f32 %v9445_v28, %v4690_v4 }
 0xad9   : > { %v9490_v53 = vpop.eup %6897  ;;  %v4700_v16 = vpop.xlane.xlu0 %4699 }
 0xada   : > { %6907 = vpow2.f32 %v4735_v54  ;;  %v4737_v3 = vmul.f32 1.442695, %v4716_v1  ;;  %v4721_v30 = vsub.f32 %v9449_v15, %v4700_v16  ;;  %4763 = vadd.xlane.f32.xlu1 %v9490_v53 }
 0xadb   : > { %v4702_v44 = vpop.xlane.xlu1 %4701  ;;  %v9494_v22 = vpop.eup %6899 }
 0xadc   : > { %6909 = vpow2.f32 %v4737_v3  ;;  %v4747_v2 = vmul.f32 1.442695, %v4721_v30  ;;  %v4722_v15 = vsub.f32 %v9453_v52, %v4702_v44 }
 0xadd   : > { %v4696_v57 = vpop.xlane.xlu0 %4695  ;;  %6911 = vpow2.f32 %v4741_v26 }
 0xade   : > { %v4719_v48 = vsub.f32 %v9457_v6, %v4696_v57  ;;  %4759 = vadd.xlane.f32.xlu1 %v9494_v22  ;;  %6913 = vpow2.f32 %v4747_v2  ;;  %v4749_v58 = vmul.f32 1.442695, %v4722_v15  ;;  %v6688_v2 = vld [vmem:[#allocation6] sm:$0xff]   ;;  %v5789_v15 = vpack.c.bf16 %v9172_v37, %v9172_v37 }
 0xadf   : > { %v4698_v28 = vpop.xlane.xlu1 %4697  ;;  %v9499_v61 = vpop.eup %6901 }
 0xae0   : > { %v4720_v56 = vsub.f32 %v9461_v38, %v4698_v28  ;;  %v4743_v27 = vmul.f32 1.442695, %v4719_v48  ;;  %v5788_v48 = vpack.c.bf16 %v9178_v19, %v9178_v19  ;;  %v5795_v28 = vpack.c.bf16 %v9190_v39, %v9190_v39 }
 0xae1   : > { %v4708_v36 = vpop.xlane.xlu0 %4707 }
 0xae2   : > { %v4745_v41 = vmul.f32 1.442695, %v4720_v56  ;;  %v4725_v17 = vsub.f32 %v9465_v45, %v4708_v36  ;;  %4765 = vadd.xlane.f32.xlu1 %v9499_v61 }
 0xae3   : > { %v9504_v35 = vpop.eup %6903  ;;  %v4878_v16 = vpop.permute.xlu1 %4877 }
 0xae4   : > { %6915 = vpow2.f32 %v4745_v41  ;;  %v4755_v6 = vmul.f32 1.442695, %v4725_v17  ;;  %4771 = vadd.xlane.f32.xlu0 %v9504_v35  ;;  %v9507_v42 = vpop.eup %6905 }
 0xae5   : > { %v4704_v38 = vpop.xlane.xlu0 %4703  ;;  %6917 = vpow2.f32 %v4743_v27  ;;  %v5797_v27 = vpack.c.bf16 %v9188_v60, %v9188_v60  ;;  %v5811_v60 = vpack.c.bf16 %v9415_v43, %v9415_v43  ;;  %v5791_v43 = vpack.c.bf16 %v9182_v21, %v9182_v21 }
 0xae6   : > { %v4723_v52 = vsub.f32 %v9470_v33, %v4704_v38  ;;  %4761 = vadd.xlane.f32.xlu1 %v9507_v42  ;;  %6919 = vpow2.f32 %v4755_v6  ;;  %v5803_v6 = vpack.c.bf16 %v9399_v46, %v9399_v46  ;;  %v5813_v46 = vpack.c.bf16 %v9413_v5, %v9413_v5 }
 0xae7   : > { %v9511_v63 = vpop.eup %6907  ;;  %6921 = vpow2.f32 %v4749_v58  ;;  %v5793_v5 = vpack.c.bf16 %v9180_v34, %v9180_v34  ;;  %v5807_v21 = vpack.c.bf16 %v9407_v14, %v9407_v14  ;;  %v5809_v34 = vpack.c.bf16 %v9405_v25, %v9405_v25 }
 0xae8   : > { %v4751_v45 = vmul.f32 1.442695, %v4723_v52  ;;  %4767 = vadd.xlane.f32.xlu0 %v9511_v63  ;;  %v5801_v52 = vpack.c.bf16 %v9196_v40, %v9196_v40  ;;  %v5796_v40 = vpack.c.bf16 %v9194_v62, %v9194_v62  ;;  %v5817_v14 = vpack.c.bf16 %v9421_v47, %v9421_v47 }
 0xae9   : > { %v9514_v55 = vpop.eup %6909  ;;  %v4882_v4 = vpop.permute.xlu0 %4881  ;;  %v5798_v25 = vpack.c.bf16 %v9192_v24, %v9192_v24  ;;  %v5804_v62 = vpack.c.bf16 %v9403_v10, %v9403_v10  ;;  %v5812_v47 = vpack.c.bf16 %v9419_v13, %v9419_v13  ;;  %v5814_v24 = vpack.c.bf16 %v9417_v51, %v9417_v51 }
 0xaea   : > { %4769 = vadd.xlane.f32.xlu1 %v9514_v55  ;;  %6397 = vmatprep.subr.bf16.mxu0 %v4882_v4  ;;  %v9517_v54 = vpop.eup %6911  ;;  %6923 = vpow2.f32 %v4751_v45  ;;  %v5787_v45 = vpack.c.bf16 %v9174_v7, %v9174_v7  ;;  %v5790_v7 = vpack.c.bf16 %v9176_v50, %v9176_v50  ;;  %v5806_v50 = vpack.c.bf16 %v9401_v18, %v9401_v18 }
 0xaeb   : > { %6398 = vmatpush3.bf16.msra.mxu0 %v4882_v4  ;;  %v9520_v1 = vpop.eup %6913  ;;  %v5792_v10 = vpack.c.bf16 %v9186_v31, %v9186_v31  ;;  %v5800_v13 = vpack.c.bf16 %v9202_v32, %v9202_v32  ;;  %v5794_v18 = vpack.c.bf16 %v9184_v9, %v9184_v9  ;;  %v5802_v31 = vpack.c.bf16 %v9200_v49, %v9200_v49 }
 0xaec   : > { %4773 = vadd.xlane.f32.xlu0 %v9517_v54  ;;  %v5808_v32 = vpack.c.bf16 %v9411_v23, %v9411_v23 }
 0xaed   : > { %v4880_v33 = vpop.permute.xlu0 %4879 }
 0xaee   : > { %6399 = vmatprep.subr.bf16.mxu0 %v4880_v33 }
 0xaef   : > { %6400 = vmatpush3.bf16.msra.mxu0 %v4880_v33 }
 0xaf0   : > { %4779 = vadd.xlane.f32.xlu0 %v9520_v1  ;;  %6401 = vmatprep.subr.bf16.mxu0 %v4878_v16 }
 0xaf1   : > { %v9523_v26 = vpop.eup %6915  ;;  %v4874_v37 = vpop.permute.xlu0 %4873 }
 0xaf2   : > { %4777 = vadd.xlane.f32.xlu1 %v9523_v26  ;;  %v9526_v3 = vpop.eup %6917 }
 0xaf3   : > { %6402 = vmatpush3.bf16.msra.mxu0 %v4878_v16  ;;  %v9529_v30 = vpop.eup %6919 }
 0xaf4   : > { %4775 = vadd.xlane.f32.xlu0 %v9526_v3  ;;  %v9532_v44 = vpop.eup %6921 }
 0xaf6   : > { %4787 = vadd.xlane.f32.xlu1 %v9529_v30 }
 0xaf7   : > { %v9535_v57 = vpop.eup %6923 }
 0xaf8   : > { %4781 = vadd.xlane.f32.xlu0 %v9532_v44 }
 0xafa   : > { %4783 = vadd.xlane.f32.xlu1 %v9535_v57 }
 0xb0b   : > { %4871 = vrot.lane.b32.xlu1 %v6688_v2, %s7051_s13 }
 0xb0f   : > { %3548 = vrot.lane.b32.xlu1 %v5788_v48, %s7051_s13 }
 0xb13   : > { %3562 = vrot.lane.b32.xlu1 %v5795_v28, %s7051_s13  ;;  %v5816_v28 = vpack.c.bf16 %v9427_v11, %v9427_v11 }
 0xb14   : > { %v4710_v56 = vpop.xlane.xlu1 %4709 }
 0xb15   : > { %v4726_v41 = vsub.f32 %v9478_v59, %v4710_v56  ;;  %v5805_v59 = vpack.c.bf16 %v9397_v0, %v9397_v0  ;;  %v5799_v0 = vpack.c.bf16 %v9198_v29, %v9198_v29  ;;  %v5815_v29 = vpack.c.bf16 %v9423_v12, %v9423_v12 }
 0xb17   : > { %3550 = vrot.lane.b32.xlu1 %v5789_v15, %s7051_s13  ;;  %v4757_v38 = vmul.f32 1.442695, %v4726_v41  ;;  %v5810_v15 = vpack.c.bf16 %v9409_v8, %v9409_v8 }
 0xb18   : > { %v4706_v36 = vpop.xlane.xlu1 %4705 }
 0xb19   : > { %v4724_v19 = vsub.f32 %v9482_v20, %v4706_v36 }
 0xb1b   : > { %v4753_v17 = vmul.f32 1.442695, %v4724_v19  ;;  %3566 = vrot.lane.b32.xlu1 %v5797_v27, %s7051_s13  ;;  %v10173_v19 = vld [vmem:[#allocation92_spill] sm:$0xff] }
 0xb1c   : > { %v4876_v39 = vpop.permute.xlu1 %4875 }
 0xb1d   : > { %6925 = vpow2.f32 %v4753_v17  ;;  %6403 = vmatprep.subr.bf16.mxu0 %v4876_v39  ;;  %v5818_v17 = vpack.c.bf16 %v10173_v19, %v10173_v19 }
 0xb1e   : > { %6404 = vmatpush3.bf16.msra.mxu0 %v4876_v39  ;;  %6927 = vpow2.f32 %v4757_v38 }
 0xb1f   : > { %4293 = vrot.lane.b32.xlu1 %v5803_v6, %s7053_s18  ;;  %6405 = vmatprep.subr.bf16.mxu0 %v4874_v37 }
 0xb22   : > { %6406 = vmatpush3.bf16.msra.mxu0 %v4874_v37 }
 0xb23   : > { %4309 = vrot.lane.b32.xlu1 %v5811_v60, %s7053_s18 }
 0xb27   : > { %4297 = vrot.lane.b32.xlu1 %v5805_v59, %s7053_s18 }
 0xb2a   : > { %v9564_v20 = vpop.eup %6925 }
 0xb2b   : > { %4785 = vadd.xlane.f32.xlu0 %v9564_v20  ;;  %4313 = vrot.lane.b32.xlu1 %v5813_v46, %s7053_s18  ;;  %v9570_v58 = vpop.eup %6927 }
 0xb2f   : > { %4789 = vadd.xlane.f32.xlu0 %v9570_v58  ;;  %3554 = vrot.lane.b32.xlu1 %v5791_v43, %s7051_s13 }
 0xb33   : > { %3570 = vrot.lane.b32.xlu1 %v5799_v0, %s7051_s13 }
 0xb37   : > { %3558 = vrot.lane.b32.xlu1 %v5793_v5, %s7051_s13 }
 0xb3b   : > { %3574 = vrot.lane.b32.xlu1 %v5801_v52, %s7051_s13 }
 0xb3f   : > { %4301 = vrot.lane.b32.xlu1 %v5807_v21, %s7053_s18 }
 0xb43   : > { %4317 = vrot.lane.b32.xlu1 %v5815_v29, %s7053_s18 }
 0xb45   : > { %3546 = vrot.lane.b32.xlu0 %v5787_v45, %s7051_s13 }
 0xb47   : > { %4305 = vrot.lane.b32.xlu1 %v5809_v34, %s7053_s18 }
 0xb49   : > { %3564 = vrot.lane.b32.xlu0 %v5796_v40, %s7051_s13 }
 0xb4b   : > { %4321 = vrot.lane.b32.xlu1 %v5817_v14, %s7053_s18 }
 0xb4d   : > { %3552 = vrot.lane.b32.xlu0 %v5790_v7, %s7051_s13 }
 0xb51   : > { %3568 = vrot.lane.b32.xlu0 %v5798_v25, %s7051_s13 }
 0xb55   : > { %4295 = vrot.lane.b32.xlu0 %v5804_v62, %s7053_s18 }
 0xb59   : > { %4311 = vrot.lane.b32.xlu0 %v5812_v47, %s7053_s18 }
 0xb5d   : > { %4299 = vrot.lane.b32.xlu0 %v5806_v50, %s7053_s18 }
 0xb61   : > { %4315 = vrot.lane.b32.xlu0 %v5814_v24, %s7053_s18 }
 0xb63   : > { %v4764_v12 = vpop.xlane.xlu1 %4763 }
 0xb65   : > { %3556 = vrot.lane.b32.xlu0 %v5792_v10, %s7051_s13 }
 0xb67   : > { %v4760_v4 = vpop.xlane.xlu1 %4759 }
 0xb68   : > { %6929 = vrcp.f32 %v4760_v4 }
 0xb69   : > { %3572 = vrot.lane.b32.xlu0 %v5800_v13, %s7051_s13 }
 0xb6b   : > { %v4766_v33 = vpop.xlane.xlu1 %4765 }
 0xb6d   : > { %3560 = vrot.lane.b32.xlu0 %v5794_v18, %s7051_s13  ;;  %v4772_v51 = vpop.xlane.xlu0 %4771 }
 0xb6f   : > { %v4762_v16 = vpop.xlane.xlu1 %4761 }
 0xb70   : > { %6931 = vrcp.f32 %v4762_v16 }
 0xb71   : > { %3576 = vrot.lane.b32.xlu0 %v5802_v31, %s7051_s13  ;;  %v4768_v2 = vpop.xlane.xlu0 %4767  ;;  %6933 = vrcp.f32 %v4766_v33 }
 0xb73   : > { %v4770_v48 = vpop.xlane.xlu1 %4769 }
 0xb74   : > { %6935 = vrcp.f32 %v4770_v48 }
 0xb75   : > { %4303 = vrot.lane.b32.xlu0 %v5808_v32, %s7053_s18  ;;  %v4774_v9 = vpop.xlane.xlu0 %4773  ;;  %6937 = vrcp.f32 %v4764_v12  ;;  %v6930_v56 = vpop.eup %6929 }
 0xb76   : > { %6939 = vrcp.f32 %v4768_v2  ;;  %v4807_v41 = vmul.f32 %v6930_v56, %v9494_v22 }
 0xb77   : > { %6941 = vrcp.f32 %v4774_v9 }
 0xb79   : > { %4319 = vrot.lane.b32.xlu0 %v5816_v28, %s7053_s18  ;;  %v4780_v49 = vpop.xlane.xlu0 %4779 }
 0xb7b   : > { %v4778_v36 = vpop.xlane.xlu1 %4777 }
 0xb7d   : > { %v6932_v23 = vpop.eup %6931  ;;  %4307 = vrot.lane.b32.xlu0 %v5810_v15, %s7053_s18  ;;  %v4776_v27 = vpop.xlane.xlu0 %4775 }
 0xb7e   : > { %v4808_v11 = vmul.f32 %v6932_v23, %v9507_v42  ;;  %6943 = vrcp.f32 %v4776_v27  ;;  %v6934_v8 = vpop.eup %6933 }
 0xb7f   : > { %v9644_v39 = vpop.xlane.xlu1 %4787  ;;  %6945 = vrcp.f32 %v4772_v51  ;;  %v4810_v42 = vmul.f32 %v6934_v8, %v9499_v61 }
 0xb80   : > { %v4823_v6 = vpack.c.bf16 %v4808_v11, %v4807_v41  ;;  %6947 = vrcp.f32 %v4778_v36 }
 0xb81   : > { %4323 = vrot.lane.b32.xlu0 %v5818_v17, %s7053_s18  ;;  %v4782_v38 = vpop.xlane.xlu0 %4781  ;;  %v6936_v60 = vpop.eup %6935 }
 0xb82   : > { %6409 = vmatprep.mubr.bf16.mxu0 %v4823_v6  ;;  %v6938_v59 = vpop.eup %6937  ;;  %6949 = vrcp.f32 %v4782_v38  ;;  %v4812_v43 = vmul.f32 %v6936_v60, %v9514_v55 }
 0xb83   : > { %v4784_v37 = vpop.xlane.xlu1 %4783  ;;  %v6940_v22 = vpop.eup %6939  ;;  %6951 = vrcp.f32 %v4780_v49  ;;  %v4809_v0 = vmul.f32 %v6938_v59, %v9490_v53 }
 0xb84   : > { %v4811_v5 = vmul.f32 %v6940_v22, %v9511_v63  ;;  %v6942_v21 = vpop.eup %6941  ;;  %6953 = vrcp.f32 %v4784_v37 }
 0xb85   : > { %v4824_v52 = vpack.c.bf16 %v4810_v42, %v4809_v0  ;;  %v4814_v55 = vmul.f32 %v6942_v21, %v9517_v54  ;;  %v6690_v0 = vld [vmem:[%s9824_s2 + $0x30] sm:$0xff]   ;;  %v6693_v21 = vld [vmem:[%s9824_s2 + $0x18] sm:$0xff]  }
 0xb86   : > { %v4825_v45 = vpack.c.bf16 %v4812_v43, %v4811_v5  ;;  %v6689_v43 = vld [vmem:[%s9824_s2 + $0x38] sm:$0xff]   ;;  %v6691_v5 = vld [vmem:[%s9824_s2 + $0x28] sm:$0xff]  }
 0xb87   : > { %v4872_v46 = vpop.permute.xlu1 %4871  ;;  %6457 = vmatprep.subr.bf16.mxu1 %v6689_v43 }
 0xb88   : > { %6407 = vmatprep.subr.bf16.mxu0 %v4872_v46  ;;  %6465 = vmatpush3.bf16.msra.mxu1 %v6689_v43 }
 0xb89   : > { %6408 = vmatpush3.bf16.msra.mxu0 %v4872_v46  ;;  %6458 = vmatprep.subr.bf16.mxu1 %v6690_v0 }
 0xb8a   : > { %6425 = vmatprep.subr.bf16.mxu0 %v6689_v43 }
 0xb8b   : > { %v3549_v29 = vpop.permute.xlu1 %3548  ;;  %v6944_v34 = vpop.eup %6943 }
 0xb8c   : > { %3596 = vst.msk [vmem:[#allocation7 + $0x4] sm:$0xf] %vm3594_vm0, %v3549_v29  ;;  %6410 = vmatmul.mubr.bf16.vlgmr.msra.gmra.mxu0 %v4824_v52  ;;  %v6946_v61 = vpop.eup %6945  ;;  %v4815_v53 = vmul.f32 %v6944_v34, %v9526_v3  ;;  %6466 = vmatpush3.bf16.msra.mxu1 %v6690_v0  ;;  %v6692_v52 = vld [vmem:[%s9824_s2 + $0x20] sm:$0xff]   ;;  %v6694_v29 = vld [vmem:[%s9824_s2 + $0x10] sm:$0xff]   ;;  %v6695_v34 = vld [vmem:[%s9824_s2 + $0x8] sm:$0xff]  }
 0xb8d   : > { %6413 = vmatprep.mubr.bf16.mxu0 %v4825_v45  ;;  %v6948_v40 = vpop.eup %6947  ;;  %v4813_v63 = vmul.f32 %v6946_v61, %v9504_v35  ;;  %6426 = vmatpush3.bf16.msra.mxu0 %v6689_v43 }
 0xb8e   : > { %v4816_v7 = vmul.f32 %v6948_v40, %v9523_v26  ;;  %6427 = vmatprep.subr.bf16.mxu0 %v6690_v0  ;;  %6459 = vmatprep.subr.bf16.mxu1 %v6691_v5 }
 0xb8f   : > { %v3563_v14 = vpop.permute.xlu1 %3562  ;;  %v4826_v25 = vpack.c.bf16 %v4814_v55, %v4813_v63  ;;  %v6950_v62 = vpop.eup %6949 }
 0xb90   : > { %3603 = vst.msk [vmem:[#allocation7 + $0x20] sm:$0xf] %vm3594_vm0, %v3563_v14  ;;  %v4827_v50 = vpack.c.bf16 %v4816_v7, %v4815_v53  ;;  %v6952_v24 = vpop.eup %6951  ;;  %v4818_v54 = vmul.f32 %v6950_v62, %v9532_v44  ;;  %6467 = vmatpush3.bf16.msra.mxu1 %v6691_v5  ;;  %v6696_v14 = vld [vmem:[%s9824_s2] sm:$0xff]  }
 0xb91   : > { %v4817_v3 = vmul.f32 %v6952_v24, %v9520_v1  ;;  %v6954_v48 = vpop.eup %6953  ;;  %6428 = vmatpush3.bf16.msra.mxu0 %v6690_v0  ;;  %6460 = vmatprep.subr.bf16.mxu1 %v6692_v52 }
 0xb92   : > { %v4819_v56 = vmul.f32 %v6954_v48, %v9535_v57  ;;  %6429 = vmatprep.subr.bf16.mxu0 %v6691_v5 }
 0xb93   : > { %v3551_v47 = vpop.permute.xlu1 %3550  ;;  %v4828_v12 = vpack.c.bf16 %v4818_v54, %v4817_v3 }
 0xb94   : > { %3597 = vst.msk [vmem:[#allocation7 + $0x8] sm:$0xf] %vm3594_vm0, %v3551_v47  ;;  %6414 = vmatmul.mubr.bf16.gmra.mxu0 %v4826_v25  ;;  %6468 = vmatpush3.bf16.msra.mxu1 %v6692_v52 }
 0xb95   : > { %6417 = vmatprep.mubr.bf16.mxu0 %v4827_v50  ;;  %6430 = vmatpush3.bf16.msra.mxu0 %v6691_v5 }
 0xb96   : > { %6431 = vmatprep.subr.bf16.mxu0 %v6692_v52  ;;  %6461 = vmatprep.subr.bf16.mxu1 %v6693_v21 }
 0xb97   : > { %v3567_v10 = vpop.permute.xlu1 %3566 }
 0xb98   : > { %3605 = vst.msk [vmem:[#allocation7 + $0x28] sm:$0xf] %vm3594_vm0, %v3567_v10  ;;  %6469 = vmatpush3.bf16.msra.mxu1 %v6693_v21 }
 0xb99   : > { %6432 = vmatpush3.bf16.msra.mxu0 %v6692_v52  ;;  %6462 = vmatprep.subr.bf16.mxu1 %v6694_v29 }
 0xb9a   : > { %6433 = vmatprep.subr.bf16.mxu0 %v6693_v21 }
 0xb9b   : > { %v4294_v35 = vpop.permute.xlu1 %4293 }
 0xb9c   : > { %6418 = vmatmul.mubr.bf16.gmra.mxu0 %v4828_v12  ;;  %6470 = vmatpush3.bf16.msra.mxu1 %v6694_v29 }
 0xb9d   : > { %6434 = vmatpush3.bf16.msra.mxu0 %v6693_v21  ;;  %6463 = vmatprep.subr.bf16.mxu1 %v6695_v34 }
 0xb9e   : > { %6435 = vmatprep.subr.bf16.mxu0 %v6694_v29 }
 0xb9f   : > { %v4310_v26 = vpop.permute.xlu1 %4309 }
 0xba0   : > { %4350 = vst.msk [vmem:[#allocation7 + $0x20] sm:$0xf] %vm4341_vm5, %v4310_v26  ;;  %6471 = vmatpush3.bf16.msra.mxu1 %v6695_v34 }
 0xba1   : > { %6436 = vmatpush3.bf16.msra.mxu0 %v6694_v29  ;;  %6464 = vmatprep.subr.bf16.mxu1 %v6696_v14 }
 0xba2   : > { %6437 = vmatprep.subr.bf16.mxu0 %v6695_v34 }
 0xba3   : > { %v4298_v13 = vpop.permute.xlu1 %4297 }
 0xba4   : > { %4344 = vst.msk [vmem:[#allocation7 + $0x8] sm:$0xf] %vm4341_vm5, %v4298_v13  ;;  %6472 = vmatpush3.bf16.msra.mxu1 %v6696_v14 }
 0xba5   : > { %6438 = vmatpush3.bf16.msra.mxu0 %v6695_v34 }
 0xba6   : > { %6439 = vmatprep.subr.bf16.mxu0 %v6696_v14 }
 0xba7   : > { %v4314_v4 = vpop.permute.xlu1 %4313 }
 0xba8   : > { %4352 = vst.msk [vmem:[#allocation7 + $0x28] sm:$0xf] %vm4341_vm5, %v4314_v4 }
 0xba9   : > { %6440 = vmatpush3.bf16.msra.mxu0 %v6696_v14 }
 0xbab   : > { %v3555_v18 = vpop.permute.xlu1 %3554 }
 0xbac   : > { %3599 = vst.msk [vmem:[#allocation7 + $0x10] sm:$0xf] %vm3594_vm0, %v3555_v18 }
 0xbaf   : > { %v3571_v44 = vpop.permute.xlu1 %3570 }
 0xbb0   : > { %3607 = vst.msk [vmem:[#allocation7 + $0x30] sm:$0xf] %vm3594_vm0, %v3571_v44 }
 0xbb3   : > { %v3559_v1 = vpop.permute.xlu1 %3558 }
 0xbb4   : > { %3601 = vst.msk [vmem:[#allocation7 + $0x18] sm:$0xf] %vm3594_vm0, %v3559_v1  ;;  %v4786_v33 = vpop.xlane.xlu0 %4785 }
 0xbb5   : > { %6955 = vrcp.f32 %v4786_v33 }
 0xbb6   : > { %6957 = vrcp.f32 %v9644_v39 }
 0xbb7   : > { %v3575_v51 = vpop.permute.xlu1 %3574 }
 0xbb8   : > { %3609 = vst.msk [vmem:[#allocation7 + $0x38] sm:$0xf] %vm3594_vm0, %v3575_v51  ;;  %v4790_v31 = vpop.xlane.xlu0 %4789 }
 0xbb9   : > { %6959 = vrcp.f32 %v4790_v31 }
 0xbbb   : > { %v4302_v16 = vpop.permute.xlu1 %4301 }
 0xbbc   : > { %4346 = vst.msk [vmem:[#allocation7 + $0x10] sm:$0xf] %vm4341_vm5, %v4302_v16  ;;  %v3547_v2 = vpop.permute.xlu0 %3546 }
 0xbbd   : > { %3595 = vst.msk [vmem:[#allocation7] sm:$0xf] %vm3594_vm0, %v3547_v2 }
 0xbbe   : > { %4342 = vst.msk [vmem:[#allocation7] sm:$0xf] %vm4341_vm5, %v4294_v35 }
 0xbbf   : > { %v4318_v32 = vpop.permute.xlu1 %4317 }
 0xbc0   : > { %4354 = vst.msk [vmem:[#allocation7 + $0x30] sm:$0xf] %vm4341_vm5, %v4318_v32  ;;  %v3565_v9 = vpop.permute.xlu0 %3564 }
 0xbc1   : > { %3604 = vst.msk [vmem:[#allocation7 + $0x24] sm:$0xf] %vm3594_vm0, %v3565_v9 }
 0xbc2   : > { %v6956_v28 = vpop.eup %6955 }
 0xbc3   : > { %v4306_v49 = vpop.permute.xlu1 %4305  ;;  %v4820_v15 = vmul.f32 %v6956_v28, %v9564_v20  ;;  %v6958_v36 = vpop.eup %6957 }
 0xbc4   : > { %4348 = vst.msk [vmem:[#allocation7 + $0x18] sm:$0xf] %vm4341_vm5, %v4306_v49  ;;  %v3553_v23 = vpop.permute.xlu0 %3552  ;;  %v4821_v19 = vmul.f32 %v6958_v36, %v9529_v30 }
 0xbc5   : > { %3598 = vst.msk [vmem:[#allocation7 + $0xc] sm:$0xf] %vm3594_vm0, %v3553_v23  ;;  %v4829_v27 = vpack.c.bf16 %v4820_v15, %v4819_v56 }
 0xbc6   : > { %v6960_v41 = vpop.eup %6959 }
 0xbc7   : > { %v4322_v11 = vpop.permute.xlu1 %4321  ;;  %6421 = vmatprep.mubr.bf16.mxu0 %v4829_v27  ;;  %v4822_v17 = vmul.f32 %v6960_v41, %v9570_v58 }
 0xbc8   : > { %4356 = vst.msk [vmem:[#allocation7 + $0x38] sm:$0xf] %vm4341_vm5, %v4322_v11  ;;  %v3569_v39 = vpop.permute.xlu0 %3568 }
 0xbc9   : > { %3606 = vst.msk [vmem:[#allocation7 + $0x2c] sm:$0xf] %vm3594_vm0, %v3569_v39  ;;  %v4830_v57 = vpack.c.bf16 %v4822_v17, %v4821_v19 }
 0xbcb   : > { %6422 = vmatmul.mubr.bf16.gmra.mxu0 %v4830_v57 }
 0xbcc   : > { %v4296_v20 = vpop.permute.xlu0 %4295 }
 0xbcd   : > { %4343 = vst.msk [vmem:[#allocation7 + $0x4] sm:$0xf] %vm4341_vm5, %v4296_v20 }
 0xbd0   : > { %v4312_v6 = vpop.permute.xlu0 %4311 }
 0xbd1   : > { %4351 = vst.msk [vmem:[#allocation7 + $0x24] sm:$0xf] %vm4341_vm5, %v4312_v6 }
 0xbd4   : > { %v4300_v8 = vpop.permute.xlu0 %4299 }
 0xbd5   : > { %4345 = vst.msk [vmem:[#allocation7 + $0xc] sm:$0xf] %vm4341_vm5, %v4300_v8 }
 0xbd8   : > { %v4316_v38 = vpop.permute.xlu0 %4315 }
 0xbd9   : > { %4353 = vst.msk [vmem:[#allocation7 + $0x2c] sm:$0xf] %vm4341_vm5, %v4316_v38 }
 0xbdc   : > { %v3557_v30 = vpop.permute.xlu0 %3556 }
 0xbdd   : > { %3600 = vst.msk [vmem:[#allocation7 + $0x14] sm:$0xf] %vm3594_vm0, %v3557_v30 }
 0xbe0   : > { %v3573_v58 = vpop.permute.xlu0 %3572 }
 0xbe1   : > { %3608 = vst.msk [vmem:[#allocation7 + $0x34] sm:$0xf] %vm3594_vm0, %v3573_v58 }
 0xbe4   : > { %v3561_v37 = vpop.permute.xlu0 %3560 }
 0xbe5   : > { %3602 = vst.msk [vmem:[#allocation7 + $0x1c] sm:$0xf] %vm3594_vm0, %v3561_v37 }
 0xbe8   : > { %v3577_v60 = vpop.permute.xlu0 %3576 }
 0xbe9   : > { %3610 = vst.msk [vmem:[#allocation7 + $0x3c] sm:$0xf] %vm3594_vm0, %v3577_v60 }
 0xbec   : > { %v4304_v59 = vpop.permute.xlu0 %4303 }
 0xbed   : > { %4347 = vst.msk [vmem:[#allocation7 + $0x14] sm:$0xf] %vm4341_vm5, %v4304_v59 }
 0xbf0   : > { %v4320_v22 = vpop.permute.xlu0 %4319 }
 0xbf1   : > { %4355 = vst.msk [vmem:[#allocation7 + $0x34] sm:$0xf] %vm4341_vm5, %v4320_v22 }
 0xbf4   : > { %v4308_v42 = vpop.permute.xlu0 %4307 }
 0xbf5   : > { %4349 = vst.msk [vmem:[#allocation7 + $0x1c] sm:$0xf] %vm4341_vm5, %v4308_v42 }
 0xbf8   : > { %v4324_v46 = vpop.permute.xlu0 %4323 }
 0xbf9   : > { %4357 = vst.msk [vmem:[#allocation7 + $0x3c] sm:$0xf] %vm4341_vm5, %v4324_v46 }
 0xc4c   : > { %v6411_v45 = vpop.f32.mrf.mxu0 }
 0xc4d   : > { %v5821_v61 = vpack.c.bf16 %v6411_v45, %v6411_v45 }
 0xc4e   : > { %v4929_v40 = vpop.f32.mrf.mxu0 }
 0xc4f   : > { %5044 = vrot.lane.b32.xlu1 %v5821_v61, %s7054_s16  ;;  %v5819_v53 = vpack.c.bf16 %v4929_v40, %v4929_v40 }
 0xc50   : > { %v6412_v55 = vpop.f32.mrf.mxu0 }
 0xc51   : > { %v5822_v63 = vpack.c.bf16 %v6412_v55, %v6412_v55 }
 0xc52   : > { %v4932_v7 = vpop.f32.mrf.mxu0 }
 0xc53   : > { %5040 = vrot.lane.b32.xlu1 %v5819_v53, %s7054_s16  ;;  %5046 = vrot.lane.b32.xlu0 %v5822_v63, %s7054_s16  ;;  %v5820_v62 = vpack.c.bf16 %v4932_v7, %v4932_v7 }
 0xc54   : > { %v6415_v25 = vpop.f32.mrf.mxu0 }
 0xc55   : > { %v5825_v44 = vpack.c.bf16 %v6415_v25, %v6415_v25 }
 0xc56   : > { %v4945_v47 = vpop.f32.mrf.mxu0 }
 0xc57   : > { %v5823_v50 = vpack.c.bf16 %v4945_v47, %v4945_v47  ;;  %5042 = vrot.lane.b32.xlu0 %v5820_v62, %s7054_s16 }
 0xc58   : > { %v6416_v24 = vpop.f32.mrf.mxu0 }
 0xc59   : > { %5048 = vrot.lane.b32.xlu1 %v5823_v50, %s7054_s16  ;;  %v5826_v33 = vpack.c.bf16 %v6416_v24, %v6416_v24 }
 0xc5a   : > { %v4948_v54 = vpop.f32.mrf.mxu0 }
 0xc5b   : > { %v5824_v10 = vpack.c.bf16 %v4948_v54, %v4948_v54 }
 0xc5c   : > { %v6419_v3 = vpop.f32.mrf.mxu0 }
 0xc5d   : > { %v5829_v12 = vpack.c.bf16 %v6419_v3, %v6419_v3  ;;  %5050 = vrot.lane.b32.xlu0 %v5824_v10, %s7054_s16 }
 0xc5e   : > { %v4961_v35 = vpop.f32.mrf.mxu0 }
 0xc5f   : > { %5060 = vrot.lane.b32.xlu1 %v5829_v12, %s7054_s16  ;;  %v5827_v13 = vpack.c.bf16 %v4961_v35, %v4961_v35 }
 0xc60   : > { %v6420_v26 = vpop.f32.mrf.mxu0 }
 0xc61   : > { %v5830_v4 = vpack.c.bf16 %v6420_v26, %v6420_v26 }
 0xc62   : > { %v4964_v18 = vpop.f32.mrf.mxu0 }
 0xc63   : > { %5056 = vrot.lane.b32.xlu1 %v5827_v13, %s7054_s16  ;;  %5062 = vrot.lane.b32.xlu0 %v5830_v4, %s7054_s16  ;;  %v5828_v1 = vpack.c.bf16 %v4964_v18, %v4964_v18 }
 0xc67   : > { %5052 = vrot.lane.b32.xlu1 %v5825_v44, %s7054_s16  ;;  %5058 = vrot.lane.b32.xlu0 %v5828_v1, %s7054_s16 }
 0xc6b   : > { %5054 = vrot.lane.b32.xlu0 %v5826_v33, %s7054_s16 }
 0xc8b   : > { %v6423_v51 = vpop.f32.mrf.mxu0 }
 0xc8c   : > { %v5833_v48 = vpack.c.bf16 %v6423_v51, %v6423_v51 }
 0xc8d   : > { %v4977_v31 = vpop.f32.mrf.mxu0 }
 0xc8e   : > { %v5831_v16 = vpack.c.bf16 %v4977_v31, %v4977_v31 }
 0xc8f   : > { %v6424_v2 = vpop.f32.mrf.mxu0 }
 0xc90   : > { %5064 = vrot.lane.b32.xlu1 %v5831_v16, %s7054_s16  ;;  %v5834_v28 = vpack.c.bf16 %v6424_v2, %v6424_v2 }
 0xc91   : > { %v4980_v32 = vpop.f32.mrf.mxu0 }
 0xc92   : > { %v5832_v9 = vpack.c.bf16 %v4980_v32, %v4980_v32 }
 0xc94   : > { %5068 = vrot.lane.b32.xlu1 %v5833_v48, %s7054_s16  ;;  %5066 = vrot.lane.b32.xlu0 %v5832_v9, %s7054_s16 }
 0xc98   : > { %5070 = vrot.lane.b32.xlu0 %v5834_v28, %s7054_s16  ;;  %s242_s16 = sand.u32 1, %s7041_s22  }
 0xc99   : > { %s5426_s11 = sshll.u32 %s242_s16, 7  ;;  %s9782_s19 = scalar_lea.sflag [#allocation10], %s242_s16 }
 0xc9a   : > { %s9753_s10 = scalar_lea.vmem [#allocation9], %s5426_s11 }
 0xc9b   : > { %s5360_s14 = sshll.u32 %s9753_s10, 4  ;;  %s9776_s14 = int_to_ptr.vmem [resolvable:$true] %s5360_s14 }
 0xc9c   : > { %s6989_s25 = scalar_lea.vmem %s9776_s14, 2048  ;;  %p6996_p0 = scmp.lt.s32.totalorder %s9776_s14, %s6994_s26 }
 0xc9d   : > { %p6990_p11 = scmp.ne.s32.totalorder %s9776_s14, %s6989_s25  ;;  %p6997_p1 = scmp.lt.s32.totalorder %s6995_s28, %s6989_s25 }
 0xc9f   : > { %p6991_p12 = pnand %p6990_p11, %p7134_p5  ;;  %p6998_p2 = por %p6997_p1, %p6996_p0 }
 0xca1   : > { %p6992_p13 = pneg %p6991_p12 }
 0xca3   : > { %p6999_p3 = pnand %p6998_p2, %p6992_p13 }
 0xcc1   : > { %v5045_v49 = vpop.permute.xlu1 %5044 }
 0xcc2   : > { %5091 = vst.msk [vmem:[#allocation7 + $0x8] sm:$0xf] %vm5088_vm6, %v5045_v49 }
 0xcc5   : > { %v5041_v56 = vpop.permute.xlu1 %5040  ;;  %v5047_v15 = vpop.permute.xlu0 %5046 }
 0xcc6   : > { %5089 = vst.msk [vmem:[#allocation7] sm:$0xf] %vm5088_vm6, %v5041_v56  ;;  %5092 = vst.msk [vmem:[#allocation7 + $0xc] sm:$0xf] %vm5088_vm6, %v5047_v15 }
 0xcc9   : > { %v5043_v36 = vpop.permute.xlu0 %5042 }
 0xcca   : > { %5090 = vst.msk [vmem:[#allocation7 + $0x4] sm:$0xf] %vm5088_vm6, %v5043_v36 }
 0xccb   : > { %v5049_v23 = vpop.permute.xlu1 %5048 }
 0xccc   : > { %5093 = vst.msk [vmem:[#allocation7 + $0x10] sm:$0xf] %vm5088_vm6, %v5049_v23 }
 0xccd   : > { %v6698_v19 = vld [vmem:[#allocation7 + $0x8] sm:$0xff]  }
 0xccf   : > { %v5051_v27 = vpop.permute.xlu0 %5050 }
 0xcd0   : > { %5094 = vst.msk [vmem:[#allocation7 + $0x14] sm:$0xf] %vm5088_vm6, %v5051_v27 }
 0xcd1   : > { %v5061_v41 = vpop.permute.xlu1 %5060  ;;  %v6697_v11 = vld [vmem:[#allocation7] sm:$0xff]  }
 0xcd2   : > { %5099 = vst.msk [vmem:[#allocation7 + $0x28] sm:$0xf] %vm5088_vm6, %v5061_v41  ;;  %6441 = vmatprep.mubr.bf16.mxu0 %v6697_v11 }
 0xcd3   : > { %6442 = vmatmul.mubr.bf16.vlgmr.msra.gmra.mxu0 %v6698_v19 }
 0xcd5   : > { %v5057_v17 = vpop.permute.xlu1 %5056  ;;  %v5063_v39 = vpop.permute.xlu0 %5062 }
 0xcd6   : > { %5097 = vst.msk [vmem:[#allocation7 + $0x20] sm:$0xf] %vm5088_vm6, %v5057_v17  ;;  %5100 = vst.msk [vmem:[#allocation7 + $0x2c] sm:$0xf] %vm5088_vm6, %v5063_v39 }
 0xcd7   : > { %v6699_v57 = vld [vmem:[#allocation7 + $0x10] sm:$0xff]  }
 0xcd8   : > { %6445 = vmatprep.mubr.bf16.mxu0 %v6699_v57 }
 0xcd9   : > { %v5053_v20 = vpop.permute.xlu1 %5052  ;;  %v5059_v6 = vpop.permute.xlu0 %5058 }
 0xcda   : > { %5095 = vst.msk [vmem:[#allocation7 + $0x18] sm:$0xf] %vm5088_vm6, %v5053_v20  ;;  %5098 = vst.msk [vmem:[#allocation7 + $0x24] sm:$0xf] %vm5088_vm6, %v5059_v6 }
 0xcdd   : > { %v5055_v8 = vpop.permute.xlu0 %5054  ;;  %v6701_v30 = vld [vmem:[#allocation7 + $0x28] sm:$0xff]  }
 0xcde   : > { %5096 = vst.msk [vmem:[#allocation7 + $0x1c] sm:$0xf] %vm5088_vm6, %v5055_v8 }
 0xce1   : > { %v6700_v38 = vld [vmem:[#allocation7 + $0x20] sm:$0xff]  }
 0xce2   : > { %6449 = vmatprep.mubr.bf16.mxu1 %v6700_v38 }
 0xce3   : > { %6450 = vmatmul.mubr.bf16.vlgmr.msra.gmra.mxu1 %v6701_v30 }
 0xce5   : > { %v6702_v58 = vld [vmem:[#allocation7 + $0x18] sm:$0xff]  }
 0xce6   : > { %6446 = vmatmul.mubr.bf16.gmra.mxu0 %v6702_v58 }
 0xd02   : > { %v5065_v37 = vpop.permute.xlu1 %5064 }
 0xd03   : > { %5101 = vst.msk [vmem:[#allocation7 + $0x30] sm:$0xf] %vm5088_vm6, %v5065_v37 }
 0xd06   : > { %v5069_v60 = vpop.permute.xlu1 %5068  ;;  %v5067_v59 = vpop.permute.xlu0 %5066 }
 0xd07   : > { %5103 = vst.msk [vmem:[#allocation7 + $0x38] sm:$0xf] %vm5088_vm6, %v5069_v60  ;;  %5102 = vst.msk [vmem:[#allocation7 + $0x34] sm:$0xf] %vm5088_vm6, %v5067_v59 }
 0xd0a   : > { %v5071_v22 = vpop.permute.xlu0 %5070 }
 0xd0b   : > { %5104 = vst.msk [vmem:[#allocation7 + $0x3c] sm:$0xf] %vm5088_vm6, %v5071_v22 }
 0xd0e   : > { %v6703_v42 = vld [vmem:[#allocation7 + $0x30] sm:$0xff]  }
 0xd0f   : > { %6453 = vmatprep.mubr.bf16.mxu1 %v6703_v42 }
 0xd12   : > { %v6704_v46 = vld [vmem:[#allocation7 + $0x38] sm:$0xff]  }
 0xd13   : > { %6454 = vmatmul.mubr.bf16.gmra.mxu1 %v6704_v46 }
 0xd93   : > { %v6443_v43 = vpop.f32.mrf.mxu0 }
 0xd94   : > { %5332 = vst [vmem:[%s9753_s10 + $0x10] sm:$0xff] %v6443_v43 }
 0xd95   : > { %v5267_v0 = vpop.f32.mrf.mxu0 }
 0xd96   : > { %5330 = vst [vmem:[%s9753_s10] sm:$0xff] %v5267_v0 }
 0xd97   : > { %v6444_v5 = vpop.f32.mrf.mxu0 }
 0xd98   : > { %5333 = vst [vmem:[%s9753_s10 + $0x18] sm:$0xff] %v6444_v5 }
 0xd99   : > { %v5270_v52 = vpop.f32.mrf.mxu0 }
 0xd9a   : > { %5331 = vst [vmem:[%s9753_s10 + $0x8] sm:$0xff] %v5270_v52 }
 0xda3   : > { %v6451_v21 = vpop.f32.mrf.mxu1 }
 0xda4   : > { %5340 = vst [vmem:[%s9753_s10 + $0x50] sm:$0xff] %v6451_v21 }
 0xda5   : > { %v5299_v29 = vpop.f32.mrf.mxu1 }
 0xda6   : > { %5338 = vst [vmem:[%s9753_s10 + $0x40] sm:$0xff] %v5299_v29  ;;  %v6447_v45 = vpop.f32.mrf.mxu0 }
 0xda7   : > { %5336 = vst [vmem:[%s9753_s10 + $0x30] sm:$0xff] %v6447_v45  ;;  %v6452_v34 = vpop.f32.mrf.mxu1 }
 0xda8   : > { %5341 = vst [vmem:[%s9753_s10 + $0x58] sm:$0xff] %v6452_v34  ;;  %v5283_v61 = vpop.f32.mrf.mxu0 }
 0xda9   : > { %5334 = vst [vmem:[%s9753_s10 + $0x20] sm:$0xff] %v5283_v61  ;;  %v5302_v40 = vpop.f32.mrf.mxu1 }
 0xdaa   : > { %5339 = vst [vmem:[%s9753_s10 + $0x48] sm:$0xff] %v5302_v40  ;;  %v6448_v55 = vpop.f32.mrf.mxu0 }
 0xdab   : > { %5337 = vst [vmem:[%s9753_s10 + $0x38] sm:$0xff] %v6448_v55 }
 0xdac   : > { %v5286_v14 = vpop.f32.mrf.mxu0 }
 0xdad   : > { %5335 = vst [vmem:[%s9753_s10 + $0x28] sm:$0xff] %v5286_v14 }
 0xdd3   : > { %v6455_v53 = vpop.f32.mrf.mxu1 }
 0xdd4   : > { %5344 = vst [vmem:[%s9753_s10 + $0x70] sm:$0xff] %v6455_v53 }
 0xdd5   : > { %v5315_v63 = vpop.f32.mrf.mxu1 }
 0xdd6   : > { %5342 = vst [vmem:[%s9753_s10 + $0x60] sm:$0xff] %v5315_v63 }
 0xdd7   : > { %v6456_v7 = vpop.f32.mrf.mxu1 }
 0xdd8   : > { %5345 = vst [vmem:[%s9753_s10 + $0x78] sm:$0xff] %v6456_v7 }
 0xdd9   : > { %v5318_v25 = vpop.f32.mrf.mxu1 }
 0xdda   : > { %5343 = vst [vmem:[%s9753_s10 + $0x68] sm:$0xff] %v5318_v25 }
 0xddb   : > { %7002 = shalt.err (!%p6999_p3)
}
 0xddc   : > { %s7003_s9 = scalar_lea.hbm %s9774_s29, 2048  ;;  %s7007_s16 = scalar_lea.hbm %s9828_s6, 4096 }
 0xddd   : > { %p7004_p4 = scmp.ne.s32.totalorder %s9774_s29, %s7003_s9  ;;  %p7008_p9 = scmp.lt.s32.totalorder %s9774_s29, %s9828_s6 }
 0xdde   : > { %p7009_p10 = scmp.lt.s32.totalorder %s7007_s16, %s7003_s9 }
 0xddf   : > { %p7005_p7 = pnand %p7004_p4, %p7134_p5 }
 0xde0   : > { %p7010_p11 = por %p7009_p10, %p7008_p9 }
 0xde1   : > { %p7006_p8 = pneg %p7005_p7 }
 0xde3   : > { %p7011_p12 = pnand %p7010_p11, %p7006_p8 }
 0xde5   : > { %7014 = shalt.err (!%p7011_p12)
}
 0xde6   : > { %s7059_s12 = smov 128   ;;  %s7060_s15 = smov 8  }
 0xde7   : > { %6505 = dma.vmem_to_hbm [thread:$0]  (%p7134_p5), %s9776_s14, 2048, %s9774_s29, %s9782_s19, %s7059_s12, %s7059_s12, %s7060_s15  }
 0xde8 PF: > { %p6511_p13 = scmp.ge.s32.totalorder %s7049_s24, 2  ;;  %s5375_s17 = sand.u32 1, %s7037_s21  }
 0xde9   : > { %s5376_s25 = scalar_lea.sflag [#allocation10], %s5375_s17 }
 0xdea   : > { %p6508_p0 = pnand %p6511_p13, %p7138_p6 }
 0xdec   : > { %p6509_p1 = pneg %p6508_p0 }
 0xdee   : > { %7032 = dma.done.wait (%p6509_p1), %s5376_s25, 2048  }
 0xdef   : > { %7034 = vsyncadd (%p6509_p1), %s5376_s25, 4294965248  ;;  %p16_p2 = scmp.ge.s32.totalorder %s7121_s27, 4   ;;  %s10174_s21 = smov %s7041_s22 }
 0xdf0   : > { %s10175_s22 = smov %s7045_s23  ;;  %s10176_s23 = smov %s7132_s30 }
 0xdf1   : > { %s10177_s24 = smov %s7121_s27  ;;  %18 = sbr.rel (!%p16_p2) target bundleno = 3 (0x3), region = 81 }
 0xdf6   :  { %5381 = vsyncpa [#allocation10], 1 }
 0xdf7   :  { %5383 = vsyncpa [#allocation10 + $0x1], 1 }

</bundles_post_ra>
